<compile_context>
chip_gen: v6e
topology: v6e:2x2x1
jax: 0.10.0
libtpu: 0.0.40
codegen_flags: <defaults>
</compile_context>

<pallas_src>
import jax
import jax.numpy as jnp
from jax import lax
from jax.experimental import pallas as pl
from jax.experimental.pallas import tpu as pltpu


def neural_ode_kernel(dt_ref, hdt_ref, sdt_ref, h0_ref, w1_ref, b1_ref,
                      w2_ref, out_ref):
    B, D = h0_ref.shape
    Hp = w1_ref.shape[1]
    T = out_ref.shape[0]

    # One-time hoists (off the serial RK4 chain): weight/bias broadcasts, the
    # lane-replication of the initial state, and the lane-0/1 select mask.
    w1x = jnp.broadcast_to(w1_ref[0:1, :], (B, Hp))   # coeff of h[:, 0]
    w1y = jnp.broadcast_to(w1_ref[1:2, :], (B, Hp))   # coeff of h[:, 1]
    b1 = jnp.broadcast_to(b1_ref[...], (B, Hp))       # includes the 1.0 lane
    w2rep = w2_ref[...]                               # (Hp, 2*Hp), b2 folded in
    first_lane = lax.broadcasted_iota(jnp.int32, (B, D), 1) == 0

    hx = jnp.broadcast_to(h0_ref[:, 0:1], (B, Hp))    # lane-replicated state
    hy = jnp.broadcast_to(h0_ref[:, 1:2], (B, Hp))

    out_ref[0] = h0_ref[...]                          # state at t[0] is h0

    def f(px, py):
        # Layer 1: pure VPU FMAs on lane-replicated state (no XLU on chain).
        z = jnp.maximum(px * w1x + py * w1y + b1, 0.0)
        # Layer 2 (+ b2 via the constant-1 lane): one 256-wide MXU pass whose
        # two 128-lane halves are the lane-replicated output components.
        o = jnp.dot(z, w2rep, preferred_element_type=jnp.float32)
        return o[:, 0:Hp], o[:, Hp:2 * Hp]

    def step(i, px, py):
        dt = dt_ref[i]        # precomputed host-side
        hdt = hdt_ref[i]      # 0.5 * dt
        sdt = sdt_ref[i]      # dt / 6
        k1x, k1y = f(px, py)
        k2x, k2y = f(px + hdt * k1x, py + hdt * k1y)
        k3x, k3y = f(px + hdt * k2x, py + hdt * k2y)
        k4x, k4y = f(px + dt * k3x, py + dt * k3y)
        nx = px + sdt * (k1x + 2.0 * k2x + 2.0 * k3x + k4x)
        ny = py + sdt * (k1y + 2.0 * k2y + 2.0 * k3y + k4y)
        # Trajectory write: lanes are exact replicas, so lane 0/1 of nx/ny
        # already hold the two state components -> pure vselect, no lane
        # shifts, and off the dependency chain (next step consumes nx/ny).
        out_ref[i + 1] = jnp.where(first_lane, nx[:, 0:D], ny[:, 0:D])
        return nx, ny

    num_steps = T - 1
    if num_steps <= 32:
        # Small T: fully unrolled straight-line bundles (static SMEM reads,
        # static VMEM stores, zero loop overhead).
        for i in range(num_steps):
            hx, hy = step(i, hx, hy)
    else:
        # Scale guard: bound program size / compile time for long time grids.
        def body(i, carry):
            return step(i, carry[0], carry[1])
        hx, hy = lax.fori_loop(0, num_steps, body, (hx, hy), unroll=8)


def neural_ode(h0, t, w1, b1, w2, b2):
    """h0: (B,2), t: (T,), w1: (2,H), b1: (H,), w2: (H,2), b2: (2,)."""
    B, D = h0.shape
    T = int(t.shape[0])
    H = w1.shape[1]
    assert D == 2 and w2.shape == (H, D) and T >= 2

    f32 = jnp.float32
    # Pad the hidden dim to full 128-lane vregs, reserving one spare lane
    # (index H) that carries a constant 1.0 through ReLU so b2 folds into the
    # layer-2 matmul (W1 col H = 0, b1[H] = 1, W2rep row H = b2).
    Hp = ((H + 1 + 127) // 128) * 128

    w1p = jnp.zeros((D, Hp), f32).at[:, :H].set(w1.astype(f32))      # col H = 0
    b1p = (jnp.zeros((1, Hp), f32)
           .at[0, :H].set(b1.astype(f32))
           .at[0, H].set(1.0))

    # Column-replicated second layer (lane-replicated MXU output) with b2
    # folded into row H:
    #   w2rep[:, 0:Hp]    every column == w2[:, 0], row H == b2[0]
    #   w2rep[:, Hp:2Hp]  every column == w2[:, 1], row H == b2[1]
    w2_f = w2.astype(f32)
    b2_f = b2.astype(f32)
    col0 = jnp.zeros((Hp,), f32).at[:H].set(w2_f[:, 0]).at[H].set(b2_f[0])
    col1 = jnp.zeros((Hp,), f32).at[:H].set(w2_f[:, 1]).at[H].set(b2_f[1])
    w2rep = jnp.concatenate(
        [jnp.broadcast_to(col0[:, None], (Hp, Hp)),
         jnp.broadcast_to(col1[:, None], (Hp, Hp))], axis=1)          # (Hp, 2Hp)

    # Host-side dt precompute keeps the scalar subtract/divide and splats off
    # the head of each RK4 step's dependent chain.
    t_f = t.astype(f32)
    dts = jnp.diff(t_f)
    hdts = 0.5 * dts
    sdts = dts / 6.0

    return pl.pallas_call(
        neural_ode_kernel,
        out_shape=jax.ShapeDtypeStruct((T, B, D), f32),
        in_specs=[
            pl.BlockSpec(memory_space=pltpu.MemorySpace.SMEM),   # dt
            pl.BlockSpec(memory_space=pltpu.MemorySpace.SMEM),   # dt/2
            pl.BlockSpec(memory_space=pltpu.MemorySpace.SMEM),   # dt/6
            pl.BlockSpec(memory_space=pltpu.MemorySpace.VMEM),   # h0
            pl.BlockSpec(memory_space=pltpu.MemorySpace.VMEM),   # W1 (padded)
            pl.BlockSpec(memory_space=pltpu.MemorySpace.VMEM),   # b1 (padded, +1 lane)
            pl.BlockSpec(memory_space=pltpu.MemorySpace.VMEM),   # W2 replicated (+b2)
        ],
        out_specs=pl.BlockSpec(memory_space=pltpu.MemorySpace.VMEM),
    )(dts, hdts, sdts, h0.astype(f32), w1p, b1p, w2rep)


def _reference(h0, t, w1, b1, w2, b2):
    """Pure-JAX RK4 reference (single scan).

    HIGHEST matmul precision: XLA's DEFAULT f32 dot on TPU may use reduced
    (bf16-pass) precision, which would make the *reference* the inaccurate
    side of the comparison.
    """
    hp = lax.Precision.HIGHEST

    def f(h):
        z = jnp.maximum(jnp.dot(h, w1, precision=hp) + b1, 0.0)
        return jnp.dot(z, w2, precision=hp) + b2

    def step(h, dt):
        k1 = f(h)
        k2 = f(h + 0.5 * dt * k1)
        k3 = f(h + 0.5 * dt * k2)
        k4 = f(h + dt * k3)
        h_new = h + (dt / 6.0) * (k1 + 2.0 * k2 + 2.0 * k3 + k4)
        return h_new, h_new

    _, traj = lax.scan(step, h0, jnp.diff(t))
    return jnp.concatenate([h0[None], traj], axis=0)


if __name__ == "__main__":
    key = jax.random.PRNGKey(0)
    k_h0, k_w1, k_b1, k_w2, k_b2 = jax.random.split(key, 5)

    B, D, H, T = 8, 2, 50, 8

    h0 = jax.random.normal(k_h0, (B, D), dtype=jnp.float32)
    t = jnp.linspace(0.0, 2.0, T, dtype=jnp.float32)

    # nn.Linear-style uniform(-1/sqrt(fan_in), 1/sqrt(fan_in)) init.
    lim1 = 1.0 / jnp.sqrt(jnp.float32(D))
    lim2 = 1.0 / jnp.sqrt(jnp.float32(H))
    w1 = jax.random.uniform(k_w1, (D, H), jnp.float32, -lim1, lim1)
    b1 = jax.random.uniform(k_b1, (H,), jnp.float32, -lim1, lim1)
    w2 = jax.random.uniform(k_w2, (H, D), jnp.float32, -lim2, lim2)
    b2 = jax.random.uniform(k_b2, (D,), jnp.float32, -lim2, lim2)

    out = jax.block_until_ready(neural_ode(h0, t, w1, b1, w2, b2))

    ref = _reference(h0, t, w1, b1, w2, b2)
    assert out.shape == (T, B, D)
    max_err = float(jnp.max(jnp.abs(out - ref)))
    assert jnp.allclose(out, ref, rtol=1e-4, atol=1e-4), max_err

    print("KERNEL_OK")
</pallas_src>

<mosaic_0001>
module attributes {stable_mosaic.version = 11 : i64} {
  func.func @neural_ode_kernel(%arg0: memref<7xf32, #tpu.memory_space<smem>>, %arg1: memref<7xf32, #tpu.memory_space<smem>>, %arg2: memref<7xf32, #tpu.memory_space<smem>>, %arg3: memref<8x2xf32, #tpu.memory_space<vmem>>, %arg4: memref<2x128xf32, #tpu.memory_space<vmem>>, %arg5: memref<1x128xf32, #tpu.memory_space<vmem>>, %arg6: memref<128x256xf32, #tpu.memory_space<vmem>>, %arg7: memref<8x8x2xf32, #tpu.memory_space<vmem>>) attributes {dimension_semantics = [], scalar_prefetch = 0 : i64, scratch_operands = 0 : i64, tpu.core_type = #tpu.core_type<tc>} {
    %c0 = arith.constant 0 : index
    %c0_0 = arith.constant 0 : index
    %0 = vector.load %arg4[%c0, %c0_0] : memref<2x128xf32, #tpu.memory_space<vmem>>, vector<1x128xf32>
    %1 = vector.shape_cast %0 : vector<1x128xf32> to vector<1x128xf32>
    %2 = vector.broadcast %1 : vector<1x128xf32> to vector<8x128xf32>
    %c1 = arith.constant 1 : index
    %c0_1 = arith.constant 0 : index
    %3 = vector.load %arg4[%c1, %c0_1] : memref<2x128xf32, #tpu.memory_space<vmem>>, vector<1x128xf32>
    %4 = vector.shape_cast %3 : vector<1x128xf32> to vector<1x128xf32>
    %5 = vector.broadcast %4 : vector<1x128xf32> to vector<8x128xf32>
    %c0_2 = arith.constant 0 : index
    %c0_3 = arith.constant 0 : index
    %6 = vector.load %arg5[%c0_2, %c0_3] : memref<1x128xf32, #tpu.memory_space<vmem>>, vector<1x128xf32>
    %7 = vector.shape_cast %6 : vector<1x128xf32> to vector<1x128xf32>
    %8 = vector.broadcast %7 : vector<1x128xf32> to vector<8x128xf32>
    %c0_4 = arith.constant 0 : index
    %c0_5 = arith.constant 0 : index
    %9 = vector.load %arg6[%c0_4, %c0_5] : memref<128x256xf32, #tpu.memory_space<vmem>>, vector<128x256xf32>
    %10 = tpu.iota {dimensions = array<i32: 1>} : vector<8x2xi32>
    %c0_i32 = arith.constant 0 : i32
    %11 = vector.broadcast %c0_i32 : i32 to vector<8x2xi32>
    %12 = arith.cmpi eq, %10, %11 : vector<8x2xi32>
    %c0_6 = arith.constant 0 : index
    %c0_7 = arith.constant 0 : index
    %13 = vector.load %arg3[%c0_6, %c0_7] : memref<8x2xf32, #tpu.memory_space<vmem>>, vector<8x1xf32>
    %14 = vector.shape_cast %13 : vector<8x1xf32> to vector<8x1xf32>
    %15 = vector.broadcast %14 : vector<8x1xf32> to vector<8x128xf32>
    %c0_8 = arith.constant 0 : index
    %c1_9 = arith.constant 1 : index
    %16 = vector.load %arg3[%c0_8, %c1_9] : memref<8x2xf32, #tpu.memory_space<vmem>>, vector<8x1xf32>
    %17 = vector.shape_cast %16 : vector<8x1xf32> to vector<8x1xf32>
    %18 = vector.broadcast %17 : vector<8x1xf32> to vector<8x128xf32>
    %c0_10 = arith.constant 0 : index
    %c0_11 = arith.constant 0 : index
    %19 = vector.load %arg3[%c0_10, %c0_11] : memref<8x2xf32, #tpu.memory_space<vmem>>, vector<8x2xf32>
    %c0_12 = arith.constant 0 : index
    %c0_13 = arith.constant 0 : index
    %c0_14 = arith.constant 0 : index
    %20 = vector.load %arg7[%c0_12, %c0_13, %c0_14] : memref<8x8x2xf32, #tpu.memory_space<vmem>>, vector<1x8x2xf32>
    %21 = vector.shape_cast %20 : vector<1x8x2xf32> to vector<8x2xf32>
    %22 = vector.shape_cast %19 : vector<8x2xf32> to vector<1x8x2xf32>
    tpu.vector_store %arg7[%c0_12, %c0_13, %c0_14], %22 {strides = array<i32>} : memref<8x8x2xf32, #tpu.memory_space<vmem>>, vector<1x8x2xf32>,
    %c0_15 = arith.constant 0 : index
    %23 = memref.load %arg0[%c0_15] : memref<7xf32, #tpu.memory_space<smem>>
    %c0_16 = arith.constant 0 : index
    %24 = memref.load %arg1[%c0_16] : memref<7xf32, #tpu.memory_space<smem>>
    %c0_17 = arith.constant 0 : index
    %25 = memref.load %arg2[%c0_17] : memref<7xf32, #tpu.memory_space<smem>>
    %26 = arith.mulf %15, %2 : vector<8x128xf32>
    %27 = arith.mulf %18, %5 : vector<8x128xf32>
    %28 = arith.addf %26, %27 : vector<8x128xf32>
    %29 = arith.addf %28, %8 : vector<8x128xf32>
    %cst = arith.constant 0.000000e+00 : f32
    %30 = vector.broadcast %cst : f32 to vector<8x128xf32>
    %31 = arith.maximumf %29, %30 : vector<8x128xf32>
    %cst_18 = arith.constant dense<0.000000e+00> : vector<8x256xf32>
    %32 = tpu.matmul %31, %9, %cst_18 {dimension_numbers = #tpu.dot_dimension_numbers<[1], [0], [0], [1], [0, 0, 1, 1], [], []>} : vector<8x128xf32>, vector<128x256xf32>, vector<8x256xf32> -> vector<8x256xf32>
    %33 = vector.extract_strided_slice %32 {offsets = [0, 0], sizes = [8, 128], strides = [1, 1]} : vector<8x256xf32> to vector<8x128xf32>
    %34 = vector.extract_strided_slice %32 {offsets = [0, 128], sizes = [8, 128], strides = [1, 1]} : vector<8x256xf32> to vector<8x128xf32>
    %35 = vector.broadcast %24 : f32 to vector<8x128xf32>
    %36 = arith.mulf %35, %33 : vector<8x128xf32>
    %37 = arith.addf %15, %36 : vector<8x128xf32>
    %38 = vector.broadcast %24 : f32 to vector<8x128xf32>
    %39 = arith.mulf %38, %34 : vector<8x128xf32>
    %40 = arith.addf %18, %39 : vector<8x128xf32>
    %41 = arith.mulf %37, %2 : vector<8x128xf32>
    %42 = arith.mulf %40, %5 : vector<8x128xf32>
    %43 = arith.addf %41, %42 : vector<8x128xf32>
    %44 = arith.addf %43, %8 : vector<8x128xf32>
    %cst_19 = arith.constant 0.000000e+00 : f32
    %45 = vector.broadcast %cst_19 : f32 to vector<8x128xf32>
    %46 = arith.maximumf %44, %45 : vector<8x128xf32>
    %cst_20 = arith.constant dense<0.000000e+00> : vector<8x256xf32>
    %47 = tpu.matmul %46, %9, %cst_20 {dimension_numbers = #tpu.dot_dimension_numbers<[1], [0], [0], [1], [0, 0, 1, 1], [], []>} : vector<8x128xf32>, vector<128x256xf32>, vector<8x256xf32> -> vector<8x256xf32>
    %48 = vector.extract_strided_slice %47 {offsets = [0, 0], sizes = [8, 128], strides = [1, 1]} : vector<8x256xf32> to vector<8x128xf32>
    %49 = vector.extract_strided_slice %47 {offsets = [0, 128], sizes = [8, 128], strides = [1, 1]} : vector<8x256xf32> to vector<8x128xf32>
    %50 = vector.broadcast %24 : f32 to vector<8x128xf32>
    %51 = arith.mulf %50, %48 : vector<8x128xf32>
    %52 = arith.addf %15, %51 : vector<8x128xf32>
    %53 = vector.broadcast %24 : f32 to vector<8x128xf32>
    %54 = arith.mulf %53, %49 : vector<8x128xf32>
    %55 = arith.addf %18, %54 : vector<8x128xf32>
    %56 = arith.mulf %52, %2 : vector<8x128xf32>
    %57 = arith.mulf %55, %5 : vector<8x128xf32>
    %58 = arith.addf %56, %57 : vector<8x128xf32>
    %59 = arith.addf %58, %8 : vector<8x128xf32>
    %cst_21 = arith.constant 0.000000e+00 : f32
    %60 = vector.broadcast %cst_21 : f32 to vector<8x128xf32>
    %61 = arith.maximumf %59, %60 : vector<8x128xf32>
    %cst_22 = arith.constant dense<0.000000e+00> : vector<8x256xf32>
    %62 = tpu.matmul %61, %9, %cst_22 {dimension_numbers = #tpu.dot_dimension_numbers<[1], [0], [0], [1], [0, 0, 1, 1], [], []>} : vector<8x128xf32>, vector<128x256xf32>, vector<8x256xf32> -> vector<8x256xf32>
    %63 = vector.extract_strided_slice %62 {offsets = [0, 0], sizes = [8, 128], strides = [1, 1]} : vector<8x256xf32> to vector<8x128xf32>
    %64 = vector.extract_strided_slice %62 {offsets = [0, 128], sizes = [8, 128], strides = [1, 1]} : vector<8x256xf32> to vector<8x128xf32>
    %65 = vector.broadcast %23 : f32 to vector<8x128xf32>
    %66 = arith.mulf %65, %63 : vector<8x128xf32>
    %67 = arith.addf %15, %66 : vector<8x128xf32>
    %68 = vector.broadcast %23 : f32 to vector<8x128xf32>
    %69 = arith.mulf %68, %64 : vector<8x128xf32>
    %70 = arith.addf %18, %69 : vector<8x128xf32>
    %71 = arith.mulf %67, %2 : vector<8x128xf32>
    %72 = arith.mulf %70, %5 : vector<8x128xf32>
    %73 = arith.addf %71, %72 : vector<8x128xf32>
    %74 = arith.addf %73, %8 : vector<8x128xf32>
    %cst_23 = arith.constant 0.000000e+00 : f32
    %75 = vector.broadcast %cst_23 : f32 to vector<8x128xf32>
    %76 = arith.maximumf %74, %75 : vector<8x128xf32>
    %cst_24 = arith.constant dense<0.000000e+00> : vector<8x256xf32>
    %77 = tpu.matmul %76, %9, %cst_24 {dimension_numbers = #tpu.dot_dimension_numbers<[1], [0], [0], [1], [0, 0, 1, 1], [], []>} : vector<8x128xf32>, vector<128x256xf32>, vector<8x256xf32> -> vector<8x256xf32>
    %78 = vector.extract_strided_slice %77 {offsets = [0, 0], sizes = [8, 128], strides = [1, 1]} : vector<8x256xf32> to vector<8x128xf32>
    %79 = vector.extract_strided_slice %77 {offsets = [0, 128], sizes = [8, 128], strides = [1, 1]} : vector<8x256xf32> to vector<8x128xf32>
    %cst_25 = arith.constant 2.000000e+00 : f32
    %80 = vector.broadcast %cst_25 : f32 to vector<8x128xf32>
    %81 = arith.mulf %80, %48 : vector<8x128xf32>
    %82 = arith.addf %33, %81 : vector<8x128xf32>
    %cst_26 = arith.constant 2.000000e+00 : f32
    %83 = vector.broadcast %cst_26 : f32 to vector<8x128xf32>
    %84 = arith.mulf %83, %63 : vector<8x128xf32>
    %85 = arith.addf %82, %84 : vector<8x128xf32>
    %86 = arith.addf %85, %78 : vector<8x128xf32>
    %87 = vector.broadcast %25 : f32 to vector<8x128xf32>
    %88 = arith.mulf %87, %86 : vector<8x128xf32>
    %89 = arith.addf %15, %88 : vector<8x128xf32>
    %cst_27 = arith.constant 2.000000e+00 : f32
    %90 = vector.broadcast %cst_27 : f32 to vector<8x128xf32>
    %91 = arith.mulf %90, %49 : vector<8x128xf32>
    %92 = arith.addf %34, %91 : vector<8x128xf32>
    %cst_28 = arith.constant 2.000000e+00 : f32
    %93 = vector.broadcast %cst_28 : f32 to vector<8x128xf32>
    %94 = arith.mulf %93, %64 : vector<8x128xf32>
    %95 = arith.addf %92, %94 : vector<8x128xf32>
    %96 = arith.addf %95, %79 : vector<8x128xf32>
    %97 = vector.broadcast %25 : f32 to vector<8x128xf32>
    %98 = arith.mulf %97, %96 : vector<8x128xf32>
    %99 = arith.addf %18, %98 : vector<8x128xf32>
    %100 = vector.extract_strided_slice %89 {offsets = [0, 0], sizes = [8, 2], strides = [1, 1]} : vector<8x128xf32> to vector<8x2xf32>
    %101 = vector.extract_strided_slice %99 {offsets = [0, 0], sizes = [8, 2], strides = [1, 1]} : vector<8x128xf32> to vector<8x2xf32>
    %102 = arith.select %12, %100, %101 : vector<8x2xi1>, vector<8x2xf32>
    %c1_29 = arith.constant 1 : index
    %c0_30 = arith.constant 0 : index
    %c0_31 = arith.constant 0 : index
    %103 = vector.load %arg7[%c1_29, %c0_30, %c0_31] : memref<8x8x2xf32, #tpu.memory_space<vmem>>, vector<1x8x2xf32>
    %104 = vector.shape_cast %103 : vector<1x8x2xf32> to vector<8x2xf32>
    %105 = vector.shape_cast %102 : vector<8x2xf32> to vector<1x8x2xf32>
    tpu.vector_store %arg7[%c1_29, %c0_30, %c0_31], %105 {strides = array<i32>} : memref<8x8x2xf32, #tpu.memory_space<vmem>>, vector<1x8x2xf32>,
    %c1_32 = arith.constant 1 : index
    %106 = memref.load %arg0[%c1_32] : memref<7xf32, #tpu.memory_space<smem>>
    %c1_33 = arith.constant 1 : index
    %107 = memref.load %arg1[%c1_33] : memref<7xf32, #tpu.memory_space<smem>>
    %c1_34 = arith.constant 1 : index
    %108 = memref.load %arg2[%c1_34] : memref<7xf32, #tpu.memory_space<smem>>
    %109 = arith.mulf %89, %2 : vector<8x128xf32>
    %110 = arith.mulf %99, %5 : vector<8x128xf32>
    %111 = arith.addf %109, %110 : vector<8x128xf32>
    %112 = arith.addf %111, %8 : vector<8x128xf32>
    %cst_35 = arith.constant 0.000000e+00 : f32
    %113 = vector.broadcast %cst_35 : f32 to vector<8x128xf32>
    %114 = arith.maximumf %112, %113 : vector<8x128xf32>
    %cst_36 = arith.constant dense<0.000000e+00> : vector<8x256xf32>
    %115 = tpu.matmul %114, %9, %cst_36 {dimension_numbers = #tpu.dot_dimension_numbers<[1], [0], [0], [1], [0, 0, 1, 1], [], []>} : vector<8x128xf32>, vector<128x256xf32>, vector<8x256xf32> -> vector<8x256xf32>
    %116 = vector.extract_strided_slice %115 {offsets = [0, 0], sizes = [8, 128], strides = [1, 1]} : vector<8x256xf32> to vector<8x128xf32>
    %117 = vector.extract_strided_slice %115 {offsets = [0, 128], sizes = [8, 128], strides = [1, 1]} : vector<8x256xf32> to vector<8x128xf32>
    %118 = vector.broadcast %107 : f32 to vector<8x128xf32>
    %119 = arith.mulf %118, %116 : vector<8x128xf32>
    %120 = arith.addf %89, %119 : vector<8x128xf32>
    %121 = vector.broadcast %107 : f32 to vector<8x128xf32>
    %122 = arith.mulf %121, %117 : vector<8x128xf32>
    %123 = arith.addf %99, %122 : vector<8x128xf32>
    %124 = arith.mulf %120, %2 : vector<8x128xf32>
    %125 = arith.mulf %123, %5 : vector<8x128xf32>
    %126 = arith.addf %124, %125 : vector<8x128xf32>
    %127 = arith.addf %126, %8 : vector<8x128xf32>
    %cst_37 = arith.constant 0.000000e+00 : f32
    %128 = vector.broadcast %cst_37 : f32 to vector<8x128xf32>
    %129 = arith.maximumf %127, %128 : vector<8x128xf32>
    %cst_38 = arith.constant dense<0.000000e+00> : vector<8x256xf32>
    %130 = tpu.matmul %129, %9, %cst_38 {dimension_numbers = #tpu.dot_dimension_numbers<[1], [0], [0], [1], [0, 0, 1, 1], [], []>} : vector<8x128xf32>, vector<128x256xf32>, vector<8x256xf32> -> vector<8x256xf32>
    %131 = vector.extract_strided_slice %130 {offsets = [0, 0], sizes = [8, 128], strides = [1, 1]} : vector<8x256xf32> to vector<8x128xf32>
    %132 = vector.extract_strided_slice %130 {offsets = [0, 128], sizes = [8, 128], strides = [1, 1]} : vector<8x256xf32> to vector<8x128xf32>
    %133 = vector.broadcast %107 : f32 to vector<8x128xf32>
    %134 = arith.mulf %133, %131 : vector<8x128xf32>
    %135 = arith.addf %89, %134 : vector<8x128xf32>
    %136 = vector.broadcast %107 : f32 to vector<8x128xf32>
    %137 = arith.mulf %136, %132 : vector<8x128xf32>
    %138 = arith.addf %99, %137 : vector<8x128xf32>
    %139 = arith.mulf %135, %2 : vector<8x128xf32>
    %140 = arith.mulf %138, %5 : vector<8x128xf32>
    %141 = arith.addf %139, %140 : vector<8x128xf32>
    %142 = arith.addf %141, %8 : vector<8x128xf32>
    %cst_39 = arith.constant 0.000000e+00 : f32
    %143 = vector.broadcast %cst_39 : f32 to vector<8x128xf32>
    %144 = arith.maximumf %142, %143 : vector<8x128xf32>
    %cst_40 = arith.constant dense<0.000000e+00> : vector<8x256xf32>
    %145 = tpu.matmul %144, %9, %cst_40 {dimension_numbers = #tpu.dot_dimension_numbers<[1], [0], [0], [1], [0, 0, 1, 1], [], []>} : vector<8x128xf32>, vector<128x256xf32>, vector<8x256xf32> -> vector<8x256xf32>
    %146 = vector.extract_strided_slice %145 {offsets = [0, 0], sizes = [8, 128], strides = [1, 1]} : vector<8x256xf32> to vector<8x128xf32>
    %147 = vector.extract_strided_slice %145 {offsets = [0, 128], sizes = [8, 128], strides = [1, 1]} : vector<8x256xf32> to vector<8x128xf32>
    %148 = vector.broadcast %106 : f32 to vector<8x128xf32>
    %149 = arith.mulf %148, %146 : vector<8x128xf32>
    %150 = arith.addf %89, %149 : vector<8x128xf32>
    %151 = vector.broadcast %106 : f32 to vector<8x128xf32>
    %152 = arith.mulf %151, %147 : vector<8x128xf32>
    %153 = arith.addf %99, %152 : vector<8x128xf32>
    %154 = arith.mulf %150, %2 : vector<8x128xf32>
    %155 = arith.mulf %153, %5 : vector<8x128xf32>
    %156 = arith.addf %154, %155 : vector<8x128xf32>
    %157 = arith.addf %156, %8 : vector<8x128xf32>
    %cst_41 = arith.constant 0.000000e+00 : f32
    %158 = vector.broadcast %cst_41 : f32 to vector<8x128xf32>
    %159 = arith.maximumf %157, %158 : vector<8x128xf32>
    %cst_42 = arith.constant dense<0.000000e+00> : vector<8x256xf32>
    %160 = tpu.matmul %159, %9, %cst_42 {dimension_numbers = #tpu.dot_dimension_numbers<[1], [0], [0], [1], [0, 0, 1, 1], [], []>} : vector<8x128xf32>, vector<128x256xf32>, vector<8x256xf32> -> vector<8x256xf32>
    %161 = vector.extract_strided_slice %160 {offsets = [0, 0], sizes = [8, 128], strides = [1, 1]} : vector<8x256xf32> to vector<8x128xf32>
    %162 = vector.extract_strided_slice %160 {offsets = [0, 128], sizes = [8, 128], strides = [1, 1]} : vector<8x256xf32> to vector<8x128xf32>
    %cst_43 = arith.constant 2.000000e+00 : f32
    %163 = vector.broadcast %cst_43 : f32 to vector<8x128xf32>
    %164 = arith.mulf %163, %131 : vector<8x128xf32>
    %165 = arith.addf %116, %164 : vector<8x128xf32>
    %cst_44 = arith.constant 2.000000e+00 : f32
    %166 = vector.broadcast %cst_44 : f32 to vector<8x128xf32>
    %167 = arith.mulf %166, %146 : vector<8x128xf32>
    %168 = arith.addf %165, %167 : vector<8x128xf32>
    %169 = arith.addf %168, %161 : vector<8x128xf32>
    %170 = vector.broadcast %108 : f32 to vector<8x128xf32>
    %171 = arith.mulf %170, %169 : vector<8x128xf32>
    %172 = arith.addf %89, %171 : vector<8x128xf32>
    %cst_45 = arith.constant 2.000000e+00 : f32
    %173 = vector.broadcast %cst_45 : f32 to vector<8x128xf32>
    %174 = arith.mulf %173, %132 : vector<8x128xf32>
    %175 = arith.addf %117, %174 : vector<8x128xf32>
    %cst_46 = arith.constant 2.000000e+00 : f32
    %176 = vector.broadcast %cst_46 : f32 to vector<8x128xf32>
    %177 = arith.mulf %176, %147 : vector<8x128xf32>
    %178 = arith.addf %175, %177 : vector<8x128xf32>
    %179 = arith.addf %178, %162 : vector<8x128xf32>
    %180 = vector.broadcast %108 : f32 to vector<8x128xf32>
    %181 = arith.mulf %180, %179 : vector<8x128xf32>
    %182 = arith.addf %99, %181 : vector<8x128xf32>
    %183 = vector.extract_strided_slice %172 {offsets = [0, 0], sizes = [8, 2], strides = [1, 1]} : vector<8x128xf32> to vector<8x2xf32>
    %184 = vector.extract_strided_slice %182 {offsets = [0, 0], sizes = [8, 2], strides = [1, 1]} : vector<8x128xf32> to vector<8x2xf32>
    %185 = arith.select %12, %183, %184 : vector<8x2xi1>, vector<8x2xf32>
    %c2 = arith.constant 2 : index
    %c0_47 = arith.constant 0 : index
    %c0_48 = arith.constant 0 : index
    %186 = vector.load %arg7[%c2, %c0_47, %c0_48] : memref<8x8x2xf32, #tpu.memory_space<vmem>>, vector<1x8x2xf32>
    %187 = vector.shape_cast %186 : vector<1x8x2xf32> to vector<8x2xf32>
    %188 = vector.shape_cast %185 : vector<8x2xf32> to vector<1x8x2xf32>
    tpu.vector_store %arg7[%c2, %c0_47, %c0_48], %188 {strides = array<i32>} : memref<8x8x2xf32, #tpu.memory_space<vmem>>, vector<1x8x2xf32>,
    %c2_49 = arith.constant 2 : index
    %189 = memref.load %arg0[%c2_49] : memref<7xf32, #tpu.memory_space<smem>>
    %c2_50 = arith.constant 2 : index
    %190 = memref.load %arg1[%c2_50] : memref<7xf32, #tpu.memory_space<smem>>
    %c2_51 = arith.constant 2 : index
    %191 = memref.load %arg2[%c2_51] : memref<7xf32, #tpu.memory_space<smem>>
    %192 = arith.mulf %172, %2 : vector<8x128xf32>
    %193 = arith.mulf %182, %5 : vector<8x128xf32>
    %194 = arith.addf %192, %193 : vector<8x128xf32>
    %195 = arith.addf %194, %8 : vector<8x128xf32>
    %cst_52 = arith.constant 0.000000e+00 : f32
    %196 = vector.broadcast %cst_52 : f32 to vector<8x128xf32>
    %197 = arith.maximumf %195, %196 : vector<8x128xf32>
    %cst_53 = arith.constant dense<0.000000e+00> : vector<8x256xf32>
    %198 = tpu.matmul %197, %9, %cst_53 {dimension_numbers = #tpu.dot_dimension_numbers<[1], [0], [0], [1], [0, 0, 1, 1], [], []>} : vector<8x128xf32>, vector<128x256xf32>, vector<8x256xf32> -> vector<8x256xf32>
    %199 = vector.extract_strided_slice %198 {offsets = [0, 0], sizes = [8, 128], strides = [1, 1]} : vector<8x256xf32> to vector<8x128xf32>
    %200 = vector.extract_strided_slice %198 {offsets = [0, 128], sizes = [8, 128], strides = [1, 1]} : vector<8x256xf32> to vector<8x128xf32>
    %201 = vector.broadcast %190 : f32 to vector<8x128xf32>
    %202 = arith.mulf %201, %199 : vector<8x128xf32>
    %203 = arith.addf %172, %202 : vector<8x128xf32>
    %204 = vector.broadcast %190 : f32 to vector<8x128xf32>
    %205 = arith.mulf %204, %200 : vector<8x128xf32>
    %206 = arith.addf %182, %205 : vector<8x128xf32>
    %207 = arith.mulf %203, %2 : vector<8x128xf32>
    %208 = arith.mulf %206, %5 : vector<8x128xf32>
    %209 = arith.addf %207, %208 : vector<8x128xf32>
    %210 = arith.addf %209, %8 : vector<8x128xf32>
    %cst_54 = arith.constant 0.000000e+00 : f32
    %211 = vector.broadcast %cst_54 : f32 to vector<8x128xf32>
    %212 = arith.maximumf %210, %211 : vector<8x128xf32>
    %cst_55 = arith.constant dense<0.000000e+00> : vector<8x256xf32>
    %213 = tpu.matmul %212, %9, %cst_55 {dimension_numbers = #tpu.dot_dimension_numbers<[1], [0], [0], [1], [0, 0, 1, 1], [], []>} : vector<8x128xf32>, vector<128x256xf32>, vector<8x256xf32> -> vector<8x256xf32>
    %214 = vector.extract_strided_slice %213 {offsets = [0, 0], sizes = [8, 128], strides = [1, 1]} : vector<8x256xf32> to vector<8x128xf32>
    %215 = vector.extract_strided_slice %213 {offsets = [0, 128], sizes = [8, 128], strides = [1, 1]} : vector<8x256xf32> to vector<8x128xf32>
    %216 = vector.broadcast %190 : f32 to vector<8x128xf32>
    %217 = arith.mulf %216, %214 : vector<8x128xf32>
    %218 = arith.addf %172, %217 : vector<8x128xf32>
    %219 = vector.broadcast %190 : f32 to vector<8x128xf32>
    %220 = arith.mulf %219, %215 : vector<8x128xf32>
    %221 = arith.addf %182, %220 : vector<8x128xf32>
    %222 = arith.mulf %218, %2 : vector<8x128xf32>
    %223 = arith.mulf %221, %5 : vector<8x128xf32>
    %224 = arith.addf %222, %223 : vector<8x128xf32>
    %225 = arith.addf %224, %8 : vector<8x128xf32>
    %cst_56 = arith.constant 0.000000e+00 : f32
    %226 = vector.broadcast %cst_56 : f32 to vector<8x128xf32>
    %227 = arith.maximumf %225, %226 : vector<8x128xf32>
    %cst_57 = arith.constant dense<0.000000e+00> : vector<8x256xf32>
    %228 = tpu.matmul %227, %9, %cst_57 {dimension_numbers = #tpu.dot_dimension_numbers<[1], [0], [0], [1], [0, 0, 1, 1], [], []>} : vector<8x128xf32>, vector<128x256xf32>, vector<8x256xf32> -> vector<8x256xf32>
    %229 = vector.extract_strided_slice %228 {offsets = [0, 0], sizes = [8, 128], strides = [1, 1]} : vector<8x256xf32> to vector<8x128xf32>
    %230 = vector.extract_strided_slice %228 {offsets = [0, 128], sizes = [8, 128], strides = [1, 1]} : vector<8x256xf32> to vector<8x128xf32>
    %231 = vector.broadcast %189 : f32 to vector<8x128xf32>
    %232 = arith.mulf %231, %229 : vector<8x128xf32>
    %233 = arith.addf %172, %232 : vector<8x128xf32>
    %234 = vector.broadcast %189 : f32 to vector<8x128xf32>
    %235 = arith.mulf %234, %230 : vector<8x128xf32>
    %236 = arith.addf %182, %235 : vector<8x128xf32>
    %237 = arith.mulf %233, %2 : vector<8x128xf32>
    %238 = arith.mulf %236, %5 : vector<8x128xf32>
    %239 = arith.addf %237, %238 : vector<8x128xf32>
    %240 = arith.addf %239, %8 : vector<8x128xf32>
    %cst_58 = arith.constant 0.000000e+00 : f32
    %241 = vector.broadcast %cst_58 : f32 to vector<8x128xf32>
    %242 = arith.maximumf %240, %241 : vector<8x128xf32>
    %cst_59 = arith.constant dense<0.000000e+00> : vector<8x256xf32>
    %243 = tpu.matmul %242, %9, %cst_59 {dimension_numbers = #tpu.dot_dimension_numbers<[1], [0], [0], [1], [0, 0, 1, 1], [], []>} : vector<8x128xf32>, vector<128x256xf32>, vector<8x256xf32> -> vector<8x256xf32>
    %244 = vector.extract_strided_slice %243 {offsets = [0, 0], sizes = [8, 128], strides = [1, 1]} : vector<8x256xf32> to vector<8x128xf32>
    %245 = vector.extract_strided_slice %243 {offsets = [0, 128], sizes = [8, 128], strides = [1, 1]} : vector<8x256xf32> to vector<8x128xf32>
    %cst_60 = arith.constant 2.000000e+00 : f32
    %246 = vector.broadcast %cst_60 : f32 to vector<8x128xf32>
    %247 = arith.mulf %246, %214 : vector<8x128xf32>
    %248 = arith.addf %199, %247 : vector<8x128xf32>
    %cst_61 = arith.constant 2.000000e+00 : f32
    %249 = vector.broadcast %cst_61 : f32 to vector<8x128xf32>
    %250 = arith.mulf %249, %229 : vector<8x128xf32>
    %251 = arith.addf %248, %250 : vector<8x128xf32>
    %252 = arith.addf %251, %244 : vector<8x128xf32>
    %253 = vector.broadcast %191 : f32 to vector<8x128xf32>
    %254 = arith.mulf %253, %252 : vector<8x128xf32>
    %255 = arith.addf %172, %254 : vector<8x128xf32>
    %cst_62 = arith.constant 2.000000e+00 : f32
    %256 = vector.broadcast %cst_62 : f32 to vector<8x128xf32>
    %257 = arith.mulf %256, %215 : vector<8x128xf32>
    %258 = arith.addf %200, %257 : vector<8x128xf32>
    %cst_63 = arith.constant 2.000000e+00 : f32
    %259 = vector.broadcast %cst_63 : f32 to vector<8x128xf32>
    %260 = arith.mulf %259, %230 : vector<8x128xf32>
    %261 = arith.addf %258, %260 : vector<8x128xf32>
    %262 = arith.addf %261, %245 : vector<8x128xf32>
    %263 = vector.broadcast %191 : f32 to vector<8x128xf32>
    %264 = arith.mulf %263, %262 : vector<8x128xf32>
    %265 = arith.addf %182, %264 : vector<8x128xf32>
    %266 = vector.extract_strided_slice %255 {offsets = [0, 0], sizes = [8, 2], strides = [1, 1]} : vector<8x128xf32> to vector<8x2xf32>
    %267 = vector.extract_strided_slice %265 {offsets = [0, 0], sizes = [8, 2], strides = [1, 1]} : vector<8x128xf32> to vector<8x2xf32>
    %268 = arith.select %12, %266, %267 : vector<8x2xi1>, vector<8x2xf32>
    %c3 = arith.constant 3 : index
    %c0_64 = arith.constant 0 : index
    %c0_65 = arith.constant 0 : index
    %269 = vector.load %arg7[%c3, %c0_64, %c0_65] : memref<8x8x2xf32, #tpu.memory_space<vmem>>, vector<1x8x2xf32>
    %270 = vector.shape_cast %269 : vector<1x8x2xf32> to vector<8x2xf32>
    %271 = vector.shape_cast %268 : vector<8x2xf32> to vector<1x8x2xf32>
    tpu.vector_store %arg7[%c3, %c0_64, %c0_65], %271 {strides = array<i32>} : memref<8x8x2xf32, #tpu.memory_space<vmem>>, vector<1x8x2xf32>,
    %c3_66 = arith.constant 3 : index
    %272 = memref.load %arg0[%c3_66] : memref<7xf32, #tpu.memory_space<smem>>
    %c3_67 = arith.constant 3 : index
    %273 = memref.load %arg1[%c3_67] : memref<7xf32, #tpu.memory_space<smem>>
    %c3_68 = arith.constant 3 : index
    %274 = memref.load %arg2[%c3_68] : memref<7xf32, #tpu.memory_space<smem>>
    %275 = arith.mulf %255, %2 : vector<8x128xf32>
    %276 = arith.mulf %265, %5 : vector<8x128xf32>
    %277 = arith.addf %275, %276 : vector<8x128xf32>
    %278 = arith.addf %277, %8 : vector<8x128xf32>
    %cst_69 = arith.constant 0.000000e+00 : f32
    %279 = vector.broadcast %cst_69 : f32 to vector<8x128xf32>
    %280 = arith.maximumf %278, %279 : vector<8x128xf32>
    %cst_70 = arith.constant dense<0.000000e+00> : vector<8x256xf32>
    %281 = tpu.matmul %280, %9, %cst_70 {dimension_numbers = #tpu.dot_dimension_numbers<[1], [0], [0], [1], [0, 0, 1, 1], [], []>} : vector<8x128xf32>, vector<128x256xf32>, vector<8x256xf32> -> vector<8x256xf32>
    %282 = vector.extract_strided_slice %281 {offsets = [0, 0], sizes = [8, 128], strides = [1, 1]} : vector<8x256xf32> to vector<8x128xf32>
    %283 = vector.extract_strided_slice %281 {offsets = [0, 128], sizes = [8, 128], strides = [1, 1]} : vector<8x256xf32> to vector<8x128xf32>
    %284 = vector.broadcast %273 : f32 to vector<8x128xf32>
    %285 = arith.mulf %284, %282 : vector<8x128xf32>
    %286 = arith.addf %255, %285 : vector<8x128xf32>
    %287 = vector.broadcast %273 : f32 to vector<8x128xf32>
    %288 = arith.mulf %287, %283 : vector<8x128xf32>
    %289 = arith.addf %265, %288 : vector<8x128xf32>
    %290 = arith.mulf %286, %2 : vector<8x128xf32>
    %291 = arith.mulf %289, %5 : vector<8x128xf32>
    %292 = arith.addf %290, %291 : vector<8x128xf32>
    %293 = arith.addf %292, %8 : vector<8x128xf32>
    %cst_71 = arith.constant 0.000000e+00 : f32
    %294 = vector.broadcast %cst_71 : f32 to vector<8x128xf32>
    %295 = arith.maximumf %293, %294 : vector<8x128xf32>
    %cst_72 = arith.constant dense<0.000000e+00> : vector<8x256xf32>
    %296 = tpu.matmul %295, %9, %cst_72 {dimension_numbers = #tpu.dot_dimension_numbers<[1], [0], [0], [1], [0, 0, 1, 1], [], []>} : vector<8x128xf32>, vector<128x256xf32>, vector<8x256xf32> -> vector<8x256xf32>
    %297 = vector.extract_strided_slice %296 {offsets = [0, 0], sizes = [8, 128], strides = [1, 1]} : vector<8x256xf32> to vector<8x128xf32>
    %298 = vector.extract_strided_slice %296 {offsets = [0, 128], sizes = [8, 128], strides = [1, 1]} : vector<8x256xf32> to vector<8x128xf32>
    %299 = vector.broadcast %273 : f32 to vector<8x128xf32>
    %300 = arith.mulf %299, %297 : vector<8x128xf32>
    %301 = arith.addf %255, %300 : vector<8x128xf32>
    %302 = vector.broadcast %273 : f32 to vector<8x128xf32>
    %303 = arith.mulf %302, %298 : vector<8x128xf32>
    %304 = arith.addf %265, %303 : vector<8x128xf32>
    %305 = arith.mulf %301, %2 : vector<8x128xf32>
    %306 = arith.mulf %304, %5 : vector<8x128xf32>
    %307 = arith.addf %305, %306 : vector<8x128xf32>
    %308 = arith.addf %307, %8 : vector<8x128xf32>
    %cst_73 = arith.constant 0.000000e+00 : f32
    %309 = vector.broadcast %cst_73 : f32 to vector<8x128xf32>
    %310 = arith.maximumf %308, %309 : vector<8x128xf32>
    %cst_74 = arith.constant dense<0.000000e+00> : vector<8x256xf32>
    %311 = tpu.matmul %310, %9, %cst_74 {dimension_numbers = #tpu.dot_dimension_numbers<[1], [0], [0], [1], [0, 0, 1, 1], [], []>} : vector<8x128xf32>, vector<128x256xf32>, vector<8x256xf32> -> vector<8x256xf32>
    %312 = vector.extract_strided_slice %311 {offsets = [0, 0], sizes = [8, 128], strides = [1, 1]} : vector<8x256xf32> to vector<8x128xf32>
    %313 = vector.extract_strided_slice %311 {offsets = [0, 128], sizes = [8, 128], strides = [1, 1]} : vector<8x256xf32> to vector<8x128xf32>
    %314 = vector.broadcast %272 : f32 to vector<8x128xf32>
    %315 = arith.mulf %314, %312 : vector<8x128xf32>
    %316 = arith.addf %255, %315 : vector<8x128xf32>
    %317 = vector.broadcast %272 : f32 to vector<8x128xf32>
    %318 = arith.mulf %317, %313 : vector<8x128xf32>
    %319 = arith.addf %265, %318 : vector<8x128xf32>
    %320 = arith.mulf %316, %2 : vector<8x128xf32>
    %321 = arith.mulf %319, %5 : vector<8x128xf32>
    %322 = arith.addf %320, %321 : vector<8x128xf32>
    %323 = arith.addf %322, %8 : vector<8x128xf32>
    %cst_75 = arith.constant 0.000000e+00 : f32
    %324 = vector.broadcast %cst_75 : f32 to vector<8x128xf32>
    %325 = arith.maximumf %323, %324 : vector<8x128xf32>
    %cst_76 = arith.constant dense<0.000000e+00> : vector<8x256xf32>
    %326 = tpu.matmul %325, %9, %cst_76 {dimension_numbers = #tpu.dot_dimension_numbers<[1], [0], [0], [1], [0, 0, 1, 1], [], []>} : vector<8x128xf32>, vector<128x256xf32>, vector<8x256xf32> -> vector<8x256xf32>
    %327 = vector.extract_strided_slice %326 {offsets = [0, 0], sizes = [8, 128], strides = [1, 1]} : vector<8x256xf32> to vector<8x128xf32>
    %328 = vector.extract_strided_slice %326 {offsets = [0, 128], sizes = [8, 128], strides = [1, 1]} : vector<8x256xf32> to vector<8x128xf32>
    %cst_77 = arith.constant 2.000000e+00 : f32
    %329 = vector.broadcast %cst_77 : f32 to vector<8x128xf32>
    %330 = arith.mulf %329, %297 : vector<8x128xf32>
    %331 = arith.addf %282, %330 : vector<8x128xf32>
    %cst_78 = arith.constant 2.000000e+00 : f32
    %332 = vector.broadcast %cst_78 : f32 to vector<8x128xf32>
    %333 = arith.mulf %332, %312 : vector<8x128xf32>
    %334 = arith.addf %331, %333 : vector<8x128xf32>
    %335 = arith.addf %334, %327 : vector<8x128xf32>
    %336 = vector.broadcast %274 : f32 to vector<8x128xf32>
    %337 = arith.mulf %336, %335 : vector<8x128xf32>
    %338 = arith.addf %255, %337 : vector<8x128xf32>
    %cst_79 = arith.constant 2.000000e+00 : f32
    %339 = vector.broadcast %cst_79 : f32 to vector<8x128xf32>
    %340 = arith.mulf %339, %298 : vector<8x128xf32>
    %341 = arith.addf %283, %340 : vector<8x128xf32>
    %cst_80 = arith.constant 2.000000e+00 : f32
    %342 = vector.broadcast %cst_80 : f32 to vector<8x128xf32>
    %343 = arith.mulf %342, %313 : vector<8x128xf32>
    %344 = arith.addf %341, %343 : vector<8x128xf32>
    %345 = arith.addf %344, %328 : vector<8x128xf32>
    %346 = vector.broadcast %274 : f32 to vector<8x128xf32>
    %347 = arith.mulf %346, %345 : vector<8x128xf32>
    %348 = arith.addf %265, %347 : vector<8x128xf32>
    %349 = vector.extract_strided_slice %338 {offsets = [0, 0], sizes = [8, 2], strides = [1, 1]} : vector<8x128xf32> to vector<8x2xf32>
    %350 = vector.extract_strided_slice %348 {offsets = [0, 0], sizes = [8, 2], strides = [1, 1]} : vector<8x128xf32> to vector<8x2xf32>
    %351 = arith.select %12, %349, %350 : vector<8x2xi1>, vector<8x2xf32>
    %c4 = arith.constant 4 : index
    %c0_81 = arith.constant 0 : index
    %c0_82 = arith.constant 0 : index
    %352 = vector.load %arg7[%c4, %c0_81, %c0_82] : memref<8x8x2xf32, #tpu.memory_space<vmem>>, vector<1x8x2xf32>
    %353 = vector.shape_cast %352 : vector<1x8x2xf32> to vector<8x2xf32>
    %354 = vector.shape_cast %351 : vector<8x2xf32> to vector<1x8x2xf32>
    tpu.vector_store %arg7[%c4, %c0_81, %c0_82], %354 {strides = array<i32>} : memref<8x8x2xf32, #tpu.memory_space<vmem>>, vector<1x8x2xf32>,
    %c4_83 = arith.constant 4 : index
    %355 = memref.load %arg0[%c4_83] : memref<7xf32, #tpu.memory_space<smem>>
    %c4_84 = arith.constant 4 : index
    %356 = memref.load %arg1[%c4_84] : memref<7xf32, #tpu.memory_space<smem>>
    %c4_85 = arith.constant 4 : index
    %357 = memref.load %arg2[%c4_85] : memref<7xf32, #tpu.memory_space<smem>>
    %358 = arith.mulf %338, %2 : vector<8x128xf32>
    %359 = arith.mulf %348, %5 : vector<8x128xf32>
    %360 = arith.addf %358, %359 : vector<8x128xf32>
    %361 = arith.addf %360, %8 : vector<8x128xf32>
    %cst_86 = arith.constant 0.000000e+00 : f32
    %362 = vector.broadcast %cst_86 : f32 to vector<8x128xf32>
    %363 = arith.maximumf %361, %362 : vector<8x128xf32>
    %cst_87 = arith.constant dense<0.000000e+00> : vector<8x256xf32>
    %364 = tpu.matmul %363, %9, %cst_87 {dimension_numbers = #tpu.dot_dimension_numbers<[1], [0], [0], [1], [0, 0, 1, 1], [], []>} : vector<8x128xf32>, vector<128x256xf32>, vector<8x256xf32> -> vector<8x256xf32>
    %365 = vector.extract_strided_slice %364 {offsets = [0, 0], sizes = [8, 128], strides = [1, 1]} : vector<8x256xf32> to vector<8x128xf32>
    %366 = vector.extract_strided_slice %364 {offsets = [0, 128], sizes = [8, 128], strides = [1, 1]} : vector<8x256xf32> to vector<8x128xf32>
    %367 = vector.broadcast %356 : f32 to vector<8x128xf32>
    %368 = arith.mulf %367, %365 : vector<8x128xf32>
    %369 = arith.addf %338, %368 : vector<8x128xf32>
    %370 = vector.broadcast %356 : f32 to vector<8x128xf32>
    %371 = arith.mulf %370, %366 : vector<8x128xf32>
    %372 = arith.addf %348, %371 : vector<8x128xf32>
    %373 = arith.mulf %369, %2 : vector<8x128xf32>
    %374 = arith.mulf %372, %5 : vector<8x128xf32>
    %375 = arith.addf %373, %374 : vector<8x128xf32>
    %376 = arith.addf %375, %8 : vector<8x128xf32>
    %cst_88 = arith.constant 0.000000e+00 : f32
    %377 = vector.broadcast %cst_88 : f32 to vector<8x128xf32>
    %378 = arith.maximumf %376, %377 : vector<8x128xf32>
    %cst_89 = arith.constant dense<0.000000e+00> : vector<8x256xf32>
    %379 = tpu.matmul %378, %9, %cst_89 {dimension_numbers = #tpu.dot_dimension_numbers<[1], [0], [0], [1], [0, 0, 1, 1], [], []>} : vector<8x128xf32>, vector<128x256xf32>, vector<8x256xf32> -> vector<8x256xf32>
    %380 = vector.extract_strided_slice %379 {offsets = [0, 0], sizes = [8, 128], strides = [1, 1]} : vector<8x256xf32> to vector<8x128xf32>
    %381 = vector.extract_strided_slice %379 {offsets = [0, 128], sizes = [8, 128], strides = [1, 1]} : vector<8x256xf32> to vector<8x128xf32>
    %382 = vector.broadcast %356 : f32 to vector<8x128xf32>
    %383 = arith.mulf %382, %380 : vector<8x128xf32>
    %384 = arith.addf %338, %383 : vector<8x128xf32>
    %385 = vector.broadcast %356 : f32 to vector<8x128xf32>
    %386 = arith.mulf %385, %381 : vector<8x128xf32>
    %387 = arith.addf %348, %386 : vector<8x128xf32>
    %388 = arith.mulf %384, %2 : vector<8x128xf32>
    %389 = arith.mulf %387, %5 : vector<8x128xf32>
    %390 = arith.addf %388, %389 : vector<8x128xf32>
    %391 = arith.addf %390, %8 : vector<8x128xf32>
    %cst_90 = arith.constant 0.000000e+00 : f32
    %392 = vector.broadcast %cst_90 : f32 to vector<8x128xf32>
    %393 = arith.maximumf %391, %392 : vector<8x128xf32>
    %cst_91 = arith.constant dense<0.000000e+00> : vector<8x256xf32>
    %394 = tpu.matmul %393, %9, %cst_91 {dimension_numbers = #tpu.dot_dimension_numbers<[1], [0], [0], [1], [0, 0, 1, 1], [], []>} : vector<8x128xf32>, vector<128x256xf32>, vector<8x256xf32> -> vector<8x256xf32>
    %395 = vector.extract_strided_slice %394 {offsets = [0, 0], sizes = [8, 128], strides = [1, 1]} : vector<8x256xf32> to vector<8x128xf32>
    %396 = vector.extract_strided_slice %394 {offsets = [0, 128], sizes = [8, 128], strides = [1, 1]} : vector<8x256xf32> to vector<8x128xf32>
    %397 = vector.broadcast %355 : f32 to vector<8x128xf32>
    %398 = arith.mulf %397, %395 : vector<8x128xf32>
    %399 = arith.addf %338, %398 : vector<8x128xf32>
    %400 = vector.broadcast %355 : f32 to vector<8x128xf32>
    %401 = arith.mulf %400, %396 : vector<8x128xf32>
    %402 = arith.addf %348, %401 : vector<8x128xf32>
    %403 = arith.mulf %399, %2 : vector<8x128xf32>
    %404 = arith.mulf %402, %5 : vector<8x128xf32>
    %405 = arith.addf %403, %404 : vector<8x128xf32>
    %406 = arith.addf %405, %8 : vector<8x128xf32>
    %cst_92 = arith.constant 0.000000e+00 : f32
    %407 = vector.broadcast %cst_92 : f32 to vector<8x128xf32>
    %408 = arith.maximumf %406, %407 : vector<8x128xf32>
    %cst_93 = arith.constant dense<0.000000e+00> : vector<8x256xf32>
    %409 = tpu.matmul %408, %9, %cst_93 {dimension_numbers = #tpu.dot_dimension_numbers<[1], [0], [0], [1], [0, 0, 1, 1], [], []>} : vector<8x128xf32>, vector<128x256xf32>, vector<8x256xf32> -> vector<8x256xf32>
    %410 = vector.extract_strided_slice %409 {offsets = [0, 0], sizes = [8, 128], strides = [1, 1]} : vector<8x256xf32> to vector<8x128xf32>
    %411 = vector.extract_strided_slice %409 {offsets = [0, 128], sizes = [8, 128], strides = [1, 1]} : vector<8x256xf32> to vector<8x128xf32>
    %cst_94 = arith.constant 2.000000e+00 : f32
    %412 = vector.broadcast %cst_94 : f32 to vector<8x128xf32>
    %413 = arith.mulf %412, %380 : vector<8x128xf32>
    %414 = arith.addf %365, %413 : vector<8x128xf32>
    %cst_95 = arith.constant 2.000000e+00 : f32
    %415 = vector.broadcast %cst_95 : f32 to vector<8x128xf32>
    %416 = arith.mulf %415, %395 : vector<8x128xf32>
    %417 = arith.addf %414, %416 : vector<8x128xf32>
    %418 = arith.addf %417, %410 : vector<8x128xf32>
    %419 = vector.broadcast %357 : f32 to vector<8x128xf32>
    %420 = arith.mulf %419, %418 : vector<8x128xf32>
    %421 = arith.addf %338, %420 : vector<8x128xf32>
    %cst_96 = arith.constant 2.000000e+00 : f32
    %422 = vector.broadcast %cst_96 : f32 to vector<8x128xf32>
    %423 = arith.mulf %422, %381 : vector<8x128xf32>
    %424 = arith.addf %366, %423 : vector<8x128xf32>
    %cst_97 = arith.constant 2.000000e+00 : f32
    %425 = vector.broadcast %cst_97 : f32 to vector<8x128xf32>
    %426 = arith.mulf %425, %396 : vector<8x128xf32>
    %427 = arith.addf %424, %426 : vector<8x128xf32>
    %428 = arith.addf %427, %411 : vector<8x128xf32>
    %429 = vector.broadcast %357 : f32 to vector<8x128xf32>
    %430 = arith.mulf %429, %428 : vector<8x128xf32>
    %431 = arith.addf %348, %430 : vector<8x128xf32>
    %432 = vector.extract_strided_slice %421 {offsets = [0, 0], sizes = [8, 2], strides = [1, 1]} : vector<8x128xf32> to vector<8x2xf32>
    %433 = vector.extract_strided_slice %431 {offsets = [0, 0], sizes = [8, 2], strides = [1, 1]} : vector<8x128xf32> to vector<8x2xf32>
    %434 = arith.select %12, %432, %433 : vector<8x2xi1>, vector<8x2xf32>
    %c5 = arith.constant 5 : index
    %c0_98 = arith.constant 0 : index
    %c0_99 = arith.constant 0 : index
    %435 = vector.load %arg7[%c5, %c0_98, %c0_99] : memref<8x8x2xf32, #tpu.memory_space<vmem>>, vector<1x8x2xf32>
    %436 = vector.shape_cast %435 : vector<1x8x2xf32> to vector<8x2xf32>
    %437 = vector.shape_cast %434 : vector<8x2xf32> to vector<1x8x2xf32>
    tpu.vector_store %arg7[%c5, %c0_98, %c0_99], %437 {strides = array<i32>} : memref<8x8x2xf32, #tpu.memory_space<vmem>>, vector<1x8x2xf32>,
    %c5_100 = arith.constant 5 : index
    %438 = memref.load %arg0[%c5_100] : memref<7xf32, #tpu.memory_space<smem>>
    %c5_101 = arith.constant 5 : index
    %439 = memref.load %arg1[%c5_101] : memref<7xf32, #tpu.memory_space<smem>>
    %c5_102 = arith.constant 5 : index
    %440 = memref.load %arg2[%c5_102] : memref<7xf32, #tpu.memory_space<smem>>
    %441 = arith.mulf %421, %2 : vector<8x128xf32>
    %442 = arith.mulf %431, %5 : vector<8x128xf32>
    %443 = arith.addf %441, %442 : vector<8x128xf32>
    %444 = arith.addf %443, %8 : vector<8x128xf32>
    %cst_103 = arith.constant 0.000000e+00 : f32
    %445 = vector.broadcast %cst_103 : f32 to vector<8x128xf32>
    %446 = arith.maximumf %444, %445 : vector<8x128xf32>
    %cst_104 = arith.constant dense<0.000000e+00> : vector<8x256xf32>
    %447 = tpu.matmul %446, %9, %cst_104 {dimension_numbers = #tpu.dot_dimension_numbers<[1], [0], [0], [1], [0, 0, 1, 1], [], []>} : vector<8x128xf32>, vector<128x256xf32>, vector<8x256xf32> -> vector<8x256xf32>
    %448 = vector.extract_strided_slice %447 {offsets = [0, 0], sizes = [8, 128], strides = [1, 1]} : vector<8x256xf32> to vector<8x128xf32>
    %449 = vector.extract_strided_slice %447 {offsets = [0, 128], sizes = [8, 128], strides = [1, 1]} : vector<8x256xf32> to vector<8x128xf32>
    %450 = vector.broadcast %439 : f32 to vector<8x128xf32>
    %451 = arith.mulf %450, %448 : vector<8x128xf32>
    %452 = arith.addf %421, %451 : vector<8x128xf32>
    %453 = vector.broadcast %439 : f32 to vector<8x128xf32>
    %454 = arith.mulf %453, %449 : vector<8x128xf32>
    %455 = arith.addf %431, %454 : vector<8x128xf32>
    %456 = arith.mulf %452, %2 : vector<8x128xf32>
    %457 = arith.mulf %455, %5 : vector<8x128xf32>
    %458 = arith.addf %456, %457 : vector<8x128xf32>
    %459 = arith.addf %458, %8 : vector<8x128xf32>
    %cst_105 = arith.constant 0.000000e+00 : f32
    %460 = vector.broadcast %cst_105 : f32 to vector<8x128xf32>
    %461 = arith.maximumf %459, %460 : vector<8x128xf32>
    %cst_106 = arith.constant dense<0.000000e+00> : vector<8x256xf32>
    %462 = tpu.matmul %461, %9, %cst_106 {dimension_numbers = #tpu.dot_dimension_numbers<[1], [0], [0], [1], [0, 0, 1, 1], [], []>} : vector<8x128xf32>, vector<128x256xf32>, vector<8x256xf32> -> vector<8x256xf32>
    %463 = vector.extract_strided_slice %462 {offsets = [0, 0], sizes = [8, 128], strides = [1, 1]} : vector<8x256xf32> to vector<8x128xf32>
    %464 = vector.extract_strided_slice %462 {offsets = [0, 128], sizes = [8, 128], strides = [1, 1]} : vector<8x256xf32> to vector<8x128xf32>
    %465 = vector.broadcast %439 : f32 to vector<8x128xf32>
    %466 = arith.mulf %465, %463 : vector<8x128xf32>
    %467 = arith.addf %421, %466 : vector<8x128xf32>
    %468 = vector.broadcast %439 : f32 to vector<8x128xf32>
    %469 = arith.mulf %468, %464 : vector<8x128xf32>
    %470 = arith.addf %431, %469 : vector<8x128xf32>
    %471 = arith.mulf %467, %2 : vector<8x128xf32>
    %472 = arith.mulf %470, %5 : vector<8x128xf32>
    %473 = arith.addf %471, %472 : vector<8x128xf32>
    %474 = arith.addf %473, %8 : vector<8x128xf32>
    %cst_107 = arith.constant 0.000000e+00 : f32
    %475 = vector.broadcast %cst_107 : f32 to vector<8x128xf32>
    %476 = arith.maximumf %474, %475 : vector<8x128xf32>
    %cst_108 = arith.constant dense<0.000000e+00> : vector<8x256xf32>
    %477 = tpu.matmul %476, %9, %cst_108 {dimension_numbers = #tpu.dot_dimension_numbers<[1], [0], [0], [1], [0, 0, 1, 1], [], []>} : vector<8x128xf32>, vector<128x256xf32>, vector<8x256xf32> -> vector<8x256xf32>
    %478 = vector.extract_strided_slice %477 {offsets = [0, 0], sizes = [8, 128], strides = [1, 1]} : vector<8x256xf32> to vector<8x128xf32>
    %479 = vector.extract_strided_slice %477 {offsets = [0, 128], sizes = [8, 128], strides = [1, 1]} : vector<8x256xf32> to vector<8x128xf32>
    %480 = vector.broadcast %438 : f32 to vector<8x128xf32>
    %481 = arith.mulf %480, %478 : vector<8x128xf32>
    %482 = arith.addf %421, %481 : vector<8x128xf32>
    %483 = vector.broadcast %438 : f32 to vector<8x128xf32>
    %484 = arith.mulf %483, %479 : vector<8x128xf32>
    %485 = arith.addf %431, %484 : vector<8x128xf32>
    %486 = arith.mulf %482, %2 : vector<8x128xf32>
    %487 = arith.mulf %485, %5 : vector<8x128xf32>
    %488 = arith.addf %486, %487 : vector<8x128xf32>
    %489 = arith.addf %488, %8 : vector<8x128xf32>
    %cst_109 = arith.constant 0.000000e+00 : f32
    %490 = vector.broadcast %cst_109 : f32 to vector<8x128xf32>
    %491 = arith.maximumf %489, %490 : vector<8x128xf32>
    %cst_110 = arith.constant dense<0.000000e+00> : vector<8x256xf32>
    %492 = tpu.matmul %491, %9, %cst_110 {dimension_numbers = #tpu.dot_dimension_numbers<[1], [0], [0], [1], [0, 0, 1, 1], [], []>} : vector<8x128xf32>, vector<128x256xf32>, vector<8x256xf32> -> vector<8x256xf32>
    %493 = vector.extract_strided_slice %492 {offsets = [0, 0], sizes = [8, 128], strides = [1, 1]} : vector<8x256xf32> to vector<8x128xf32>
    %494 = vector.extract_strided_slice %492 {offsets = [0, 128], sizes = [8, 128], strides = [1, 1]} : vector<8x256xf32> to vector<8x128xf32>
    %cst_111 = arith.constant 2.000000e+00 : f32
    %495 = vector.broadcast %cst_111 : f32 to vector<8x128xf32>
    %496 = arith.mulf %495, %463 : vector<8x128xf32>
    %497 = arith.addf %448, %496 : vector<8x128xf32>
    %cst_112 = arith.constant 2.000000e+00 : f32
    %498 = vector.broadcast %cst_112 : f32 to vector<8x128xf32>
    %499 = arith.mulf %498, %478 : vector<8x128xf32>
    %500 = arith.addf %497, %499 : vector<8x128xf32>
    %501 = arith.addf %500, %493 : vector<8x128xf32>
    %502 = vector.broadcast %440 : f32 to vector<8x128xf32>
    %503 = arith.mulf %502, %501 : vector<8x128xf32>
    %504 = arith.addf %421, %503 : vector<8x128xf32>
    %cst_113 = arith.constant 2.000000e+00 : f32
    %505 = vector.broadcast %cst_113 : f32 to vector<8x128xf32>
    %506 = arith.mulf %505, %464 : vector<8x128xf32>
    %507 = arith.addf %449, %506 : vector<8x128xf32>
    %cst_114 = arith.constant 2.000000e+00 : f32
    %508 = vector.broadcast %cst_114 : f32 to vector<8x128xf32>
    %509 = arith.mulf %508, %479 : vector<8x128xf32>
    %510 = arith.addf %507, %509 : vector<8x128xf32>
    %511 = arith.addf %510, %494 : vector<8x128xf32>
    %512 = vector.broadcast %440 : f32 to vector<8x128xf32>
    %513 = arith.mulf %512, %511 : vector<8x128xf32>
    %514 = arith.addf %431, %513 : vector<8x128xf32>
    %515 = vector.extract_strided_slice %504 {offsets = [0, 0], sizes = [8, 2], strides = [1, 1]} : vector<8x128xf32> to vector<8x2xf32>
    %516 = vector.extract_strided_slice %514 {offsets = [0, 0], sizes = [8, 2], strides = [1, 1]} : vector<8x128xf32> to vector<8x2xf32>
    %517 = arith.select %12, %515, %516 : vector<8x2xi1>, vector<8x2xf32>
    %c6 = arith.constant 6 : index
    %c0_115 = arith.constant 0 : index
    %c0_116 = arith.constant 0 : index
    %518 = vector.load %arg7[%c6, %c0_115, %c0_116] : memref<8x8x2xf32, #tpu.memory_space<vmem>>, vector<1x8x2xf32>
    %519 = vector.shape_cast %518 : vector<1x8x2xf32> to vector<8x2xf32>
    %520 = vector.shape_cast %517 : vector<8x2xf32> to vector<1x8x2xf32>
    tpu.vector_store %arg7[%c6, %c0_115, %c0_116], %520 {strides = array<i32>} : memref<8x8x2xf32, #tpu.memory_space<vmem>>, vector<1x8x2xf32>,
    %c6_117 = arith.constant 6 : index
    %521 = memref.load %arg0[%c6_117] : memref<7xf32, #tpu.memory_space<smem>>
    %c6_118 = arith.constant 6 : index
    %522 = memref.load %arg1[%c6_118] : memref<7xf32, #tpu.memory_space<smem>>
    %c6_119 = arith.constant 6 : index
    %523 = memref.load %arg2[%c6_119] : memref<7xf32, #tpu.memory_space<smem>>
    %524 = arith.mulf %504, %2 : vector<8x128xf32>
    %525 = arith.mulf %514, %5 : vector<8x128xf32>
    %526 = arith.addf %524, %525 : vector<8x128xf32>
    %527 = arith.addf %526, %8 : vector<8x128xf32>
    %cst_120 = arith.constant 0.000000e+00 : f32
    %528 = vector.broadcast %cst_120 : f32 to vector<8x128xf32>
    %529 = arith.maximumf %527, %528 : vector<8x128xf32>
    %cst_121 = arith.constant dense<0.000000e+00> : vector<8x256xf32>
    %530 = tpu.matmul %529, %9, %cst_121 {dimension_numbers = #tpu.dot_dimension_numbers<[1], [0], [0], [1], [0, 0, 1, 1], [], []>} : vector<8x128xf32>, vector<128x256xf32>, vector<8x256xf32> -> vector<8x256xf32>
    %531 = vector.extract_strided_slice %530 {offsets = [0, 0], sizes = [8, 128], strides = [1, 1]} : vector<8x256xf32> to vector<8x128xf32>
    %532 = vector.extract_strided_slice %530 {offsets = [0, 128], sizes = [8, 128], strides = [1, 1]} : vector<8x256xf32> to vector<8x128xf32>
    %533 = vector.broadcast %522 : f32 to vector<8x128xf32>
    %534 = arith.mulf %533, %531 : vector<8x128xf32>
    %535 = arith.addf %504, %534 : vector<8x128xf32>
    %536 = vector.broadcast %522 : f32 to vector<8x128xf32>
    %537 = arith.mulf %536, %532 : vector<8x128xf32>
    %538 = arith.addf %514, %537 : vector<8x128xf32>
    %539 = arith.mulf %535, %2 : vector<8x128xf32>
    %540 = arith.mulf %538, %5 : vector<8x128xf32>
    %541 = arith.addf %539, %540 : vector<8x128xf32>
    %542 = arith.addf %541, %8 : vector<8x128xf32>
    %cst_122 = arith.constant 0.000000e+00 : f32
    %543 = vector.broadcast %cst_122 : f32 to vector<8x128xf32>
    %544 = arith.maximumf %542, %543 : vector<8x128xf32>
    %cst_123 = arith.constant dense<0.000000e+00> : vector<8x256xf32>
    %545 = tpu.matmul %544, %9, %cst_123 {dimension_numbers = #tpu.dot_dimension_numbers<[1], [0], [0], [1], [0, 0, 1, 1], [], []>} : vector<8x128xf32>, vector<128x256xf32>, vector<8x256xf32> -> vector<8x256xf32>
    %546 = vector.extract_strided_slice %545 {offsets = [0, 0], sizes = [8, 128], strides = [1, 1]} : vector<8x256xf32> to vector<8x128xf32>
    %547 = vector.extract_strided_slice %545 {offsets = [0, 128], sizes = [8, 128], strides = [1, 1]} : vector<8x256xf32> to vector<8x128xf32>
    %548 = vector.broadcast %522 : f32 to vector<8x128xf32>
    %549 = arith.mulf %548, %546 : vector<8x128xf32>
    %550 = arith.addf %504, %549 : vector<8x128xf32>
    %551 = vector.broadcast %522 : f32 to vector<8x128xf32>
    %552 = arith.mulf %551, %547 : vector<8x128xf32>
    %553 = arith.addf %514, %552 : vector<8x128xf32>
    %554 = arith.mulf %550, %2 : vector<8x128xf32>
    %555 = arith.mulf %553, %5 : vector<8x128xf32>
    %556 = arith.addf %554, %555 : vector<8x128xf32>
    %557 = arith.addf %556, %8 : vector<8x128xf32>
    %cst_124 = arith.constant 0.000000e+00 : f32
    %558 = vector.broadcast %cst_124 : f32 to vector<8x128xf32>
    %559 = arith.maximumf %557, %558 : vector<8x128xf32>
    %cst_125 = arith.constant dense<0.000000e+00> : vector<8x256xf32>
    %560 = tpu.matmul %559, %9, %cst_125 {dimension_numbers = #tpu.dot_dimension_numbers<[1], [0], [0], [1], [0, 0, 1, 1], [], []>} : vector<8x128xf32>, vector<128x256xf32>, vector<8x256xf32> -> vector<8x256xf32>
    %561 = vector.extract_strided_slice %560 {offsets = [0, 0], sizes = [8, 128], strides = [1, 1]} : vector<8x256xf32> to vector<8x128xf32>
    %562 = vector.extract_strided_slice %560 {offsets = [0, 128], sizes = [8, 128], strides = [1, 1]} : vector<8x256xf32> to vector<8x128xf32>
    %563 = vector.broadcast %521 : f32 to vector<8x128xf32>
    %564 = arith.mulf %563, %561 : vector<8x128xf32>
    %565 = arith.addf %504, %564 : vector<8x128xf32>
    %566 = vector.broadcast %521 : f32 to vector<8x128xf32>
    %567 = arith.mulf %566, %562 : vector<8x128xf32>
    %568 = arith.addf %514, %567 : vector<8x128xf32>
    %569 = arith.mulf %565, %2 : vector<8x128xf32>
    %570 = arith.mulf %568, %5 : vector<8x128xf32>
    %571 = arith.addf %569, %570 : vector<8x128xf32>
    %572 = arith.addf %571, %8 : vector<8x128xf32>
    %cst_126 = arith.constant 0.000000e+00 : f32
    %573 = vector.broadcast %cst_126 : f32 to vector<8x128xf32>
    %574 = arith.maximumf %572, %573 : vector<8x128xf32>
    %cst_127 = arith.constant dense<0.000000e+00> : vector<8x256xf32>
    %575 = tpu.matmul %574, %9, %cst_127 {dimension_numbers = #tpu.dot_dimension_numbers<[1], [0], [0], [1], [0, 0, 1, 1], [], []>} : vector<8x128xf32>, vector<128x256xf32>, vector<8x256xf32> -> vector<8x256xf32>
    %576 = vector.extract_strided_slice %575 {offsets = [0, 0], sizes = [8, 128], strides = [1, 1]} : vector<8x256xf32> to vector<8x128xf32>
    %577 = vector.extract_strided_slice %575 {offsets = [0, 128], sizes = [8, 128], strides = [1, 1]} : vector<8x256xf32> to vector<8x128xf32>
    %cst_128 = arith.constant 2.000000e+00 : f32
    %578 = vector.broadcast %cst_128 : f32 to vector<8x128xf32>
    %579 = arith.mulf %578, %546 : vector<8x128xf32>
    %580 = arith.addf %531, %579 : vector<8x128xf32>
    %cst_129 = arith.constant 2.000000e+00 : f32
    %581 = vector.broadcast %cst_129 : f32 to vector<8x128xf32>
    %582 = arith.mulf %581, %561 : vector<8x128xf32>
    %583 = arith.addf %580, %582 : vector<8x128xf32>
    %584 = arith.addf %583, %576 : vector<8x128xf32>
    %585 = vector.broadcast %523 : f32 to vector<8x128xf32>
    %586 = arith.mulf %585, %584 : vector<8x128xf32>
    %587 = arith.addf %504, %586 : vector<8x128xf32>
    %cst_130 = arith.constant 2.000000e+00 : f32
    %588 = vector.broadcast %cst_130 : f32 to vector<8x128xf32>
    %589 = arith.mulf %588, %547 : vector<8x128xf32>
    %590 = arith.addf %532, %589 : vector<8x128xf32>
    %cst_131 = arith.constant 2.000000e+00 : f32
    %591 = vector.broadcast %cst_131 : f32 to vector<8x128xf32>
    %592 = arith.mulf %591, %562 : vector<8x128xf32>
    %593 = arith.addf %590, %592 : vector<8x128xf32>
    %594 = arith.addf %593, %577 : vector<8x128xf32>
    %595 = vector.broadcast %523 : f32 to vector<8x128xf32>
    %596 = arith.mulf %595, %594 : vector<8x128xf32>
    %597 = arith.addf %514, %596 : vector<8x128xf32>
    %598 = vector.extract_strided_slice %587 {offsets = [0, 0], sizes = [8, 2], strides = [1, 1]} : vector<8x128xf32> to vector<8x2xf32>
    %599 = vector.extract_strided_slice %597 {offsets = [0, 0], sizes = [8, 2], strides = [1, 1]} : vector<8x128xf32> to vector<8x2xf32>
    %600 = arith.select %12, %598, %599 : vector<8x2xi1>, vector<8x2xf32>
    %c7 = arith.constant 7 : index
    %c0_132 = arith.constant 0 : index
    %c0_133 = arith.constant 0 : index
    %601 = vector.load %arg7[%c7, %c0_132, %c0_133] : memref<8x8x2xf32, #tpu.memory_space<vmem>>, vector<1x8x2xf32>
    %602 = vector.shape_cast %601 : vector<1x8x2xf32> to vector<8x2xf32>
    %603 = vector.shape_cast %600 : vector<8x2xf32> to vector<1x8x2xf32>
    tpu.vector_store %arg7[%c7, %c0_132, %c0_133], %603 {strides = array<i32>} : memref<8x8x2xf32, #tpu.memory_space<vmem>>, vector<1x8x2xf32>,
    return
  }
}

</mosaic_0001>

<bundles_post_ra>
// kernel: tpu_custom_call.1
= control target key start
LH: loop header
LB: loop body
LE: loop exit
PB: predicated region body
PF: predicated region fallthrough
CT: control target
= control target key end

     0   :  { %12 = vsyncpa [#allocation4], 0  ;;  %s4241_s0 = inlined_call_operand.vmem [shape: f32[7], index: 0, kind: input, shape index: {}]   ;;  %s4242_s1 = inlined_call_operand.vmem [shape: f32[7], index: 1, kind: input, shape index: {}]   ;;  %s4243_s2 = inlined_call_operand.vmem [shape: f32[7], index: 2, kind: input, shape index: {}]   ;;  %s4244_s3 = inlined_call_operand.vmem [shape: f32[8,2], index: 3, kind: input, shape index: {}]   ;;  %s4245_s4 = inlined_call_operand.vmem [shape: f32[2,128], index: 4, kind: input, shape index: {}]   ;;  %s4246_s5 = inlined_call_operand.vmem [shape: f32[1,128], index: 5, kind: input, shape index: {}]   ;;  %s4247_s6 = inlined_call_operand.hbm [shape: f32[128,256], index: 6, kind: input, shape index: {}]   ;;  %s4248_s7 = inlined_call_operand.vmem [shape: f32[8,8,2], index: 7, kind: output, shape index: {}]  }
   0x1   :  { %13 = vsyncpa [#allocation6], 0  ;;  %s31_s26 = sshll.u32 %s4242_s1, 4  ;;  %s32_s26 = int_to_ptr.vmem [resolvable:$true] %s31_s26 }
   0x2   :  { %14 = vsyncpa [#allocation3], 0  ;;  %s21_s29 = sshll.u32 %s4241_s0, 4  ;;  %s2629_s30 = scalar_lea.vmem %s32_s26, 16  ;;  %s22_s29 = int_to_ptr.vmem [resolvable:$true] %s21_s29 }
   0x3   :  { %p2630_p0 = scmp.ne.s32.totalorder %s32_s26, %s2629_s30  ;;  %p2634_p1 = scmp.lt.s32.totalorder %s32_s26, %s32_s26 }
   0x4   :  { %p2635_p2 = scmp.lt.s32.totalorder %s2629_s30, %s2629_s30 }
   0x6   :  { %p2636_p3 = por %p2635_p2, %p2634_p1 }
   0x8   :  { %p2637_p4 = pnand %p2636_p3, %p2630_p0 }
   0xa   :  { %2640 = shalt.err (!%p2637_p4)
}
   0xb   :  { %s2691_s8 = smov [#allocation5]   ;;  %s2641_s9 = scalar_lea.vmem %s22_s29, 16 }
   0xc   :  { %34 = dma.vmem_to_smem %s32_s26, 16, %s2691_s8, [#allocation6]  }
   0xd   :  { %p2642_p5 = scmp.ne.s32.totalorder %s22_s29, %s2641_s9  ;;  %p2646_p6 = scmp.lt.s32.totalorder %s22_s29, %s22_s29 }
   0xe   :  { %p2647_p7 = scmp.lt.s32.totalorder %s2641_s9, %s2641_s9 }
  0x10   :  { %p2648_p8 = por %p2647_p7, %p2646_p6 }
  0x12   :  { %p2649_p9 = pnand %p2648_p8, %p2642_p5 }
  0x14   :  { %2652 = shalt.err (!%p2649_p9)
}
  0x15   :  { %s2692_s1 = smov [#allocation2]   ;;  %s41_s11 = sshll.u32 %s4243_s2, 4  ;;  %s42_s11 = int_to_ptr.vmem [resolvable:$true] %s41_s11 }
  0x16   :  { %24 = dma.vmem_to_smem %s22_s29, 16, %s2692_s1, [#allocation4]  }
  0x17   :  { %s2653_s12 = scalar_lea.vmem %s42_s11, 16  ;;  %p2658_p11 = scmp.lt.s32.totalorder %s42_s11, %s42_s11 }
  0x18   :  { %p2654_p10 = scmp.ne.s32.totalorder %s42_s11, %s2653_s12  ;;  %p2659_p12 = scmp.lt.s32.totalorder %s2653_s12, %s2653_s12 }
  0x1a   :  { %p2660_p13 = por %p2659_p12, %p2658_p11 }
  0x1c   :  { %p2661_p0 = pnand %p2660_p13, %p2654_p10 }
  0x1e   :  { %2664 = shalt.err (!%p2661_p0)
}
  0x1f   :  { %s2693_s13 = smov [#allocation7]   ;;  %s2694_s14 = smov [#allocation8]  }
  0x20   :  { %44 = dma.vmem_to_smem %s42_s11, 16, %s2693_s13, [#allocation6]  }
  0x21   :  { %s56_s15 = sshll.u32 %s2694_s14, 4  ;;  %s57_s15 = int_to_ptr.vmem [resolvable:$true] %s56_s15 }
  0x22   :  { %s2673_s16 = scalar_lea.vmem %s57_s15, 4096  ;;  %p2678_p2 = scmp.lt.s32.totalorder %s57_s15, %s57_s15 }
  0x23   :  { %p2674_p1 = scmp.ne.s32.totalorder %s57_s15, %s2673_s16  ;;  %p2679_p3 = scmp.lt.s32.totalorder %s2673_s16, %s2673_s16 }
  0x25   :  { %p2680_p4 = por %p2679_p3, %p2678_p2 }
  0x27   :  { %p2681_p5 = pnand %p2680_p4, %p2674_p1 }
  0x29   :  { %2684 = shalt.err (!%p2681_p5)
}
  0x2a   :  { %s2695_s2 = smov 256   ;;  %s2696_s17 = smov 16  }
  0x2b   :  { %62 = dma.hbm_to_vmem [thread:$0]  %s4247_s6, 4096, %s57_s15, [#allocation3], %s2695_s2, %s2695_s2, %s2696_s17  }
  0x2c   :  { %2685 = dma.done.wait [#allocation4], 16  }
  0x2d   :  { %2686 = vsyncadd [#allocation4], 4294967280 }
  0x2e   :  { %2687 = dma.done.wait [#allocation6], 32  }
  0x2f   :  { %2688 = vsyncadd [#allocation6], 4294967264 }
  0x30   :  { %2689 = dma.done.wait [#allocation3], 4096  }
  0x31   :  { %2690 = vsyncadd [#allocation3], 4294963200 }
  0x32   :  { %75 = sfence }
  0x33   :  { %v128_v0 = vld [vmem:[%s4244_s3] sm:$0xff]  ;;  %vm138_vm0 = vcmask 15360   ;;  %v2755_v1 = vld [vmem:[#allocation8 + $0xf8] sm:$0xff]  ;;  %v2757_v2 = vld [vmem:[#allocation8 + $0xf0] sm:$0xff]  ;;  %v2697_v3 = vmov 0   ;;  %v2698_v9 = vmov 0.0  }
  0x34   :  { %2557 = vset.pattern.permute.xlu0 %v2697_v3  ;;  %139 = vst.msk [vmem:[%s4248_s7] sm:$0xff] %vm138_vm0, %v128_v0  ;;  %148 = vmatprep.subr.mxu0 %v2755_v1  ;;  %v2764_v4 = vld [vmem:[#allocation8 + $0xe8] sm:$0xff]  ;;  %v2766_v5 = vld [vmem:[#allocation8 + $0xe0] sm:$0xff]  ;;  %v2769_v6 = vld [vmem:[#allocation8 + $0xd8] sm:$0xff]  ;;  %v2699_v11 = vmov 1   ;;  %s141_s28 = sld [smem:[#allocation5]] }
  0x35   :  { %131 = vperm.xlu0 %2557, %v128_v0   ;;  %149 = vmatpush1.msra.mxu0 %v2757_v2  ;;  %v2772_v7 = vld [vmem:[#allocation8 + $0xd0] sm:$0xff]  ;;  %v2776_v8 = vld [vmem:[#allocation8 + $0xc8] sm:$0xff]  ;;  %v2780_v10 = vld [vmem:[#allocation8 + $0xc0] sm:$0xff]  ;;  %s140_s29 = sld [smem:[#allocation2]] }
  0x36   :  { %150 = vmatprep.subr.mxu0 %v2764_v4  ;;  %229 = vmatprep.subr.mxu1 %v2755_v1  ;;  %v2784_v12 = vld [vmem:[#allocation8 + $0xb8] sm:$0xff]  ;;  %v2787_v13 = vld [vmem:[#allocation8 + $0xb0] sm:$0xff]  ;;  %v2790_v14 = vld [vmem:[#allocation8 + $0xa8] sm:$0xff]  ;;  %s142_s30 = sld [smem:[#allocation7]] }
  0x37   :  { %151 = vmatpush1.msra.mxu0 %v2766_v5  ;;  %212 = vmatprep.mubr.f32.mxu0 %v2698_v9  ;;  %v2794_v15 = vld [vmem:[#allocation8 + $0xa0] sm:$0xff]  ;;  %v2798_v16 = vld [vmem:[#allocation8 + $0x98] sm:$0xff]  ;;  %v2802_v17 = vld [vmem:[#allocation8 + $0x90] sm:$0xff]  ;;  %s2525_s1 = sld [smem:[#allocation5 + $0x1]] }
  0x38   :  { %152 = vmatprep.subr.mxu0 %v2769_v6  ;;  %230 = vmatpush1.msra.mxu1 %v2757_v2  ;;  %v2806_v18 = vld [vmem:[#allocation8 + $0x88] sm:$0xff]  ;;  %v2810_v19 = vld [vmem:[#allocation8 + $0x80] sm:$0xff]  ;;  %v2814_v20 = vld [vmem:[#allocation8 + $0x78] sm:$0xff]  ;;  %s2524_s0 = sld [smem:[#allocation2 + $0x1]] }
  0x39   :  { %2558 = vset.pattern.permute.xlu0 %v2699_v11  ;;  %153 = vmatpush1.msra.mxu0 %v2772_v7  ;;  %v2818_v21 = vld [vmem:[#allocation8 + $0x70] sm:$0xff]  ;;  %v2822_v22 = vld [vmem:[#allocation8 + $0x68] sm:$0xff]  ;;  %v2826_v23 = vld [vmem:[#allocation8 + $0x60] sm:$0xff]  ;;  %s2526_s10 = sld [smem:[#allocation7 + $0x1]] }
  0x3a   :  { %135 = vperm.xlu0 %2558, %v128_v0   ;;  %154 = vmatprep.subr.mxu0 %v2776_v8  ;;  %v2830_v24 = vld [vmem:[#allocation8 + $0x58] sm:$0xff]  ;;  %v2834_v25 = vld [vmem:[#allocation8 + $0x50] sm:$0xff]  ;;  %v2838_v26 = vld [vmem:[#allocation8 + $0x48] sm:$0xff]  ;;  %v219_v46 = vstv %s141_s28  ;;  %s2529_s13 = sld [smem:[#allocation5 + $0x2]] }
  0x3b   :  { %155 = vmatpush1.msra.mxu0 %v2780_v10  ;;  %231 = vmatprep.subr.mxu1 %v2764_v4  ;;  %v2842_v27 = vld [vmem:[#allocation8 + $0x40] sm:$0xff]  ;;  %v2846_v28 = vld [vmem:[#allocation8 + $0x38] sm:$0xff]  ;;  %v2850_v29 = vld [vmem:[#allocation8 + $0x30] sm:$0xff]  ;;  %s2528_s14 = sld [smem:[#allocation2 + $0x2]] }
  0x3c   :  { %156 = vmatprep.subr.mxu0 %v2784_v12  ;;  %232 = vmatpush1.msra.mxu1 %v2766_v5  ;;  %v2854_v30 = vld [vmem:[#allocation8 + $0x28] sm:$0xff]  ;;  %v2858_v31 = vld [vmem:[#allocation8 + $0x20] sm:$0xff]  ;;  %v2862_v32 = vld [vmem:[#allocation8 + $0x18] sm:$0xff]  ;;  %s2530_s20 = sld [smem:[#allocation7 + $0x2]] }
  0x3d   :  { %157 = vmatpush1.msra.mxu0 %v2787_v13  ;;  %233 = vmatprep.subr.mxu1 %v2769_v6  ;;  %v2866_v33 = vld [vmem:[#allocation8 + $0x10] sm:$0xff]  ;;  %v2870_v34 = vld [vmem:[#allocation8 + $0x8] sm:$0xff]  ;;  %v2874_v35 = vld [vmem:[#allocation8] sm:$0xff]  ;;  %s2533_s22 = sld [smem:[#allocation5 + $0x3]] }
  0x3e   :  { %158 = vmatprep.subr.mxu0 %v2790_v14  ;;  %234 = vmatpush1.msra.mxu1 %v2772_v7  ;;  %v2896_v37 = vld [vmem:[%s4245_s4 + $0x1] ss:$0 sm:$0xff]  ;;  %v2901_v38 = vld [vmem:[%s4245_s4] ss:$0 sm:$0xff]  ;;  %s2532_s3 = sld [smem:[#allocation2 + $0x3]] }
  0x3f   :  { %159 = vmatpush1.msra.mxu0 %v2794_v15  ;;  %235 = vmatprep.subr.mxu1 %v2776_v8  ;;  %v2912_v42 = vld [vmem:[%s4246_s5] ss:$0 sm:$0xff]  ;;  %s2534_s23 = sld [smem:[#allocation7 + $0x3]] }
  0x40   :  { %160 = vmatprep.subr.mxu0 %v2798_v16  ;;  %236 = vmatpush1.msra.mxu1 %v2780_v10  ;;  %s2537_s26 = sld [smem:[#allocation5 + $0x4]] }
  0x41   :  { %161 = vmatpush1.msra.mxu0 %v2802_v17  ;;  %237 = vmatprep.subr.mxu1 %v2784_v12  ;;  %s2536_s27 = sld [smem:[#allocation2 + $0x4]] }
  0x42   :  { %162 = vmatprep.subr.mxu0 %v2806_v18  ;;  %238 = vmatpush1.msra.mxu1 %v2787_v13  ;;  %s2538_s28 = sld [smem:[#allocation7 + $0x4]] }
  0x43   :  { %163 = vmatpush1.msra.mxu0 %v2810_v19  ;;  %239 = vmatprep.subr.mxu1 %v2790_v14  ;;  %s2541_s8 = sld [smem:[#allocation5 + $0x5]] }
  0x44   :  { %164 = vmatprep.subr.mxu0 %v2814_v20  ;;  %240 = vmatpush1.msra.mxu1 %v2794_v15  ;;  %s2545_s15 = sld [smem:[#allocation5 + $0x6]] }
  0x45   :  { %165 = vmatpush1.msra.mxu0 %v2818_v21  ;;  %241 = vmatprep.subr.mxu1 %v2798_v16  ;;  %s2544_s16 = sld [smem:[#allocation2 + $0x6]] }
  0x46   :  { %166 = vmatprep.subr.mxu0 %v2822_v22  ;;  %242 = vmatpush1.msra.mxu1 %v2802_v17  ;;  %s2546_s2 = sld [smem:[#allocation7 + $0x6]] }
  0x47   :  { %167 = vmatpush1.msra.mxu0 %v2826_v23  ;;  %243 = vmatprep.subr.mxu1 %v2806_v18 }
  0x48   :  { %168 = vmatprep.subr.mxu0 %v2830_v24  ;;  %244 = vmatpush1.msra.mxu1 %v2810_v19 }
  0x49   :  { %169 = vmatpush1.msra.mxu0 %v2834_v25  ;;  %245 = vmatprep.subr.mxu1 %v2814_v20 }
  0x4a   :  { %170 = vmatprep.subr.mxu0 %v2838_v26  ;;  %246 = vmatpush1.msra.mxu1 %v2818_v21 }
  0x4b   :  { %171 = vmatpush1.msra.mxu0 %v2842_v27  ;;  %247 = vmatprep.subr.mxu1 %v2822_v22 }
  0x4c   :  { %172 = vmatprep.subr.mxu0 %v2846_v28  ;;  %248 = vmatpush1.msra.mxu1 %v2826_v23 }
  0x4d   :  { %173 = vmatpush1.msra.mxu0 %v2850_v29  ;;  %249 = vmatprep.subr.mxu1 %v2830_v24 }
  0x4e   :  { %174 = vmatprep.subr.mxu0 %v2854_v30  ;;  %250 = vmatpush1.msra.mxu1 %v2834_v25 }
  0x4f   :  { %175 = vmatpush1.msra.mxu0 %v2858_v31  ;;  %251 = vmatprep.subr.mxu1 %v2838_v26 }
  0x50   :  { %176 = vmatprep.subr.mxu0 %v2862_v32  ;;  %252 = vmatpush1.msra.mxu1 %v2842_v27 }
  0x51   :  { %177 = vmatpush1.msra.mxu0 %v2866_v33  ;;  %253 = vmatprep.subr.mxu1 %v2846_v28 }
  0x52   :  { %178 = vmatprep.subr.mxu0 %v2870_v34  ;;  %254 = vmatpush1.msra.mxu1 %v2850_v29 }
  0x53   :  { %179 = vmatpush1.msra.mxu0 %v2874_v35  ;;  %255 = vmatprep.subr.mxu1 %v2854_v30 }
  0x54   :  { %256 = vmatpush1.msra.mxu1 %v2858_v31  ;;  %293 = vmatprep.mubr.f32.mxu1 %v2698_v9 }
  0x55   :  { %257 = vmatprep.subr.mxu1 %v2862_v32  ;;  %309 = vmatprep.subr.mxu0 %v2755_v1 }
  0x56   :  { %258 = vmatpush1.msra.mxu1 %v2866_v33 }
  0x57   :  { %259 = vmatprep.subr.mxu1 %v2870_v34 }
  0x58   :  { %260 = vmatpush1.msra.mxu1 %v2874_v35 }
  0x59   :  { %390 = vmatprep.subr.mxu1 %v2755_v1 }
  0xb0   :  { %v2891_v36 = vpop.permute.xlu0 %131 }
  0xb1   :  { %v143_v41 = vmul.f32 %v2901_v38, %v2891_v36 }
  0xb5   :  { %v2903_v39 = vpop.permute.xlu0 %135 }
  0xb6   :  { %v144_v40 = vmul.f32 %v2896_v37, %v2903_v39 }
  0xb8   :  { %v145_v43 = vadd.f32 %v144_v40, %v143_v41 }
  0xba   :  { %v146_v44 = vadd.f32 %v2912_v42, %v145_v43 }
  0xbc   :  { %v147_v45 = vmax.f32 %v146_v44, 0.0  ;;  %v380_v44 = vstv %s140_s29 }
  0xbe   :  { %213 = vmatmul.mubr.f32.vlgmr.msra.gmra.mxu0 %v147_v45 }
  0xbf   :  { %310 = vmatpush1.msra.mxu0 %v2757_v2  ;;  %373 = vmatprep.mubr.f32.mxu0 %v2698_v9 }
  0xc0   :  { %311 = vmatprep.subr.mxu0 %v2764_v4 }
  0xc1   :  { %312 = vmatpush1.msra.mxu0 %v2766_v5 }
  0xc2   :  { %313 = vmatprep.subr.mxu0 %v2769_v6 }
  0xc3   :  { %314 = vmatpush1.msra.mxu0 %v2772_v7 }
  0xc4   :  { %315 = vmatprep.subr.mxu0 %v2776_v8 }
  0xc5   :  { %316 = vmatpush1.msra.mxu0 %v2780_v10 }
  0xc6   :  { %317 = vmatprep.subr.mxu0 %v2784_v12 }
  0xc7   :  { %318 = vmatpush1.msra.mxu0 %v2787_v13 }
  0xc8   :  { %319 = vmatprep.subr.mxu0 %v2790_v14 }
  0xc9   :  { %320 = vmatpush1.msra.mxu0 %v2794_v15 }
  0xca   :  { %321 = vmatprep.subr.mxu0 %v2798_v16 }
  0xcb   :  { %322 = vmatpush1.msra.mxu0 %v2802_v17 }
  0xcc   :  { %323 = vmatprep.subr.mxu0 %v2806_v18 }
  0xcd   :  { %324 = vmatpush1.msra.mxu0 %v2810_v19 }
  0xce   :  { %325 = vmatprep.subr.mxu0 %v2814_v20 }
  0xcf   :  { %326 = vmatpush1.msra.mxu0 %v2818_v21 }
  0xd0   :  { %327 = vmatprep.subr.mxu0 %v2822_v22 }
  0xd1   :  { %328 = vmatpush1.msra.mxu0 %v2826_v23 }
  0xd2   :  { %329 = vmatprep.subr.mxu0 %v2830_v24 }
  0xd3   :  { %330 = vmatpush1.msra.mxu0 %v2834_v25 }
  0xd4   :  { %331 = vmatprep.subr.mxu0 %v2838_v26 }
  0xd5   :  { %332 = vmatpush1.msra.mxu0 %v2842_v27 }
  0xd6   :  { %333 = vmatprep.subr.mxu0 %v2846_v28 }
  0xd7   :  { %334 = vmatpush1.msra.mxu0 %v2850_v29 }
  0xd8   :  { %335 = vmatprep.subr.mxu0 %v2854_v30 }
  0xd9   :  { %336 = vmatpush1.msra.mxu0 %v2858_v31 }
  0xda   :  { %337 = vmatprep.subr.mxu0 %v2862_v32 }
  0xdb   :  { %338 = vmatpush1.msra.mxu0 %v2866_v33 }
  0xdc   :  { %339 = vmatprep.subr.mxu0 %v2870_v34 }
  0xdd   :  { %340 = vmatpush1.msra.mxu0 %v2874_v35 }
  0xde   :  { %487 = vmatprep.subr.mxu0 %v2755_v1 }
 0x17e   :  { %v2948_v47 = vpop.f32.mrf.mxu0 }
 0x17f   :  { %v220_v48 = vmul.f32 %v219_v46, %v2948_v47 }
 0x180   :  { %v2951_v49 = vpop.f32.mrf.mxu0 }
 0x181   :  { %v221_v50 = vadd.f32 %v220_v48, %v2891_v36  ;;  %v222_v51 = vmul.f32 %v219_v46, %v2951_v49 }
 0x183   :  { %v223_v52 = vadd.f32 %v222_v51, %v2903_v39  ;;  %v224_v53 = vmul.f32 %v2901_v38, %v221_v50 }
 0x185   :  { %v225_v54 = vmul.f32 %v2896_v37, %v223_v52 }
 0x187   :  { %v226_v55 = vadd.f32 %v225_v54, %v224_v53 }
 0x189   :  { %v227_v56 = vadd.f32 %v2912_v42, %v226_v55 }
 0x18b   :  { %v228_v57 = vmax.f32 %v227_v56, 0.0 }
 0x18d   :  { %294 = vmatmul.mubr.f32.vlgmr.msra.gmra.mxu1 %v228_v57 }
 0x18e   :  { %391 = vmatpush1.msra.mxu1 %v2757_v2  ;;  %454 = vmatprep.mubr.f32.mxu1 %v2698_v9 }
 0x18f   :  { %392 = vmatprep.subr.mxu1 %v2764_v4 }
 0x190   :  { %393 = vmatpush1.msra.mxu1 %v2766_v5 }
 0x191   :  { %394 = vmatprep.subr.mxu1 %v2769_v6 }
 0x192   :  { %395 = vmatpush1.msra.mxu1 %v2772_v7 }
 0x193   :  { %396 = vmatprep.subr.mxu1 %v2776_v8 }
 0x194   :  { %397 = vmatpush1.msra.mxu1 %v2780_v10 }
 0x195   :  { %398 = vmatprep.subr.mxu1 %v2784_v12 }
 0x196   :  { %399 = vmatpush1.msra.mxu1 %v2787_v13 }
 0x197   :  { %400 = vmatprep.subr.mxu1 %v2790_v14 }
 0x198   :  { %401 = vmatpush1.msra.mxu1 %v2794_v15 }
 0x199   :  { %402 = vmatprep.subr.mxu1 %v2798_v16 }
 0x19a   :  { %403 = vmatpush1.msra.mxu1 %v2802_v17 }
 0x19b   :  { %404 = vmatprep.subr.mxu1 %v2806_v18 }
 0x19c   :  { %405 = vmatpush1.msra.mxu1 %v2810_v19 }
 0x19d   :  { %406 = vmatprep.subr.mxu1 %v2814_v20 }
 0x19e   :  { %407 = vmatpush1.msra.mxu1 %v2818_v21 }
 0x19f   :  { %408 = vmatprep.subr.mxu1 %v2822_v22 }
 0x1a0   :  { %409 = vmatpush1.msra.mxu1 %v2826_v23 }
 0x1a1   :  { %410 = vmatprep.subr.mxu1 %v2830_v24 }
 0x1a2   :  { %411 = vmatpush1.msra.mxu1 %v2834_v25 }
 0x1a3   :  { %412 = vmatprep.subr.mxu1 %v2838_v26 }
 0x1a4   :  { %413 = vmatpush1.msra.mxu1 %v2842_v27 }
 0x1a5   :  { %414 = vmatprep.subr.mxu1 %v2846_v28 }
 0x1a6   :  { %415 = vmatpush1.msra.mxu1 %v2850_v29 }
 0x1a7   :  { %416 = vmatprep.subr.mxu1 %v2854_v30 }
 0x1a8   :  { %417 = vmatpush1.msra.mxu1 %v2858_v31 }
 0x1a9   :  { %418 = vmatprep.subr.mxu1 %v2862_v32 }
 0x1aa   :  { %419 = vmatpush1.msra.mxu1 %v2866_v33 }
 0x1ab   :  { %420 = vmatprep.subr.mxu1 %v2870_v34 }
 0x1ac   :  { %421 = vmatpush1.msra.mxu1 %v2874_v35 }
 0x1ad   :  { %568 = vmatprep.subr.mxu1 %v2755_v1 }
 0x24d   :  { %v295_v58 = vpop.f32.mrf.mxu1 }
 0x24e   :  { %v300_v59 = vmul.f32 %v295_v58, %v219_v46  ;;  %v461_v43 = vmul.f32 2.0, %v295_v58 }
 0x24f   :  { %v2992_v60 = vpop.f32.mrf.mxu1 }
 0x250   :  { %v301_v61 = vadd.f32 %v300_v59, %v2891_v36  ;;  %v302_v62 = vmul.f32 %v2992_v60, %v219_v46  ;;  %v462_v46 = vadd.f32 %v461_v43, %v2948_v47  ;;  %v469_v47 = vmul.f32 2.0, %v2992_v60 }
 0x252   :  { %v303_v63 = vadd.f32 %v302_v62, %v2903_v39  ;;  %v304_v0 = vmul.f32 %v2901_v38, %v301_v61 }
 0x254   :  { %v305_v3 = vmul.f32 %v2896_v37, %v303_v63  ;;  %v125_v63 = vlaneseq }
 0x256   :  { %v306_v11 = vadd.f32 %v305_v3, %v304_v0  ;;  %v470_v0 = vadd.f32 %v469_v47, %v2951_v49 }
 0x258   :  { %v307_v40 = vadd.f32 %v2912_v42, %v306_v11  ;;  %v466_v11 = vstv %s142_s30 }
 0x25a   :  { %v308_v41 = vmax.f32 %v307_v40, 0.0 }
 0x25c   :  { %374 = vmatmul.mubr.f32.vlgmr.msra.gmra.mxu0 %v308_v41 }
 0x25d   :  { %488 = vmatpush1.msra.mxu0 %v2757_v2  ;;  %551 = vmatprep.mubr.f32.mxu0 %v2698_v9 }
 0x25e   :  { %489 = vmatprep.subr.mxu0 %v2764_v4 }
 0x25f   :  { %490 = vmatpush1.msra.mxu0 %v2766_v5 }
 0x260   :  { %491 = vmatprep.subr.mxu0 %v2769_v6 }
 0x261   :  { %492 = vmatpush1.msra.mxu0 %v2772_v7 }
 0x262   :  { %493 = vmatprep.subr.mxu0 %v2776_v8 }
 0x263   :  { %494 = vmatpush1.msra.mxu0 %v2780_v10 }
 0x264   :  { %495 = vmatprep.subr.mxu0 %v2784_v12 }
 0x265   :  { %496 = vmatpush1.msra.mxu0 %v2787_v13 }
 0x266   :  { %497 = vmatprep.subr.mxu0 %v2790_v14 }
 0x267   :  { %498 = vmatpush1.msra.mxu0 %v2794_v15 }
 0x268   :  { %499 = vmatprep.subr.mxu0 %v2798_v16 }
 0x269   :  { %500 = vmatpush1.msra.mxu0 %v2802_v17 }
 0x26a   :  { %501 = vmatprep.subr.mxu0 %v2806_v18 }
 0x26b   :  { %502 = vmatpush1.msra.mxu0 %v2810_v19 }
 0x26c   :  { %503 = vmatprep.subr.mxu0 %v2814_v20 }
 0x26d   :  { %504 = vmatpush1.msra.mxu0 %v2818_v21 }
 0x26e   :  { %505 = vmatprep.subr.mxu0 %v2822_v22 }
 0x26f   :  { %506 = vmatpush1.msra.mxu0 %v2826_v23 }
 0x270   :  { %507 = vmatprep.subr.mxu0 %v2830_v24 }
 0x271   :  { %508 = vmatpush1.msra.mxu0 %v2834_v25 }
 0x272   :  { %509 = vmatprep.subr.mxu0 %v2838_v26 }
 0x273   :  { %510 = vmatpush1.msra.mxu0 %v2842_v27 }
 0x274   :  { %511 = vmatprep.subr.mxu0 %v2846_v28 }
 0x275   :  { %512 = vmatpush1.msra.mxu0 %v2850_v29 }
 0x276   :  { %513 = vmatprep.subr.mxu0 %v2854_v30 }
 0x277   :  { %514 = vmatpush1.msra.mxu0 %v2858_v31 }
 0x278   :  { %515 = vmatprep.subr.mxu0 %v2862_v32 }
 0x279   :  { %516 = vmatpush1.msra.mxu0 %v2866_v33 }
 0x27a   :  { %517 = vmatprep.subr.mxu0 %v2870_v34 }
 0x27b   :  { %518 = vmatpush1.msra.mxu0 %v2874_v35 }
 0x27c   :  { %648 = vmatprep.subr.mxu0 %v2755_v1 }
 0x31c   :  { %v375_v45 = vpop.f32.mrf.mxu0 }
 0x31d   :  { %v381_v48 = vmul.f32 %v380_v44, %v375_v45  ;;  %v463_v50 = vmul.f32 2.0, %v375_v45 }
 0x31e   :  { %v377_v51 = vpop.f32.mrf.mxu0 }
 0x31f   :  { %v382_v52 = vadd.f32 %v381_v48, %v2891_v36  ;;  %v383_v53 = vmul.f32 %v380_v44, %v377_v51  ;;  %v464_v54 = vadd.f32 %v463_v50, %v462_v46  ;;  %v471_v62 = vmul.f32 2.0, %v377_v51 }
 0x320   :  { %v3074_v44 = vand.u32 127, %v125_v63 }
 0x321   :  { %v384_v55 = vadd.f32 %v383_v53, %v2903_v39  ;;  %v385_v56 = vmul.f32 %v2901_v38, %v382_v52  ;;  %v472_v41 = vadd.f32 %v471_v62, %v470_v0 }
 0x322   :  { %vm127_vm1 = vcmp.eq.s32.totalorder %v3074_v44, 0 }
 0x323   :  { %v386_v57 = vmul.f32 %v2896_v37, %v384_v55 }
 0x325   :  { %v387_v59 = vadd.f32 %v386_v57, %v385_v56 }
 0x327   :  { %v388_v58 = vadd.f32 %v2912_v42, %v387_v59 }
 0x329   :  { %v389_v61 = vmax.f32 %v388_v58, 0.0 }
 0x32b   :  { %455 = vmatmul.mubr.f32.vlgmr.msra.gmra.mxu1 %v389_v61 }
 0x32c   :  { %569 = vmatpush1.msra.mxu1 %v2757_v2  ;;  %632 = vmatprep.mubr.f32.mxu1 %v2698_v9 }
 0x32d   :  { %570 = vmatprep.subr.mxu1 %v2764_v4 }
 0x32e   :  { %571 = vmatpush1.msra.mxu1 %v2766_v5 }
 0x32f   :  { %572 = vmatprep.subr.mxu1 %v2769_v6 }
 0x330   :  { %573 = vmatpush1.msra.mxu1 %v2772_v7 }
 0x331   :  { %574 = vmatprep.subr.mxu1 %v2776_v8 }
 0x332   :  { %575 = vmatpush1.msra.mxu1 %v2780_v10 }
 0x333   :  { %576 = vmatprep.subr.mxu1 %v2784_v12 }
 0x334   :  { %577 = vmatpush1.msra.mxu1 %v2787_v13 }
 0x335   :  { %578 = vmatprep.subr.mxu1 %v2790_v14 }
 0x336   :  { %579 = vmatpush1.msra.mxu1 %v2794_v15 }
 0x337   :  { %580 = vmatprep.subr.mxu1 %v2798_v16 }
 0x338   :  { %581 = vmatpush1.msra.mxu1 %v2802_v17 }
 0x339   :  { %582 = vmatprep.subr.mxu1 %v2806_v18 }
 0x33a   :  { %583 = vmatpush1.msra.mxu1 %v2810_v19 }
 0x33b   :  { %584 = vmatprep.subr.mxu1 %v2814_v20 }
 0x33c   :  { %585 = vmatpush1.msra.mxu1 %v2818_v21 }
 0x33d   :  { %586 = vmatprep.subr.mxu1 %v2822_v22 }
 0x33e   :  { %587 = vmatpush1.msra.mxu1 %v2826_v23 }
 0x33f   :  { %588 = vmatprep.subr.mxu1 %v2830_v24 }
 0x340   :  { %589 = vmatpush1.msra.mxu1 %v2834_v25 }
 0x341   :  { %590 = vmatprep.subr.mxu1 %v2838_v26 }
 0x342   :  { %591 = vmatpush1.msra.mxu1 %v2842_v27 }
 0x343   :  { %592 = vmatprep.subr.mxu1 %v2846_v28 }
 0x344   :  { %593 = vmatpush1.msra.mxu1 %v2850_v29 }
 0x345   :  { %594 = vmatprep.subr.mxu1 %v2854_v30 }
 0x346   :  { %595 = vmatpush1.msra.mxu1 %v2858_v31 }
 0x347   :  { %596 = vmatprep.subr.mxu1 %v2862_v32 }
 0x348   :  { %597 = vmatpush1.msra.mxu1 %v2866_v33 }
 0x349   :  { %598 = vmatprep.subr.mxu1 %v2870_v34 }
 0x34a   :  { %599 = vmatpush1.msra.mxu1 %v2874_v35 }
 0x34b   :  { %729 = vmatprep.subr.mxu1 %v2755_v1 }
 0x3eb   :  { %v456_v3 = vpop.f32.mrf.mxu1 }
 0x3ec   :  { %v465_v40 = vadd.f32 %v464_v54, %v456_v3  ;;  %v558_v54 = vstv %s2525_s1 }
 0x3ed   :  { %v458_v43 = vpop.f32.mrf.mxu1 }
 0x3ee   :  { %v467_v45 = vmul.f32 %v466_v11, %v465_v40  ;;  %v473_v46 = vadd.f32 %v472_v41, %v458_v43 }
 0x3f0   :  { %v3077_v48 = vadd.f32 %v467_v45, %v2891_v36  ;;  %v474_v50 = vmul.f32 %v473_v46, %v466_v11 }
 0x3f2   :  { %v3081_v60 = vadd.f32 %v474_v50, %v2903_v39  ;;  %v482_v49 = vmul.f32 %v2901_v38, %v3077_v48 }
 0x3f4   :  { %v483_v51 = vmul.f32 %v2896_v37, %v3081_v60  ;;  %v476_v52 = vsel %vm127_vm1, %v3077_v48, %v3081_v60 }
 0x3f5   :  { %2523 = vst.msk [vmem:[%s4248_s7 + $0x8] sm:$0xff] %vm138_vm0, %v476_v52 }
 0x3f6   :  { %v484_v36 = vadd.f32 %v483_v51, %v482_v49 }
 0x3f8   :  { %v485_v39 = vadd.f32 %v2912_v42, %v484_v36 }
 0x3fa   :  { %v486_v53 = vmax.f32 %v485_v39, 0.0 }
 0x3fc   :  { %552 = vmatmul.mubr.f32.vlgmr.msra.gmra.mxu0 %v486_v53  ;;  %v719_v53 = vstv %s2524_s0 }
 0x3fd   :  { %649 = vmatpush1.msra.mxu0 %v2757_v2  ;;  %712 = vmatprep.mubr.f32.mxu0 %v2698_v9 }
 0x3fe   :  { %650 = vmatprep.subr.mxu0 %v2764_v4 }
 0x3ff   :  { %651 = vmatpush1.msra.mxu0 %v2766_v5 }
 0x400   :  { %652 = vmatprep.subr.mxu0 %v2769_v6 }
 0x401   :  { %653 = vmatpush1.msra.mxu0 %v2772_v7 }
 0x402   :  { %654 = vmatprep.subr.mxu0 %v2776_v8 }
 0x403   :  { %655 = vmatpush1.msra.mxu0 %v2780_v10 }
 0x404   :  { %656 = vmatprep.subr.mxu0 %v2784_v12 }
 0x405   :  { %657 = vmatpush1.msra.mxu0 %v2787_v13 }
 0x406   :  { %658 = vmatprep.subr.mxu0 %v2790_v14 }
 0x407   :  { %659 = vmatpush1.msra.mxu0 %v2794_v15 }
 0x408   :  { %660 = vmatprep.subr.mxu0 %v2798_v16 }
 0x409   :  { %661 = vmatpush1.msra.mxu0 %v2802_v17 }
 0x40a   :  { %662 = vmatprep.subr.mxu0 %v2806_v18 }
 0x40b   :  { %663 = vmatpush1.msra.mxu0 %v2810_v19 }
 0x40c   :  { %664 = vmatprep.subr.mxu0 %v2814_v20 }
 0x40d   :  { %665 = vmatpush1.msra.mxu0 %v2818_v21 }
 0x40e   :  { %666 = vmatprep.subr.mxu0 %v2822_v22 }
 0x40f   :  { %667 = vmatpush1.msra.mxu0 %v2826_v23 }
 0x410   :  { %668 = vmatprep.subr.mxu0 %v2830_v24 }
 0x411   :  { %669 = vmatpush1.msra.mxu0 %v2834_v25 }
 0x412   :  { %670 = vmatprep.subr.mxu0 %v2838_v26 }
 0x413   :  { %671 = vmatpush1.msra.mxu0 %v2842_v27 }
 0x414   :  { %672 = vmatprep.subr.mxu0 %v2846_v28 }
 0x415   :  { %673 = vmatpush1.msra.mxu0 %v2850_v29 }
 0x416   :  { %674 = vmatprep.subr.mxu0 %v2854_v30 }
 0x417   :  { %675 = vmatpush1.msra.mxu0 %v2858_v31 }
 0x418   :  { %676 = vmatprep.subr.mxu0 %v2862_v32 }
 0x419   :  { %677 = vmatpush1.msra.mxu0 %v2866_v33 }
 0x41a   :  { %678 = vmatprep.subr.mxu0 %v2870_v34 }
 0x41b   :  { %679 = vmatpush1.msra.mxu0 %v2874_v35 }
 0x41c   :  { %826 = vmatprep.subr.mxu0 %v2755_v1 }
 0x4bc   :  { %v3129_v55 = vpop.f32.mrf.mxu0 }
 0x4bd   :  { %v559_v56 = vmul.f32 %v558_v54, %v3129_v55 }
 0x4be   :  { %v3132_v57 = vpop.f32.mrf.mxu0 }
 0x4bf   :  { %v560_v59 = vadd.f32 %v559_v56, %v3077_v48  ;;  %v561_v58 = vmul.f32 %v558_v54, %v3132_v57 }
 0x4c1   :  { %v562_v61 = vadd.f32 %v561_v58, %v3081_v60  ;;  %v563_v47 = vmul.f32 %v2901_v38, %v560_v59 }
 0x4c3   :  { %v564_v62 = vmul.f32 %v2896_v37, %v562_v61 }
 0x4c5   :  { %v565_v63 = vadd.f32 %v564_v62, %v563_v47 }
 0x4c7   :  { %v566_v0 = vadd.f32 %v2912_v42, %v565_v63 }
 0x4c9   :  { %v567_v3 = vmax.f32 %v566_v0, 0.0 }
 0x4cb   :  { %633 = vmatmul.mubr.f32.vlgmr.msra.gmra.mxu1 %v567_v3 }
 0x4cc   :  { %730 = vmatpush1.msra.mxu1 %v2757_v2  ;;  %793 = vmatprep.mubr.f32.mxu1 %v2698_v9 }
 0x4cd   :  { %731 = vmatprep.subr.mxu1 %v2764_v4 }
 0x4ce   :  { %732 = vmatpush1.msra.mxu1 %v2766_v5 }
 0x4cf   :  { %733 = vmatprep.subr.mxu1 %v2769_v6 }
 0x4d0   :  { %734 = vmatpush1.msra.mxu1 %v2772_v7 }
 0x4d1   :  { %735 = vmatprep.subr.mxu1 %v2776_v8 }
 0x4d2   :  { %736 = vmatpush1.msra.mxu1 %v2780_v10 }
 0x4d3   :  { %737 = vmatprep.subr.mxu1 %v2784_v12 }
 0x4d4   :  { %738 = vmatpush1.msra.mxu1 %v2787_v13 }
 0x4d5   :  { %739 = vmatprep.subr.mxu1 %v2790_v14 }
 0x4d6   :  { %740 = vmatpush1.msra.mxu1 %v2794_v15 }
 0x4d7   :  { %741 = vmatprep.subr.mxu1 %v2798_v16 }
 0x4d8   :  { %742 = vmatpush1.msra.mxu1 %v2802_v17 }
 0x4d9   :  { %743 = vmatprep.subr.mxu1 %v2806_v18 }
 0x4da   :  { %744 = vmatpush1.msra.mxu1 %v2810_v19 }
 0x4db   :  { %745 = vmatprep.subr.mxu1 %v2814_v20 }
 0x4dc   :  { %746 = vmatpush1.msra.mxu1 %v2818_v21 }
 0x4dd   :  { %747 = vmatprep.subr.mxu1 %v2822_v22 }
 0x4de   :  { %748 = vmatpush1.msra.mxu1 %v2826_v23 }
 0x4df   :  { %749 = vmatprep.subr.mxu1 %v2830_v24 }
 0x4e0   :  { %750 = vmatpush1.msra.mxu1 %v2834_v25 }
 0x4e1   :  { %751 = vmatprep.subr.mxu1 %v2838_v26 }
 0x4e2   :  { %752 = vmatpush1.msra.mxu1 %v2842_v27 }
 0x4e3   :  { %753 = vmatprep.subr.mxu1 %v2846_v28 }
 0x4e4   :  { %754 = vmatpush1.msra.mxu1 %v2850_v29 }
 0x4e5   :  { %755 = vmatprep.subr.mxu1 %v2854_v30 }
 0x4e6   :  { %756 = vmatpush1.msra.mxu1 %v2858_v31 }
 0x4e7   :  { %757 = vmatprep.subr.mxu1 %v2862_v32 }
 0x4e8   :  { %758 = vmatpush1.msra.mxu1 %v2866_v33 }
 0x4e9   :  { %759 = vmatprep.subr.mxu1 %v2870_v34 }
 0x4ea   :  { %760 = vmatpush1.msra.mxu1 %v2874_v35 }
 0x4eb   :  { %907 = vmatprep.subr.mxu1 %v2755_v1 }
 0x58b   :  { %v634_v11 = vpop.f32.mrf.mxu1 }
 0x58c   :  { %v639_v40 = vmul.f32 %v634_v11, %v558_v54  ;;  %v800_v39 = vmul.f32 2.0, %v634_v11 }
 0x58d   :  { %v3173_v41 = vpop.f32.mrf.mxu1 }
 0x58e   :  { %v640_v43 = vadd.f32 %v639_v40, %v3077_v48  ;;  %v641_v45 = vmul.f32 %v3173_v41, %v558_v54  ;;  %v801_v56 = vadd.f32 %v800_v39, %v3129_v55  ;;  %v805_v55 = vstv %s2526_s10 }
 0x590   :  { %v642_v46 = vadd.f32 %v641_v45, %v3081_v60  ;;  %v643_v50 = vmul.f32 %v2901_v38, %v640_v43 }
 0x592   :  { %v644_v49 = vmul.f32 %v2896_v37, %v642_v46 }
 0x594   :  { %v645_v51 = vadd.f32 %v644_v49, %v643_v50 }
 0x596   :  { %v646_v52 = vadd.f32 %v2912_v42, %v645_v51 }
 0x598   :  { %v647_v36 = vmax.f32 %v646_v52, 0.0 }
 0x59a   :  { %713 = vmatmul.mubr.f32.vlgmr.msra.gmra.mxu0 %v647_v36 }
 0x59b   :  { %827 = vmatpush1.msra.mxu0 %v2757_v2  ;;  %890 = vmatprep.mubr.f32.mxu0 %v2698_v9 }
 0x59c   :  { %828 = vmatprep.subr.mxu0 %v2764_v4 }
 0x59d   :  { %829 = vmatpush1.msra.mxu0 %v2766_v5 }
 0x59e   :  { %830 = vmatprep.subr.mxu0 %v2769_v6 }
 0x59f   :  { %831 = vmatpush1.msra.mxu0 %v2772_v7 }
 0x5a0   :  { %832 = vmatprep.subr.mxu0 %v2776_v8 }
 0x5a1   :  { %833 = vmatpush1.msra.mxu0 %v2780_v10 }
 0x5a2   :  { %834 = vmatprep.subr.mxu0 %v2784_v12 }
 0x5a3   :  { %835 = vmatpush1.msra.mxu0 %v2787_v13 }
 0x5a4   :  { %836 = vmatprep.subr.mxu0 %v2790_v14 }
 0x5a5   :  { %837 = vmatpush1.msra.mxu0 %v2794_v15 }
 0x5a6   :  { %838 = vmatprep.subr.mxu0 %v2798_v16 }
 0x5a7   :  { %839 = vmatpush1.msra.mxu0 %v2802_v17 }
 0x5a8   :  { %840 = vmatprep.subr.mxu0 %v2806_v18 }
 0x5a9   :  { %841 = vmatpush1.msra.mxu0 %v2810_v19 }
 0x5aa   :  { %842 = vmatprep.subr.mxu0 %v2814_v20 }
 0x5ab   :  { %843 = vmatpush1.msra.mxu0 %v2818_v21 }
 0x5ac   :  { %844 = vmatprep.subr.mxu0 %v2822_v22 }
 0x5ad   :  { %845 = vmatpush1.msra.mxu0 %v2826_v23 }
 0x5ae   :  { %846 = vmatprep.subr.mxu0 %v2830_v24 }
 0x5af   :  { %847 = vmatpush1.msra.mxu0 %v2834_v25 }
 0x5b0   :  { %848 = vmatprep.subr.mxu0 %v2838_v26 }
 0x5b1   :  { %849 = vmatpush1.msra.mxu0 %v2842_v27 }
 0x5b2   :  { %850 = vmatprep.subr.mxu0 %v2846_v28 }
 0x5b3   :  { %851 = vmatpush1.msra.mxu0 %v2850_v29 }
 0x5b4   :  { %852 = vmatprep.subr.mxu0 %v2854_v30 }
 0x5b5   :  { %853 = vmatpush1.msra.mxu0 %v2858_v31 }
 0x5b6   :  { %854 = vmatprep.subr.mxu0 %v2862_v32 }
 0x5b7   :  { %855 = vmatpush1.msra.mxu0 %v2866_v33 }
 0x5b8   :  { %856 = vmatprep.subr.mxu0 %v2870_v34 }
 0x5b9   :  { %857 = vmatpush1.msra.mxu0 %v2874_v35 }
 0x5ba   :  { %987 = vmatprep.subr.mxu0 %v2755_v1 }
 0x65a   :  { %v714_v54 = vpop.f32.mrf.mxu0 }
 0x65b   :  { %v720_v59 = vmul.f32 %v719_v53, %v714_v54  ;;  %v802_v58 = vmul.f32 2.0, %v714_v54 }
 0x65c   :  { %v716_v61 = vpop.f32.mrf.mxu0 }
 0x65d   :  { %v721_v47 = vadd.f32 %v720_v59, %v3077_v48  ;;  %v722_v62 = vmul.f32 %v719_v53, %v716_v61  ;;  %v803_v63 = vadd.f32 %v802_v58, %v801_v56  ;;  %v3274_v56 = vld [vmem:[#allocation8 + $0xf0] sm:$0xff]  ;;  %v3278_v59 = vld [vmem:[#allocation8 + $0xe8] sm:$0xff]  ;;  %v3281_v58 = vld [vmem:[#allocation8 + $0xe0] sm:$0xff] }
 0x65f   :  { %v723_v0 = vadd.f32 %v722_v62, %v3081_v60  ;;  %v724_v3 = vmul.f32 %v2901_v38, %v721_v47  ;;  %v3367_v47 = vld [vmem:[#allocation8 + $0x80] sm:$0xff]  ;;  %v3370_v62 = vld [vmem:[#allocation8 + $0x78] sm:$0xff] }
 0x661   :  { %v725_v40 = vmul.f32 %v2896_v37, %v723_v0  ;;  %v3376_v0 = vld [vmem:[#allocation8 + $0x68] sm:$0xff] }
 0x663   :  { %v726_v43 = vadd.f32 %v725_v40, %v724_v3  ;;  %v3379_v3 = vld [vmem:[#allocation8 + $0x60] sm:$0xff]  ;;  %v3382_v40 = vld [vmem:[#allocation8 + $0x58] sm:$0xff] }
 0x665   :  { %v727_v11 = vadd.f32 %v2912_v42, %v726_v43  ;;  %v3385_v43 = vld [vmem:[#allocation8 + $0x50] sm:$0xff] }
 0x667   :  { %v728_v45 = vmax.f32 %v727_v11, 0.0  ;;  %v3388_v11 = vld [vmem:[#allocation8 + $0x48] sm:$0xff] }
 0x669   :  { %794 = vmatmul.mubr.f32.vlgmr.msra.gmra.mxu1 %v728_v45  ;;  %v3391_v45 = vld [vmem:[#allocation8 + $0x40] sm:$0xff] }
 0x66a   :  { %908 = vmatpush1.msra.mxu1 %v2757_v2  ;;  %971 = vmatprep.mubr.f32.mxu1 %v2698_v9  ;;  %v808_v2 = vmul.f32 2.0, %v3173_v41 }
 0x66b   :  { %909 = vmatprep.subr.mxu1 %v2764_v4  ;;  %v810_v4 = vmul.f32 2.0, %v716_v61  ;;  %v3284_v61 = vld [vmem:[#allocation8 + $0xd8] sm:$0xff] }
 0x66c   :  { %910 = vmatpush1.msra.mxu1 %v2766_v5  ;;  %v809_v5 = vadd.f32 %v808_v2, %v3132_v57  ;;  %v3394_v2 = vld [vmem:[#allocation8 + $0x38] sm:$0xff] }
 0x66d   :  { %911 = vmatprep.subr.mxu1 %v2769_v6 }
 0x66e   :  { %912 = vmatpush1.msra.mxu1 %v2772_v7  ;;  %v811_v50 = vadd.f32 %v810_v4, %v809_v5  ;;  %v3397_v4 = vld [vmem:[#allocation8 + $0x30] sm:$0xff]  ;;  %v3400_v5 = vld [vmem:[#allocation8 + $0x28] sm:$0xff] }
 0x66f   :  { %913 = vmatprep.subr.mxu1 %v2776_v8 }
 0x670   :  { %914 = vmatpush1.msra.mxu1 %v2780_v10 }
 0x671   :  { %915 = vmatprep.subr.mxu1 %v2784_v12 }
 0x672   :  { %916 = vmatpush1.msra.mxu1 %v2787_v13 }
 0x673   :  { %917 = vmatprep.subr.mxu1 %v2790_v14 }
 0x674   :  { %918 = vmatpush1.msra.mxu1 %v2794_v15 }
 0x675   :  { %919 = vmatprep.subr.mxu1 %v2798_v16 }
 0x676   :  { %920 = vmatpush1.msra.mxu1 %v2802_v17 }
 0x677   :  { %921 = vmatprep.subr.mxu1 %v2806_v18 }
 0x678   :  { %922 = vmatpush1.msra.mxu1 %v2810_v19 }
 0x679   :  { %923 = vmatprep.subr.mxu1 %v2814_v20 }
 0x67a   :  { %924 = vmatpush1.msra.mxu1 %v2818_v21 }
 0x67b   :  { %925 = vmatprep.subr.mxu1 %v2822_v22 }
 0x67c   :  { %926 = vmatpush1.msra.mxu1 %v2826_v23 }
 0x67d   :  { %927 = vmatprep.subr.mxu1 %v2830_v24 }
 0x67e   :  { %928 = vmatpush1.msra.mxu1 %v2834_v25 }
 0x67f   :  { %929 = vmatprep.subr.mxu1 %v2838_v26 }
 0x680   :  { %930 = vmatpush1.msra.mxu1 %v2842_v27 }
 0x681   :  { %931 = vmatprep.subr.mxu1 %v2846_v28 }
 0x682   :  { %932 = vmatpush1.msra.mxu1 %v2850_v29 }
 0x683   :  { %933 = vmatprep.subr.mxu1 %v2854_v30 }
 0x684   :  { %934 = vmatpush1.msra.mxu1 %v2858_v31 }
 0x685   :  { %935 = vmatprep.subr.mxu1 %v2862_v32 }
 0x686   :  { %936 = vmatpush1.msra.mxu1 %v2866_v33 }
 0x687   :  { %937 = vmatprep.subr.mxu1 %v2870_v34 }
 0x688   :  { %938 = vmatpush1.msra.mxu1 %v2874_v35 }
 0x689   :  { %1068 = vmatprep.subr.mxu1 %v2755_v1 }
 0x729   :  { %v795_v6 = vpop.f32.mrf.mxu1 }
 0x72a   :  { %v804_v46 = vadd.f32 %v803_v63, %v795_v6  ;;  %v3373_v63 = vld [vmem:[#allocation8 + $0x70] sm:$0xff]  ;;  %v3403_v6 = vld [vmem:[#allocation8 + $0x20] sm:$0xff] }
 0x72b   :  { %v797_v49 = vpop.f32.mrf.mxu1 }
 0x72c   :  { %v806_v51 = vmul.f32 %v805_v55, %v804_v46  ;;  %v812_v52 = vadd.f32 %v811_v50, %v797_v49 }
 0x72e   :  { %v3256_v36 = vadd.f32 %v806_v51, %v3077_v48  ;;  %v813_v39 = vmul.f32 %v812_v52, %v805_v55 }
 0x730   :  { %v3259_v53 = vadd.f32 %v813_v39, %v3081_v60  ;;  %v821_v1 = vmul.f32 %v2901_v38, %v3256_v36 }
 0x732   :  { %v822_v57 = vmul.f32 %v2896_v37, %v3259_v53  ;;  %v815_v41 = vsel %vm127_vm1, %v3256_v36, %v3259_v53 }
 0x733   :  { %2527 = vst.msk [vmem:[%s4248_s7 + $0x10] sm:$0xff] %vm138_vm0, %v815_v41  ;;  %v1058_v41 = vstv %s2528_s14 }
 0x734   :  { %v823_v48 = vadd.f32 %v822_v57, %v821_v1  ;;  %v3458_v1 = vld [vmem:[#allocation8] sm:$0xff] }
 0x736   :  { %v824_v60 = vadd.f32 %v2912_v42, %v823_v48 }
 0x738   :  { %v825_v54 = vmax.f32 %v824_v60, 0.0 }
 0x73a   :  { %891 = vmatmul.mubr.f32.vlgmr.msra.gmra.mxu0 %v825_v54 }
 0x73b   :  { %988 = vmatpush1.msra.mxu0 %v3274_v56  ;;  %1051 = vmatprep.mubr.f32.mxu0 %v2698_v9 }
 0x73c   :  { %989 = vmatprep.subr.mxu0 %v3278_v59 }
 0x73d   :  { %990 = vmatpush1.msra.mxu0 %v3281_v58 }
 0x73e   :  { %991 = vmatprep.subr.mxu0 %v3284_v61 }
 0x73f   :  { %992 = vmatpush1.msra.mxu0 %v2772_v7  ;;  %v3314_v7 = vld [vmem:[#allocation8 + $0xf8] sm:$0xff] }
 0x740   :  { %993 = vmatprep.subr.mxu0 %v2776_v8  ;;  %v3317_v8 = vstv %s2529_s13 }
 0x741   :  { %994 = vmatpush1.msra.mxu0 %v2780_v10 }
 0x742   :  { %995 = vmatprep.subr.mxu0 %v2784_v12 }
 0x743   :  { %996 = vmatpush1.msra.mxu0 %v2787_v13 }
 0x744   :  { %997 = vmatprep.subr.mxu0 %v2790_v14 }
 0x745   :  { %998 = vmatpush1.msra.mxu0 %v2794_v15 }
 0x746   :  { %999 = vmatprep.subr.mxu0 %v2798_v16 }
 0x747   :  { %1000 = vmatpush1.msra.mxu0 %v2802_v17 }
 0x748   :  { %1001 = vmatprep.subr.mxu0 %v2806_v18 }
 0x749   :  { %1002 = vmatpush1.msra.mxu0 %v2810_v19 }
 0x74a   :  { %1003 = vmatprep.subr.mxu0 %v2814_v20 }
 0x74b   :  { %1004 = vmatpush1.msra.mxu0 %v2818_v21 }
 0x74c   :  { %1005 = vmatprep.subr.mxu0 %v2822_v22  ;;  %v3337_v22 = vld [vmem:[#allocation8 + $0xd0] sm:$0xff] }
 0x74d   :  { %1006 = vmatpush1.msra.mxu0 %v2826_v23  ;;  %v3340_v23 = vld [vmem:[#allocation8 + $0xc8] sm:$0xff] }
 0x74e   :  { %1007 = vmatprep.subr.mxu0 %v2830_v24  ;;  %v3343_v24 = vld [vmem:[#allocation8 + $0xc0] sm:$0xff] }
 0x74f   :  { %1008 = vmatpush1.msra.mxu0 %v2834_v25  ;;  %v3346_v25 = vld [vmem:[#allocation8 + $0xb8] sm:$0xff] }
 0x750   :  { %1009 = vmatprep.subr.mxu0 %v2838_v26  ;;  %v3349_v26 = vld [vmem:[#allocation8 + $0xb0] sm:$0xff] }
 0x751   :  { %1010 = vmatpush1.msra.mxu0 %v2842_v27  ;;  %v3352_v27 = vld [vmem:[#allocation8 + $0xa8] sm:$0xff] }
 0x752   :  { %1011 = vmatprep.subr.mxu0 %v2846_v28  ;;  %v3355_v28 = vld [vmem:[#allocation8 + $0xa0] sm:$0xff] }
 0x753   :  { %1012 = vmatpush1.msra.mxu0 %v2850_v29  ;;  %v3358_v29 = vld [vmem:[#allocation8 + $0x98] sm:$0xff] }
 0x754   :  { %1013 = vmatprep.subr.mxu0 %v2854_v30  ;;  %v3361_v30 = vld [vmem:[#allocation8 + $0x90] sm:$0xff] }
 0x755   :  { %1014 = vmatpush1.msra.mxu0 %v2858_v31  ;;  %v3364_v31 = vld [vmem:[#allocation8 + $0x88] sm:$0xff] }
 0x756   :  { %1015 = vmatprep.subr.mxu0 %v2862_v32 }
 0x757   :  { %1016 = vmatpush1.msra.mxu0 %v2866_v33 }
 0x758   :  { %1017 = vmatprep.subr.mxu0 %v2870_v34 }
 0x759   :  { %1018 = vmatpush1.msra.mxu0 %v2874_v35 }
 0x75a   :  { %1165 = vmatprep.subr.mxu0 %v3314_v7 }
 0x7fa   :  { %v3319_v10 = vpop.f32.mrf.mxu0 }
 0x7fb   :  { %v898_v12 = vmul.f32 %v3317_v8, %v3319_v10 }
 0x7fc   :  { %v3323_v13 = vpop.f32.mrf.mxu0 }
 0x7fd   :  { %v899_v14 = vadd.f32 %v898_v12, %v3256_v36  ;;  %v900_v15 = vmul.f32 %v3317_v8, %v3323_v13 }
 0x7ff   :  { %v901_v16 = vadd.f32 %v900_v15, %v3259_v53  ;;  %v902_v17 = vmul.f32 %v2901_v38, %v899_v14 }
 0x801   :  { %v903_v18 = vmul.f32 %v2896_v37, %v901_v16 }
 0x803   :  { %v904_v19 = vadd.f32 %v903_v18, %v902_v17  ;;  %v3468_v18 = vld [vmem:[%s4245_s4] ss:$0 sm:$0xff] }
 0x805   :  { %v905_v20 = vadd.f32 %v2912_v42, %v904_v19 }
 0x807   :  { %v906_v21 = vmax.f32 %v905_v20, 0.0 }
 0x809   :  { %972 = vmatmul.mubr.f32.vlgmr.msra.gmra.mxu1 %v906_v21 }
 0x80a   :  { %1069 = vmatpush1.msra.mxu1 %v3274_v56  ;;  %1132 = vmatprep.mubr.f32.mxu1 %v2698_v9 }
 0x80b   :  { %1070 = vmatprep.subr.mxu1 %v3278_v59 }
 0x80c   :  { %1071 = vmatpush1.msra.mxu1 %v3281_v58 }
 0x80d   :  { %1072 = vmatprep.subr.mxu1 %v3284_v61 }
 0x80e   :  { %1073 = vmatpush1.msra.mxu1 %v3337_v22 }
 0x80f   :  { %1074 = vmatprep.subr.mxu1 %v3340_v23 }
 0x810   :  { %1075 = vmatpush1.msra.mxu1 %v3343_v24 }
 0x811   :  { %1076 = vmatprep.subr.mxu1 %v3346_v25 }
 0x812   :  { %1077 = vmatpush1.msra.mxu1 %v3349_v26 }
 0x813   :  { %1078 = vmatprep.subr.mxu1 %v3352_v27 }
 0x814   :  { %1079 = vmatpush1.msra.mxu1 %v3355_v28 }
 0x815   :  { %1080 = vmatprep.subr.mxu1 %v3358_v29 }
 0x816   :  { %1081 = vmatpush1.msra.mxu1 %v3361_v30 }
 0x817   :  { %1082 = vmatprep.subr.mxu1 %v3364_v31 }
 0x818   :  { %1083 = vmatpush1.msra.mxu1 %v3367_v47 }
 0x819   :  { %1084 = vmatprep.subr.mxu1 %v3370_v62 }
 0x81a   :  { %1085 = vmatpush1.msra.mxu1 %v3373_v63 }
 0x81b   :  { %1086 = vmatprep.subr.mxu1 %v3376_v0 }
 0x81c   :  { %1087 = vmatpush1.msra.mxu1 %v3379_v3 }
 0x81d   :  { %1088 = vmatprep.subr.mxu1 %v3382_v40 }
 0x81e   :  { %1089 = vmatpush1.msra.mxu1 %v3385_v43 }
 0x81f   :  { %1090 = vmatprep.subr.mxu1 %v3388_v11 }
 0x820   :  { %1091 = vmatpush1.msra.mxu1 %v3391_v45 }
 0x821   :  { %1092 = vmatprep.subr.mxu1 %v3394_v2 }
 0x822   :  { %1093 = vmatpush1.msra.mxu1 %v3397_v4 }
 0x823   :  { %1094 = vmatprep.subr.mxu1 %v3400_v5 }
 0x824   :  { %1095 = vmatpush1.msra.mxu1 %v3403_v6 }
 0x825   :  { %1096 = vmatprep.subr.mxu1 %v2862_v32 }
 0x826   :  { %1097 = vmatpush1.msra.mxu1 %v2866_v33 }
 0x827   :  { %1098 = vmatprep.subr.mxu1 %v2870_v34 }
 0x828   :  { %1099 = vmatpush1.msra.mxu1 %v2874_v35 }
 0x829   :  { %1246 = vmatprep.subr.mxu1 %v3314_v7 }
 0x8c9   :  { %v973_v55 = vpop.f32.mrf.mxu1 }
 0x8ca   :  { %v978_v46 = vmul.f32 %v973_v55, %v3317_v8  ;;  %v1139_v57 = vmul.f32 2.0, %v973_v55  ;;  %v3480_v55 = vld [vmem:[%s4246_s5] ss:$0 sm:$0xff] }
 0x8cb   :  { %v3412_v50 = vpop.f32.mrf.mxu1 }
 0x8cc   :  { %v979_v49 = vadd.f32 %v978_v46, %v3256_v36  ;;  %v980_v51 = vmul.f32 %v3412_v50, %v3317_v8  ;;  %v1140_v60 = vadd.f32 %v1139_v57, %v3319_v10  ;;  %v3474_v10 = vld [vmem:[%s4245_s4 + $0x1] ss:$0 sm:$0xff] }
 0x8ce   :  { %v981_v32 = vadd.f32 %v980_v51, %v3259_v53  ;;  %v982_v33 = vmul.f32 %v2901_v38, %v979_v49  ;;  %v3452_v38 = vld [vmem:[#allocation8 + $0x10] sm:$0xff]  ;;  %v1147_v51 = vmul.f32 2.0, %v3412_v50 }
 0x8d0   :  { %v983_v34 = vmul.f32 %v2896_v37, %v981_v32  ;;  %v3449_v37 = vld [vmem:[#allocation8 + $0x18] sm:$0xff] }
 0x8d2   :  { %v984_v52 = vadd.f32 %v983_v34, %v982_v33  ;;  %v1148_v33 = vadd.f32 %v1147_v51, %v3323_v13 }
 0x8d4   :  { %v985_v35 = vadd.f32 %v2912_v42, %v984_v52  ;;  %v3455_v42 = vld [vmem:[#allocation8 + $0x8] sm:$0xff]  ;;  %v1144_v52 = vstv %s2530_s20 }
 0x8d6   :  { %v986_v39 = vmax.f32 %v985_v35, 0.0 }
 0x8d8   :  { %1052 = vmatmul.mubr.f32.vlgmr.msra.gmra.mxu0 %v986_v39 }
 0x8d9   :  { %1166 = vmatpush1.msra.mxu0 %v3274_v56  ;;  %1229 = vmatprep.mubr.f32.mxu0 %v2698_v9 }
 0x8da   :  { %1167 = vmatprep.subr.mxu0 %v3278_v59 }
 0x8db   :  { %1168 = vmatpush1.msra.mxu0 %v3281_v58 }
 0x8dc   :  { %1169 = vmatprep.subr.mxu0 %v3284_v61 }
 0x8dd   :  { %1170 = vmatpush1.msra.mxu0 %v3337_v22 }
 0x8de   :  { %1171 = vmatprep.subr.mxu0 %v3340_v23 }
 0x8df   :  { %1172 = vmatpush1.msra.mxu0 %v3343_v24 }
 0x8e0   :  { %1173 = vmatprep.subr.mxu0 %v3346_v25 }
 0x8e1   :  { %1174 = vmatpush1.msra.mxu0 %v3349_v26 }
 0x8e2   :  { %1175 = vmatprep.subr.mxu0 %v3352_v27 }
 0x8e3   :  { %1176 = vmatpush1.msra.mxu0 %v3355_v28 }
 0x8e4   :  { %1177 = vmatprep.subr.mxu0 %v3358_v29 }
 0x8e5   :  { %1178 = vmatpush1.msra.mxu0 %v3361_v30 }
 0x8e6   :  { %1179 = vmatprep.subr.mxu0 %v3364_v31 }
 0x8e7   :  { %1180 = vmatpush1.msra.mxu0 %v3367_v47 }
 0x8e8   :  { %1181 = vmatprep.subr.mxu0 %v3370_v62 }
 0x8e9   :  { %1182 = vmatpush1.msra.mxu0 %v3373_v63 }
 0x8ea   :  { %1183 = vmatprep.subr.mxu0 %v3376_v0 }
 0x8eb   :  { %1184 = vmatpush1.msra.mxu0 %v3379_v3 }
 0x8ec   :  { %1185 = vmatprep.subr.mxu0 %v3382_v40 }
 0x8ed   :  { %1186 = vmatpush1.msra.mxu0 %v3385_v43 }
 0x8ee   :  { %1187 = vmatprep.subr.mxu0 %v3388_v11 }
 0x8ef   :  { %1188 = vmatpush1.msra.mxu0 %v3391_v45 }
 0x8f0   :  { %1189 = vmatprep.subr.mxu0 %v3394_v2 }
 0x8f1   :  { %1190 = vmatpush1.msra.mxu0 %v3397_v4 }
 0x8f2   :  { %1191 = vmatprep.subr.mxu0 %v3400_v5 }
 0x8f3   :  { %1192 = vmatpush1.msra.mxu0 %v3403_v6 }
 0x8f4   :  { %1193 = vmatprep.subr.mxu0 %v3449_v37 }
 0x8f5   :  { %1194 = vmatpush1.msra.mxu0 %v3452_v38 }
 0x8f6   :  { %1195 = vmatprep.subr.mxu0 %v3455_v42 }
 0x8f7   :  { %1196 = vmatpush1.msra.mxu0 %v3458_v1 }
 0x8f8   :  { %1326 = vmatprep.subr.mxu0 %v3314_v7 }
 0x998   :  { %v1053_v48 = vpop.f32.mrf.mxu0 }
 0x999   :  { %v1059_v54 = vmul.f32 %v1058_v41, %v1053_v48  ;;  %v1141_v8 = vmul.f32 2.0, %v1053_v48 }
 0x99a   :  { %v1055_v12 = vpop.f32.mrf.mxu0 }
 0x99b   :  { %v1060_v14 = vadd.f32 %v1059_v54, %v3256_v36  ;;  %v1061_v15 = vmul.f32 %v1058_v41, %v1055_v12  ;;  %v1142_v16 = vadd.f32 %v1141_v8, %v1140_v60  ;;  %v1149_v32 = vmul.f32 2.0, %v1055_v12 }
 0x99d   :  { %v1062_v17 = vadd.f32 %v1061_v15, %v3259_v53  ;;  %v1063_v19 = vmul.f32 %v3468_v18, %v1060_v14  ;;  %v1150_v39 = vadd.f32 %v1149_v32, %v1148_v33  ;;  %v1236_v15 = vstv %s2533_s22 }
 0x99f   :  { %v1064_v20 = vmul.f32 %v3474_v10, %v1062_v17 }
 0x9a1   :  { %v1065_v21 = vadd.f32 %v1064_v20, %v1063_v19 }
 0x9a3   :  { %v1066_v46 = vadd.f32 %v3480_v55, %v1065_v21 }
 0x9a5   :  { %v1067_v49 = vmax.f32 %v1066_v46, 0.0 }
 0x9a7   :  { %1133 = vmatmul.mubr.f32.vlgmr.msra.gmra.mxu1 %v1067_v49 }
 0x9a8   :  { %1247 = vmatpush1.msra.mxu1 %v3274_v56  ;;  %1310 = vmatprep.mubr.f32.mxu1 %v2698_v9 }
 0x9a9   :  { %1248 = vmatprep.subr.mxu1 %v3278_v59 }
 0x9aa   :  { %1249 = vmatpush1.msra.mxu1 %v3281_v58 }
 0x9ab   :  { %1250 = vmatprep.subr.mxu1 %v3284_v61 }
 0x9ac   :  { %1251 = vmatpush1.msra.mxu1 %v3337_v22 }
 0x9ad   :  { %1252 = vmatprep.subr.mxu1 %v3340_v23 }
 0x9ae   :  { %1253 = vmatpush1.msra.mxu1 %v3343_v24 }
 0x9af   :  { %1254 = vmatprep.subr.mxu1 %v3346_v25 }
 0x9b0   :  { %1255 = vmatpush1.msra.mxu1 %v3349_v26 }
 0x9b1   :  { %1256 = vmatprep.subr.mxu1 %v3352_v27 }
 0x9b2   :  { %1257 = vmatpush1.msra.mxu1 %v3355_v28 }
 0x9b3   :  { %1258 = vmatprep.subr.mxu1 %v3358_v29 }
 0x9b4   :  { %1259 = vmatpush1.msra.mxu1 %v3361_v30 }
 0x9b5   :  { %1260 = vmatprep.subr.mxu1 %v3364_v31 }
 0x9b6   :  { %1261 = vmatpush1.msra.mxu1 %v3367_v47 }
 0x9b7   :  { %1262 = vmatprep.subr.mxu1 %v3370_v62 }
 0x9b8   :  { %1263 = vmatpush1.msra.mxu1 %v3373_v63 }
 0x9b9   :  { %1264 = vmatprep.subr.mxu1 %v3376_v0 }
 0x9ba   :  { %1265 = vmatpush1.msra.mxu1 %v3379_v3 }
 0x9bb   :  { %1266 = vmatprep.subr.mxu1 %v3382_v40 }
 0x9bc   :  { %1267 = vmatpush1.msra.mxu1 %v3385_v43 }
 0x9bd   :  { %1268 = vmatprep.subr.mxu1 %v3388_v11 }
 0x9be   :  { %1269 = vmatpush1.msra.mxu1 %v3391_v45 }
 0x9bf   :  { %1270 = vmatprep.subr.mxu1 %v3394_v2 }
 0x9c0   :  { %1271 = vmatpush1.msra.mxu1 %v3397_v4 }
 0x9c1   :  { %1272 = vmatprep.subr.mxu1 %v3400_v5 }
 0x9c2   :  { %1273 = vmatpush1.msra.mxu1 %v3403_v6 }
 0x9c3   :  { %1274 = vmatprep.subr.mxu1 %v3449_v37 }
 0x9c4   :  { %1275 = vmatpush1.msra.mxu1 %v3452_v38 }
 0x9c5   :  { %1276 = vmatprep.subr.mxu1 %v3455_v42 }
 0x9c6   :  { %1277 = vmatpush1.msra.mxu1 %v3458_v1 }
 0x9c7   :  { %1407 = vmatprep.subr.mxu1 %v3314_v7 }
 0xa67   :  { %v1134_v34 = vpop.f32.mrf.mxu1 }
 0xa68   :  { %v1143_v35 = vadd.f32 %v1142_v16, %v1134_v34 }
 0xa69   :  { %v1136_v57 = vpop.f32.mrf.mxu1 }
 0xa6a   :  { %v1145_v41 = vmul.f32 %v1144_v52, %v1143_v35  ;;  %v1151_v48 = vadd.f32 %v1150_v39, %v1136_v57 }
 0xa6c   :  { %v3519_v60 = vadd.f32 %v1145_v41, %v3256_v36  ;;  %v1152_v54 = vmul.f32 %v1151_v48, %v1144_v52 }
 0xa6e   :  { %v3522_v8 = vadd.f32 %v1152_v54, %v3259_v53  ;;  %v1160_v50 = vmul.f32 %v3468_v18, %v3519_v60 }
 0xa70   :  { %v1161_v13 = vmul.f32 %v3474_v10, %v3522_v8  ;;  %v1154_v12 = vsel %vm127_vm1, %v3519_v60, %v3522_v8 }
 0xa71   :  { %2531 = vst.msk [vmem:[%s4248_s7 + $0x18] sm:$0xff] %vm138_vm0, %v1154_v12 }
 0xa72   :  { %v1162_v36 = vadd.f32 %v1161_v13, %v1160_v50 }
 0xa74   :  { %v1163_v53 = vadd.f32 %v3480_v55, %v1162_v36 }
 0xa76   :  { %v1164_v14 = vmax.f32 %v1163_v53, 0.0 }
 0xa78   :  { %1230 = vmatmul.mubr.f32.vlgmr.msra.gmra.mxu0 %v1164_v14  ;;  %v1397_v14 = vstv %s2532_s3 }
 0xa79   :  { %1327 = vmatpush1.msra.mxu0 %v3274_v56  ;;  %1390 = vmatprep.mubr.f32.mxu0 %v2698_v9 }
 0xa7a   :  { %1328 = vmatprep.subr.mxu0 %v3278_v59 }
 0xa7b   :  { %1329 = vmatpush1.msra.mxu0 %v3281_v58 }
 0xa7c   :  { %1330 = vmatprep.subr.mxu0 %v3284_v61 }
 0xa7d   :  { %1331 = vmatpush1.msra.mxu0 %v3337_v22 }
 0xa7e   :  { %1332 = vmatprep.subr.mxu0 %v3340_v23 }
 0xa7f   :  { %1333 = vmatpush1.msra.mxu0 %v3343_v24 }
 0xa80   :  { %1334 = vmatprep.subr.mxu0 %v3346_v25 }
 0xa81   :  { %1335 = vmatpush1.msra.mxu0 %v3349_v26 }
 0xa82   :  { %1336 = vmatprep.subr.mxu0 %v3352_v27 }
 0xa83   :  { %1337 = vmatpush1.msra.mxu0 %v3355_v28 }
 0xa84   :  { %1338 = vmatprep.subr.mxu0 %v3358_v29 }
 0xa85   :  { %1339 = vmatpush1.msra.mxu0 %v3361_v30 }
 0xa86   :  { %1340 = vmatprep.subr.mxu0 %v3364_v31 }
 0xa87   :  { %1341 = vmatpush1.msra.mxu0 %v3367_v47 }
 0xa88   :  { %1342 = vmatprep.subr.mxu0 %v3370_v62 }
 0xa89   :  { %1343 = vmatpush1.msra.mxu0 %v3373_v63 }
 0xa8a   :  { %1344 = vmatprep.subr.mxu0 %v3376_v0 }
 0xa8b   :  { %1345 = vmatpush1.msra.mxu0 %v3379_v3 }
 0xa8c   :  { %1346 = vmatprep.subr.mxu0 %v3382_v40 }
 0xa8d   :  { %1347 = vmatpush1.msra.mxu0 %v3385_v43 }
 0xa8e   :  { %1348 = vmatprep.subr.mxu0 %v3388_v11 }
 0xa8f   :  { %1349 = vmatpush1.msra.mxu0 %v3391_v45 }
 0xa90   :  { %1350 = vmatprep.subr.mxu0 %v3394_v2 }
 0xa91   :  { %1351 = vmatpush1.msra.mxu0 %v3397_v4 }
 0xa92   :  { %1352 = vmatprep.subr.mxu0 %v3400_v5 }
 0xa93   :  { %1353 = vmatpush1.msra.mxu0 %v3403_v6 }
 0xa94   :  { %1354 = vmatprep.subr.mxu0 %v3449_v37 }
 0xa95   :  { %1355 = vmatpush1.msra.mxu0 %v3452_v38 }
 0xa96   :  { %1356 = vmatprep.subr.mxu0 %v3455_v42 }
 0xa97   :  { %1357 = vmatpush1.msra.mxu0 %v3458_v1 }
 0xa98   :  { %1504 = vmatprep.subr.mxu0 %v3314_v7 }
 0xb38   :  { %v3570_v16 = vpop.f32.mrf.mxu0 }
 0xb39   :  { %v1237_v17 = vmul.f32 %v1236_v15, %v3570_v16 }
 0xb3a   :  { %v3573_v19 = vpop.f32.mrf.mxu0 }
 0xb3b   :  { %v1238_v20 = vadd.f32 %v1237_v17, %v3519_v60  ;;  %v1239_v21 = vmul.f32 %v1236_v15, %v3573_v19 }
 0xb3d   :  { %v1240_v46 = vadd.f32 %v1239_v21, %v3522_v8  ;;  %v1241_v49 = vmul.f32 %v3468_v18, %v1238_v20 }
 0xb3f   :  { %v1242_v51 = vmul.f32 %v3474_v10, %v1240_v46 }
 0xb41   :  { %v1243_v32 = vadd.f32 %v1242_v51, %v1241_v49 }
 0xb43   :  { %v1244_v33 = vadd.f32 %v3480_v55, %v1243_v32 }
 0xb45   :  { %v1245_v34 = vmax.f32 %v1244_v33, 0.0 }
 0xb47   :  { %1311 = vmatmul.mubr.f32.vlgmr.msra.gmra.mxu1 %v1245_v34 }
 0xb48   :  { %1408 = vmatpush1.msra.mxu1 %v3274_v56  ;;  %1471 = vmatprep.mubr.f32.mxu1 %v2698_v9 }
 0xb49   :  { %1409 = vmatprep.subr.mxu1 %v3278_v59 }
 0xb4a   :  { %1410 = vmatpush1.msra.mxu1 %v3281_v58 }
 0xb4b   :  { %1411 = vmatprep.subr.mxu1 %v3284_v61 }
 0xb4c   :  { %1412 = vmatpush1.msra.mxu1 %v3337_v22 }
 0xb4d   :  { %1413 = vmatprep.subr.mxu1 %v3340_v23 }
 0xb4e   :  { %1414 = vmatpush1.msra.mxu1 %v3343_v24 }
 0xb4f   :  { %1415 = vmatprep.subr.mxu1 %v3346_v25 }
 0xb50   :  { %1416 = vmatpush1.msra.mxu1 %v3349_v26 }
 0xb51   :  { %1417 = vmatprep.subr.mxu1 %v3352_v27 }
 0xb52   :  { %1418 = vmatpush1.msra.mxu1 %v3355_v28 }
 0xb53   :  { %1419 = vmatprep.subr.mxu1 %v3358_v29 }
 0xb54   :  { %1420 = vmatpush1.msra.mxu1 %v3361_v30 }
 0xb55   :  { %1421 = vmatprep.subr.mxu1 %v3364_v31 }
 0xb56   :  { %1422 = vmatpush1.msra.mxu1 %v3367_v47 }
 0xb57   :  { %1423 = vmatprep.subr.mxu1 %v3370_v62 }
 0xb58   :  { %1424 = vmatpush1.msra.mxu1 %v3373_v63 }
 0xb59   :  { %1425 = vmatprep.subr.mxu1 %v3376_v0 }
 0xb5a   :  { %1426 = vmatpush1.msra.mxu1 %v3379_v3 }
 0xb5b   :  { %1427 = vmatprep.subr.mxu1 %v3382_v40 }
 0xb5c   :  { %1428 = vmatpush1.msra.mxu1 %v3385_v43 }
 0xb5d   :  { %1429 = vmatprep.subr.mxu1 %v3388_v11 }
 0xb5e   :  { %1430 = vmatpush1.msra.mxu1 %v3391_v45 }
 0xb5f   :  { %1431 = vmatprep.subr.mxu1 %v3394_v2 }
 0xb60   :  { %1432 = vmatpush1.msra.mxu1 %v3397_v4 }
 0xb61   :  { %1433 = vmatprep.subr.mxu1 %v3400_v5 }
 0xb62   :  { %1434 = vmatpush1.msra.mxu1 %v3403_v6 }
 0xb63   :  { %1435 = vmatprep.subr.mxu1 %v3449_v37 }
 0xb64   :  { %1436 = vmatpush1.msra.mxu1 %v3452_v38 }
 0xb65   :  { %1437 = vmatprep.subr.mxu1 %v3455_v42 }
 0xb66   :  { %1438 = vmatpush1.msra.mxu1 %v3458_v1 }
 0xb67   :  { %1585 = vmatprep.subr.mxu1 %v3314_v7 }
 0xc07   :  { %v1312_v52 = vpop.f32.mrf.mxu1 }
 0xc08   :  { %v1317_v35 = vmul.f32 %v1312_v52, %v1236_v15  ;;  %v1478_v53 = vmul.f32 2.0, %v1312_v52 }
 0xc09   :  { %v3614_v39 = vpop.f32.mrf.mxu1 }
 0xc0a   :  { %v1318_v57 = vadd.f32 %v1317_v35, %v3519_v60  ;;  %v1319_v41 = vmul.f32 %v3614_v39, %v1236_v15  ;;  %v1479_v17 = vadd.f32 %v1478_v53, %v3570_v16  ;;  %v1486_v16 = vmul.f32 2.0, %v3614_v39 }
 0xc0c   :  { %v1320_v48 = vadd.f32 %v1319_v41, %v3522_v8  ;;  %v1321_v54 = vmul.f32 %v3468_v18, %v1318_v57 }
 0xc0e   :  { %v1322_v50 = vmul.f32 %v3474_v10, %v1320_v48 }
 0xc10   :  { %v1323_v13 = vadd.f32 %v1322_v50, %v1321_v54  ;;  %v1487_v54 = vadd.f32 %v1486_v16, %v3573_v19 }
 0xc12   :  { %v1324_v12 = vadd.f32 %v3480_v55, %v1323_v13  ;;  %v1483_v13 = vstv %s2534_s23 }
 0xc14   :  { %v1325_v36 = vmax.f32 %v1324_v12, 0.0 }
 0xc16   :  { %1391 = vmatmul.mubr.f32.vlgmr.msra.gmra.mxu0 %v1325_v36 }
 0xc17   :  { %1505 = vmatpush1.msra.mxu0 %v3274_v56  ;;  %1568 = vmatprep.mubr.f32.mxu0 %v2698_v9 }
 0xc18   :  { %1506 = vmatprep.subr.mxu0 %v3278_v59 }
 0xc19   :  { %1507 = vmatpush1.msra.mxu0 %v3281_v58 }
 0xc1a   :  { %1508 = vmatprep.subr.mxu0 %v3284_v61 }
 0xc1b   :  { %1509 = vmatpush1.msra.mxu0 %v3337_v22 }
 0xc1c   :  { %1510 = vmatprep.subr.mxu0 %v3340_v23 }
 0xc1d   :  { %1511 = vmatpush1.msra.mxu0 %v3343_v24 }
 0xc1e   :  { %1512 = vmatprep.subr.mxu0 %v3346_v25 }
 0xc1f   :  { %1513 = vmatpush1.msra.mxu0 %v3349_v26 }
 0xc20   :  { %1514 = vmatprep.subr.mxu0 %v3352_v27 }
 0xc21   :  { %1515 = vmatpush1.msra.mxu0 %v3355_v28 }
 0xc22   :  { %1516 = vmatprep.subr.mxu0 %v3358_v29 }
 0xc23   :  { %1517 = vmatpush1.msra.mxu0 %v3361_v30 }
 0xc24   :  { %1518 = vmatprep.subr.mxu0 %v3364_v31 }
 0xc25   :  { %1519 = vmatpush1.msra.mxu0 %v3367_v47 }
 0xc26   :  { %1520 = vmatprep.subr.mxu0 %v3370_v62 }
 0xc27   :  { %1521 = vmatpush1.msra.mxu0 %v3373_v63 }
 0xc28   :  { %1522 = vmatprep.subr.mxu0 %v3376_v0 }
 0xc29   :  { %1523 = vmatpush1.msra.mxu0 %v3379_v3 }
 0xc2a   :  { %1524 = vmatprep.subr.mxu0 %v3382_v40 }
 0xc2b   :  { %1525 = vmatpush1.msra.mxu0 %v3385_v43 }
 0xc2c   :  { %1526 = vmatprep.subr.mxu0 %v3388_v11 }
 0xc2d   :  { %1527 = vmatpush1.msra.mxu0 %v3391_v45 }
 0xc2e   :  { %1528 = vmatprep.subr.mxu0 %v3394_v2 }
 0xc2f   :  { %1529 = vmatpush1.msra.mxu0 %v3397_v4 }
 0xc30   :  { %1530 = vmatprep.subr.mxu0 %v3400_v5 }
 0xc31   :  { %1531 = vmatpush1.msra.mxu0 %v3403_v6 }
 0xc32   :  { %1532 = vmatprep.subr.mxu0 %v3449_v37 }
 0xc33   :  { %1533 = vmatpush1.msra.mxu0 %v3452_v38 }
 0xc34   :  { %1534 = vmatprep.subr.mxu0 %v3455_v42 }
 0xc35   :  { %1535 = vmatpush1.msra.mxu0 %v3458_v1 }
 0xc36   :  { %1665 = vmatprep.subr.mxu0 %v3314_v7 }
 0xcd6   :  { %v1392_v15 = vpop.f32.mrf.mxu0 }
 0xcd7   :  { %v1398_v20 = vmul.f32 %v1397_v14, %v1392_v15  ;;  %v1480_v21 = vmul.f32 2.0, %v1392_v15 }
 0xcd8   :  { %v1394_v46 = vpop.f32.mrf.mxu0 }
 0xcd9   :  { %v1399_v49 = vadd.f32 %v1398_v20, %v3519_v60  ;;  %v1400_v51 = vmul.f32 %v1397_v14, %v1394_v46  ;;  %v1481_v32 = vadd.f32 %v1480_v21, %v1479_v17  ;;  %v1488_v48 = vmul.f32 2.0, %v1394_v46 }
 0xcdb   :  { %v1401_v33 = vadd.f32 %v1400_v51, %v3522_v8  ;;  %v1402_v34 = vmul.f32 %v3468_v18, %v1399_v49  ;;  %v1489_v36 = vadd.f32 %v1488_v48, %v1487_v54  ;;  %v1575_v51 = vstv %s2537_s26 }
 0xcdd   :  { %v1403_v35 = vmul.f32 %v3474_v10, %v1401_v33 }
 0xcdf   :  { %v1404_v57 = vadd.f32 %v1403_v35, %v1402_v34 }
 0xce1   :  { %v1405_v52 = vadd.f32 %v3480_v55, %v1404_v57 }
 0xce3   :  { %v1406_v41 = vmax.f32 %v1405_v52, 0.0 }
 0xce5   :  { %1472 = vmatmul.mubr.f32.vlgmr.msra.gmra.mxu1 %v1406_v41 }
 0xce6   :  { %1586 = vmatpush1.msra.mxu1 %v3274_v56  ;;  %1649 = vmatprep.mubr.f32.mxu1 %v2698_v9 }
 0xce7   :  { %1587 = vmatprep.subr.mxu1 %v3278_v59 }
 0xce8   :  { %1588 = vmatpush1.msra.mxu1 %v3281_v58 }
 0xce9   :  { %1589 = vmatprep.subr.mxu1 %v3284_v61 }
 0xcea   :  { %1590 = vmatpush1.msra.mxu1 %v3337_v22 }
 0xceb   :  { %1591 = vmatprep.subr.mxu1 %v3340_v23 }
 0xcec   :  { %1592 = vmatpush1.msra.mxu1 %v3343_v24 }
 0xced   :  { %1593 = vmatprep.subr.mxu1 %v3346_v25 }
 0xcee   :  { %1594 = vmatpush1.msra.mxu1 %v3349_v26 }
 0xcef   :  { %1595 = vmatprep.subr.mxu1 %v3352_v27 }
 0xcf0   :  { %1596 = vmatpush1.msra.mxu1 %v3355_v28 }
 0xcf1   :  { %1597 = vmatprep.subr.mxu1 %v3358_v29 }
 0xcf2   :  { %1598 = vmatpush1.msra.mxu1 %v3361_v30 }
 0xcf3   :  { %1599 = vmatprep.subr.mxu1 %v3364_v31 }
 0xcf4   :  { %1600 = vmatpush1.msra.mxu1 %v3367_v47 }
 0xcf5   :  { %1601 = vmatprep.subr.mxu1 %v3370_v62 }
 0xcf6   :  { %1602 = vmatpush1.msra.mxu1 %v3373_v63 }
 0xcf7   :  { %1603 = vmatprep.subr.mxu1 %v3376_v0 }
 0xcf8   :  { %1604 = vmatpush1.msra.mxu1 %v3379_v3 }
 0xcf9   :  { %1605 = vmatprep.subr.mxu1 %v3382_v40 }
 0xcfa   :  { %1606 = vmatpush1.msra.mxu1 %v3385_v43 }
 0xcfb   :  { %1607 = vmatprep.subr.mxu1 %v3388_v11 }
 0xcfc   :  { %1608 = vmatpush1.msra.mxu1 %v3391_v45 }
 0xcfd   :  { %1609 = vmatprep.subr.mxu1 %v3394_v2 }
 0xcfe   :  { %1610 = vmatpush1.msra.mxu1 %v3397_v4 }
 0xcff   :  { %1611 = vmatprep.subr.mxu1 %v3400_v5 }
 0xd00   :  { %1612 = vmatpush1.msra.mxu1 %v3403_v6 }
 0xd01   :  { %1613 = vmatprep.subr.mxu1 %v3449_v37 }
 0xd02   :  { %1614 = vmatpush1.msra.mxu1 %v3452_v38 }
 0xd03   :  { %1615 = vmatprep.subr.mxu1 %v3455_v42 }
 0xd04   :  { %1616 = vmatpush1.msra.mxu1 %v3458_v1 }
 0xd05   :  { %1746 = vmatprep.subr.mxu1 %v3314_v7 }
 0xda5   :  { %v1473_v50 = vpop.f32.mrf.mxu1 }
 0xda6   :  { %v1482_v12 = vadd.f32 %v1481_v32, %v1473_v50 }
 0xda7   :  { %v1475_v53 = vpop.f32.mrf.mxu1 }
 0xda8   :  { %v1484_v14 = vmul.f32 %v1483_v13, %v1482_v12  ;;  %v1490_v15 = vadd.f32 %v1489_v36, %v1475_v53 }
 0xdaa   :  { %v3697_v17 = vadd.f32 %v1484_v14, %v3519_v60  ;;  %v1491_v20 = vmul.f32 %v1490_v15, %v1483_v13 }
 0xdac   :  { %v3700_v21 = vadd.f32 %v1491_v20, %v3522_v8  ;;  %v1499_v39 = vmul.f32 %v3468_v18, %v3697_v17 }
 0xdae   :  { %v1500_v19 = vmul.f32 %v3474_v10, %v3700_v21  ;;  %v1493_v46 = vsel %vm127_vm1, %v3697_v17, %v3700_v21 }
 0xdaf   :  { %2535 = vst.msk [vmem:[%s4248_s7 + $0x20] sm:$0xff] %vm138_vm0, %v1493_v46 }
 0xdb0   :  { %v1501_v60 = vadd.f32 %v1500_v19, %v1499_v39 }
 0xdb2   :  { %v1502_v8 = vadd.f32 %v3480_v55, %v1501_v60 }
 0xdb4   :  { %v1503_v49 = vmax.f32 %v1502_v8, 0.0 }
 0xdb6   :  { %1569 = vmatmul.mubr.f32.vlgmr.msra.gmra.mxu0 %v1503_v49 }
 0xdb7   :  { %1666 = vmatpush1.msra.mxu0 %v3274_v56  ;;  %1729 = vmatprep.mubr.f32.mxu0 %v2698_v9 }
 0xdb8   :  { %1667 = vmatprep.subr.mxu0 %v3278_v59 }
 0xdb9   :  { %1668 = vmatpush1.msra.mxu0 %v3281_v58 }
 0xdba   :  { %1669 = vmatprep.subr.mxu0 %v3284_v61 }
 0xdbb   :  { %1670 = vmatpush1.msra.mxu0 %v3337_v22 }
 0xdbc   :  { %1671 = vmatprep.subr.mxu0 %v3340_v23 }
 0xdbd   :  { %1672 = vmatpush1.msra.mxu0 %v3343_v24 }
 0xdbe   :  { %1673 = vmatprep.subr.mxu0 %v3346_v25 }
 0xdbf   :  { %1674 = vmatpush1.msra.mxu0 %v3349_v26 }
 0xdc0   :  { %1675 = vmatprep.subr.mxu0 %v3352_v27 }
 0xdc1   :  { %1676 = vmatpush1.msra.mxu0 %v3355_v28 }
 0xdc2   :  { %1677 = vmatprep.subr.mxu0 %v3358_v29 }
 0xdc3   :  { %1678 = vmatpush1.msra.mxu0 %v3361_v30 }
 0xdc4   :  { %1679 = vmatprep.subr.mxu0 %v3364_v31 }
 0xdc5   :  { %1680 = vmatpush1.msra.mxu0 %v3367_v47 }
 0xdc6   :  { %1681 = vmatprep.subr.mxu0 %v3370_v62 }
 0xdc7   :  { %1682 = vmatpush1.msra.mxu0 %v3373_v63 }
 0xdc8   :  { %1683 = vmatprep.subr.mxu0 %v3376_v0 }
 0xdc9   :  { %1684 = vmatpush1.msra.mxu0 %v3379_v3 }
 0xdca   :  { %1685 = vmatprep.subr.mxu0 %v3382_v40 }
 0xdcb   :  { %1686 = vmatpush1.msra.mxu0 %v3385_v43 }
 0xdcc   :  { %1687 = vmatprep.subr.mxu0 %v3388_v11 }
 0xdcd   :  { %1688 = vmatpush1.msra.mxu0 %v3391_v45 }
 0xdce   :  { %1689 = vmatprep.subr.mxu0 %v3394_v2 }
 0xdcf   :  { %1690 = vmatpush1.msra.mxu0 %v3397_v4 }
 0xdd0   :  { %1691 = vmatprep.subr.mxu0 %v3400_v5 }
 0xdd1   :  { %1692 = vmatpush1.msra.mxu0 %v3403_v6 }
 0xdd2   :  { %1693 = vmatprep.subr.mxu0 %v3449_v37 }
 0xdd3   :  { %1694 = vmatpush1.msra.mxu0 %v3452_v38 }
 0xdd4   :  { %1695 = vmatprep.subr.mxu0 %v3455_v42 }
 0xdd5   :  { %1696 = vmatpush1.msra.mxu0 %v3458_v1 }
 0xdd6   :  { %1843 = vmatprep.subr.mxu0 %v3314_v7 }
 0xe76   :  { %v3748_v32 = vpop.f32.mrf.mxu0 }
 0xe77   :  { %v1576_v33 = vmul.f32 %v1575_v51, %v3748_v32 }
 0xe78   :  { %v3751_v34 = vpop.f32.mrf.mxu0 }
 0xe79   :  { %v1577_v35 = vadd.f32 %v1576_v33, %v3697_v17  ;;  %v1578_v57 = vmul.f32 %v1575_v51, %v3751_v34 }
 0xe7b   :  { %v1579_v52 = vadd.f32 %v1578_v57, %v3700_v21  ;;  %v1580_v41 = vmul.f32 %v3468_v18, %v1577_v35 }
 0xe7d   :  { %v1581_v16 = vmul.f32 %v3474_v10, %v1579_v52 }
 0xe7f   :  { %v1582_v48 = vadd.f32 %v1581_v16, %v1580_v41 }
 0xe81   :  { %v1583_v54 = vadd.f32 %v3480_v55, %v1582_v48 }
 0xe83   :  { %v1584_v50 = vmax.f32 %v1583_v54, 0.0 }
 0xe85   :  { %1650 = vmatmul.mubr.f32.vlgmr.msra.gmra.mxu1 %v1584_v50  ;;  %v3839_v50 = vld [vmem:[#allocation8 + $0xf0] sm:$0xff] }
 0xe86   :  { %1747 = vmatpush1.msra.mxu1 %v3274_v56  ;;  %1810 = vmatprep.mubr.f32.mxu1 %v2698_v9 }
 0xe87   :  { %1748 = vmatprep.subr.mxu1 %v3278_v59 }
 0xe88   :  { %1749 = vmatpush1.msra.mxu1 %v3281_v58 }
 0xe89   :  { %1750 = vmatprep.subr.mxu1 %v3284_v61 }
 0xe8a   :  { %1751 = vmatpush1.msra.mxu1 %v3337_v22 }
 0xe8b   :  { %1752 = vmatprep.subr.mxu1 %v3340_v23 }
 0xe8c   :  { %1753 = vmatpush1.msra.mxu1 %v3343_v24 }
 0xe8d   :  { %1754 = vmatprep.subr.mxu1 %v3346_v25 }
 0xe8e   :  { %1755 = vmatpush1.msra.mxu1 %v3349_v26 }
 0xe8f   :  { %1756 = vmatprep.subr.mxu1 %v3352_v27 }
 0xe90   :  { %1757 = vmatpush1.msra.mxu1 %v3355_v28 }
 0xe91   :  { %1758 = vmatprep.subr.mxu1 %v3358_v29 }
 0xe92   :  { %1759 = vmatpush1.msra.mxu1 %v3361_v30 }
 0xe93   :  { %1760 = vmatprep.subr.mxu1 %v3364_v31 }
 0xe94   :  { %1761 = vmatpush1.msra.mxu1 %v3367_v47 }
 0xe95   :  { %1762 = vmatprep.subr.mxu1 %v3370_v62 }
 0xe96   :  { %1763 = vmatpush1.msra.mxu1 %v3373_v63 }
 0xe97   :  { %1764 = vmatprep.subr.mxu1 %v3376_v0 }
 0xe98   :  { %1765 = vmatpush1.msra.mxu1 %v3379_v3 }
 0xe99   :  { %1766 = vmatprep.subr.mxu1 %v3382_v40 }
 0xe9a   :  { %1767 = vmatpush1.msra.mxu1 %v3385_v43 }
 0xe9b   :  { %1768 = vmatprep.subr.mxu1 %v3388_v11 }
 0xe9c   :  { %1769 = vmatpush1.msra.mxu1 %v3391_v45 }
 0xe9d   :  { %1770 = vmatprep.subr.mxu1 %v3394_v2 }
 0xe9e   :  { %1771 = vmatpush1.msra.mxu1 %v3397_v4 }
 0xe9f   :  { %1772 = vmatprep.subr.mxu1 %v3400_v5 }
 0xea0   :  { %1773 = vmatpush1.msra.mxu1 %v3403_v6 }
 0xea1   :  { %1774 = vmatprep.subr.mxu1 %v3449_v37 }
 0xea2   :  { %1775 = vmatpush1.msra.mxu1 %v3452_v38 }
 0xea3   :  { %1776 = vmatprep.subr.mxu1 %v3455_v42 }
 0xea4   :  { %1777 = vmatpush1.msra.mxu1 %v3458_v1 }
 0xea5   :  { %1924 = vmatprep.subr.mxu1 %v3314_v7 }
 0xf45   :  { %v1651_v13 = vpop.f32.mrf.mxu1 }
 0xf46   :  { %v1656_v12 = vmul.f32 %v1651_v13, %v1575_v51 }
 0xf47   :  { %v3792_v36 = vpop.f32.mrf.mxu1 }
 0xf48   :  { %v1657_v53 = vadd.f32 %v1656_v12, %v3697_v17  ;;  %v1658_v14 = vmul.f32 %v3792_v36, %v1575_v51  ;;  %v3849_v12 = vld [vmem:[#allocation8 + $0xd8] sm:$0xff] }
 0xf4a   :  { %v1659_v15 = vadd.f32 %v1658_v14, %v3700_v21  ;;  %v1660_v20 = vmul.f32 %v3468_v18, %v1657_v53  ;;  %v3929_v53 = vld [vmem:[#allocation8 + $0x98] sm:$0xff]  ;;  %v3932_v14 = vld [vmem:[#allocation8 + $0x90] sm:$0xff] }
 0xf4c   :  { %v1661_v39 = vmul.f32 %v3474_v10, %v1659_v15  ;;  %v3935_v15 = vld [vmem:[#allocation8 + $0x88] sm:$0xff] }
 0xf4e   :  { %v1662_v19 = vadd.f32 %v1661_v39, %v1660_v20  ;;  %v3938_v20 = vld [vmem:[#allocation8 + $0x80] sm:$0xff]  ;;  %v3941_v39 = vld [vmem:[#allocation8 + $0x78] sm:$0xff] }
 0xf50   :  { %v1663_v46 = vadd.f32 %v3480_v55, %v1662_v19  ;;  %v3944_v19 = vld [vmem:[#allocation8 + $0x70] sm:$0xff] }
 0xf52   :  { %v1664_v60 = vmax.f32 %v1663_v46, 0.0  ;;  %v3947_v46 = vld [vmem:[#allocation8 + $0x68] sm:$0xff] }
 0xf54   :  { %1730 = vmatmul.mubr.f32.vlgmr.msra.gmra.mxu0 %v1664_v60  ;;  %v3950_v60 = vld [vmem:[#allocation8 + $0x60] sm:$0xff] }
 0xf55   :  { %1844 = vmatpush1.msra.mxu0 %v3274_v56  ;;  %1907 = vmatprep.mubr.f32.mxu0 %v2698_v9  ;;  %v1817_v56 = vmul.f32 2.0, %v1651_v13  ;;  %v3846_v13 = vld [vmem:[#allocation8 + $0xe0] sm:$0xff] }
 0xf56   :  { %1845 = vmatprep.subr.mxu0 %v3278_v59  ;;  %v1736_v59 = vstv %s2536_s27 }
 0xf57   :  { %1846 = vmatpush1.msra.mxu0 %v3281_v58 }
 0xf58   :  { %1847 = vmatprep.subr.mxu0 %v3284_v61  ;;  %v1818_v61 = vadd.f32 %v1817_v56, %v3748_v32  ;;  %v3843_v32 = vld [vmem:[#allocation8 + $0xe8] sm:$0xff]  ;;  %v3953_v56 = vld [vmem:[#allocation8 + $0x58] sm:$0xff] }
 0xf59   :  { %1848 = vmatpush1.msra.mxu0 %v3337_v22 }
 0xf5a   :  { %1849 = vmatprep.subr.mxu0 %v3340_v23 }
 0xf5b   :  { %1850 = vmatpush1.msra.mxu0 %v3343_v24 }
 0xf5c   :  { %1851 = vmatprep.subr.mxu0 %v3346_v25 }
 0xf5d   :  { %1852 = vmatpush1.msra.mxu0 %v3349_v26 }
 0xf5e   :  { %1853 = vmatprep.subr.mxu0 %v3352_v27 }
 0xf5f   :  { %1854 = vmatpush1.msra.mxu0 %v3355_v28 }
 0xf60   :  { %1855 = vmatprep.subr.mxu0 %v3358_v29 }
 0xf61   :  { %1856 = vmatpush1.msra.mxu0 %v3361_v30 }
 0xf62   :  { %1857 = vmatprep.subr.mxu0 %v3364_v31 }
 0xf63   :  { %1858 = vmatpush1.msra.mxu0 %v3367_v47 }
 0xf64   :  { %1859 = vmatprep.subr.mxu0 %v3370_v62 }
 0xf65   :  { %1860 = vmatpush1.msra.mxu0 %v3373_v63 }
 0xf66   :  { %1861 = vmatprep.subr.mxu0 %v3376_v0 }
 0xf67   :  { %1862 = vmatpush1.msra.mxu0 %v3379_v3 }
 0xf68   :  { %1863 = vmatprep.subr.mxu0 %v3382_v40 }
 0xf69   :  { %1864 = vmatpush1.msra.mxu0 %v3385_v43 }
 0xf6a   :  { %1865 = vmatprep.subr.mxu0 %v3388_v11 }
 0xf6b   :  { %1866 = vmatpush1.msra.mxu0 %v3391_v45 }
 0xf6c   :  { %1867 = vmatprep.subr.mxu0 %v3394_v2 }
 0xf6d   :  { %1868 = vmatpush1.msra.mxu0 %v3397_v4 }
 0xf6e   :  { %1869 = vmatprep.subr.mxu0 %v3400_v5 }
 0xf6f   :  { %1870 = vmatpush1.msra.mxu0 %v3403_v6 }
 0xf70   :  { %1871 = vmatprep.subr.mxu0 %v3449_v37 }
 0xf71   :  { %1872 = vmatpush1.msra.mxu0 %v3452_v38 }
 0xf72   :  { %1873 = vmatprep.subr.mxu0 %v3455_v42 }
 0xf73   :  { %1874 = vmatpush1.msra.mxu0 %v3458_v1 }
 0xf74   :  { %2004 = vmatprep.subr.mxu0 %v3314_v7 }
0x1014   :  { %v1731_v58 = vpop.f32.mrf.mxu0 }
0x1015   :  { %v1737_v8 = vmul.f32 %v1736_v59, %v1731_v58  ;;  %v1819_v49 = vmul.f32 2.0, %v1731_v58  ;;  %v3959_v58 = vld [vmem:[#allocation8 + $0x48] sm:$0xff] }
0x1016   :  { %v1733_v51 = vpop.f32.mrf.mxu0 }
0x1017   :  { %v1738_v33 = vadd.f32 %v1737_v8, %v3697_v17  ;;  %v1739_v35 = vmul.f32 %v1736_v59, %v1733_v51  ;;  %v1820_v57 = vadd.f32 %v1819_v49, %v1818_v61  ;;  %v3956_v59 = vld [vmem:[#allocation8 + $0x50] sm:$0xff]  ;;  %v3962_v61 = vld [vmem:[#allocation8 + $0x40] sm:$0xff]  ;;  %v3965_v8 = vld [vmem:[#allocation8 + $0x38] sm:$0xff] }
0x1018   :  { %v3968_v49 = vld [vmem:[#allocation8 + $0x30] sm:$0xff] }
0x1019   :  { %v1740_v52 = vadd.f32 %v1739_v35, %v3700_v21  ;;  %v1741_v41 = vmul.f32 %v3468_v18, %v1738_v33  ;;  %v3974_v33 = vld [vmem:[#allocation8 + $0x20] sm:$0xff]  ;;  %v1914_v35 = vstv %s2541_s8 }
0x101b   :  { %v1742_v16 = vmul.f32 %v3474_v10, %v1740_v52 }
0x101d   :  { %v1743_v7 = vadd.f32 %v1742_v16, %v1741_v41 }
0x101f   :  { %v1744_v48 = vadd.f32 %v3480_v55, %v1743_v7 }
0x1021   :  { %v1745_v54 = vmax.f32 %v1744_v48, 0.0 }
0x1023   :  { %1811 = vmatmul.mubr.f32.vlgmr.msra.gmra.mxu1 %v1745_v54 }
0x1024   :  { %1925 = vmatpush1.msra.mxu1 %v3839_v50  ;;  %1988 = vmatprep.mubr.f32.mxu1 %v2698_v9 }
0x1025   :  { %1926 = vmatprep.subr.mxu1 %v3843_v32 }
0x1026   :  { %1927 = vmatpush1.msra.mxu1 %v3846_v13 }
0x1027   :  { %1928 = vmatprep.subr.mxu1 %v3849_v12 }
0x1028   :  { %1929 = vmatpush1.msra.mxu1 %v3337_v22  ;;  %v3879_v22 = vld [vmem:[#allocation8 + $0xf8] sm:$0xff] }
0x1029   :  { %1930 = vmatprep.subr.mxu1 %v3340_v23  ;;  %v1825_v23 = vmul.f32 2.0, %v3792_v36  ;;  %v3926_v36 = vld [vmem:[#allocation8 + $0xa0] sm:$0xff] }
0x102a   :  { %1931 = vmatpush1.msra.mxu1 %v3343_v24  ;;  %v1827_v24 = vmul.f32 2.0, %v1733_v51  ;;  %v3971_v51 = vld [vmem:[#allocation8 + $0x28] sm:$0xff] }
0x102b   :  { %1932 = vmatprep.subr.mxu1 %v3346_v25  ;;  %v1826_v25 = vadd.f32 %v1825_v23, %v3751_v34  ;;  %v3923_v34 = vld [vmem:[#allocation8 + $0xa8] sm:$0xff]  ;;  %v4030_v23 = vld [vmem:[#allocation8] sm:$0xff] }
0x102c   :  { %1933 = vmatpush1.msra.mxu1 %v3349_v26 }
0x102d   :  { %1934 = vmatprep.subr.mxu1 %v3352_v27  ;;  %v1822_v27 = vstv %s2538_s28 }
0x102e   :  { %1935 = vmatpush1.msra.mxu1 %v3355_v28 }
0x102f   :  { %1936 = vmatprep.subr.mxu1 %v3358_v29  ;;  %v1828_v29 = vadd.f32 %v1827_v24, %v1826_v25 }
0x1030   :  { %1937 = vmatpush1.msra.mxu1 %v3361_v30 }
0x1031   :  { %1938 = vmatprep.subr.mxu1 %v3364_v31 }
0x1032   :  { %1939 = vmatpush1.msra.mxu1 %v3367_v47 }
0x1033   :  { %1940 = vmatprep.subr.mxu1 %v3370_v62 }
0x1034   :  { %1941 = vmatpush1.msra.mxu1 %v3373_v63 }
0x1035   :  { %1942 = vmatprep.subr.mxu1 %v3376_v0 }
0x1036   :  { %1943 = vmatpush1.msra.mxu1 %v3379_v3 }
0x1037   :  { %1944 = vmatprep.subr.mxu1 %v3382_v40 }
0x1038   :  { %1945 = vmatpush1.msra.mxu1 %v3385_v43 }
0x1039   :  { %1946 = vmatprep.subr.mxu1 %v3388_v11 }
0x103a   :  { %1947 = vmatpush1.msra.mxu1 %v3391_v45 }
0x103b   :  { %1948 = vmatprep.subr.mxu1 %v3394_v2 }
0x103c   :  { %1949 = vmatpush1.msra.mxu1 %v3397_v4  ;;  %v3908_v4 = vld [vmem:[#allocation8 + $0xd0] sm:$0xff] }
0x103d   :  { %1950 = vmatprep.subr.mxu1 %v3400_v5  ;;  %v3911_v5 = vld [vmem:[#allocation8 + $0xc8] sm:$0xff] }
0x103e   :  { %1951 = vmatpush1.msra.mxu1 %v3403_v6  ;;  %v3914_v6 = vld [vmem:[#allocation8 + $0xc0] sm:$0xff] }
0x103f   :  { %1952 = vmatprep.subr.mxu1 %v3449_v37 }
0x1040   :  { %1953 = vmatpush1.msra.mxu1 %v3452_v38 }
0x1041   :  { %1954 = vmatprep.subr.mxu1 %v3455_v42 }
0x1042   :  { %1955 = vmatpush1.msra.mxu1 %v3458_v1 }
0x1043   :  { %2085 = vmatprep.subr.mxu1 %v3879_v22 }
0x10e3   :  { %v1812_v26 = vpop.f32.mrf.mxu1 }
0x10e4   :  { %v1821_v28 = vadd.f32 %v1820_v57, %v1812_v26 }
0x10e5   :  { %v1814_v30 = vpop.f32.mrf.mxu1 }
0x10e6   :  { %v1823_v31 = vmul.f32 %v1822_v27, %v1821_v28  ;;  %v1829_v47 = vadd.f32 %v1828_v29, %v1814_v30  ;;  %v4042_v30 = vld [vmem:[%s4245_s4] ss:$0 sm:$0xff] }
0x10e8   :  { %v3885_v62 = vadd.f32 %v1823_v31, %v3697_v17  ;;  %v1830_v63 = vmul.f32 %v1829_v47, %v1822_v27  ;;  %v3917_v17 = vld [vmem:[#allocation8 + $0xb8] sm:$0xff]  ;;  %v4048_v47 = vld [vmem:[%s4245_s4 + $0x1] ss:$0 sm:$0xff]  ;;  %s2540_s4 = sld [smem:[#allocation2 + $0x5]] }
0x10ea   :  { %v3888_v0 = vadd.f32 %v1830_v63, %v3700_v21  ;;  %v1838_v3 = vmul.f32 %v3468_v18, %v3885_v62  ;;  %v3920_v21 = vld [vmem:[#allocation8 + $0xb0] sm:$0xff] }
0x10ec   :  { %v1839_v40 = vmul.f32 %v3474_v10, %v3888_v0  ;;  %v1832_v43 = vsel %vm127_vm1, %v3885_v62, %v3888_v0 }
0x10ed   :  { %2539 = vst.msk [vmem:[%s4248_s7 + $0x28] sm:$0xff] %vm138_vm0, %v1832_v43 }
0x10ee   :  { %v1840_v11 = vadd.f32 %v1839_v40, %v1838_v3  ;;  %v4054_v40 = vld [vmem:[%s4246_s5] ss:$0 sm:$0xff]  ;;  %s2542_s5 = sld [smem:[#allocation7 + $0x5]] }
0x10f0   :  { %v1841_v45 = vadd.f32 %v3480_v55, %v1840_v11 }
0x10f2   :  { %v1842_v2 = vmax.f32 %v1841_v45, 0.0 }
0x10f4   :  { %1908 = vmatmul.mubr.f32.vlgmr.msra.gmra.mxu0 %v1842_v2  ;;  %v2075_v2 = vstv %s2540_s4 }
0x10f5   :  { %2005 = vmatpush1.msra.mxu0 %v3839_v50  ;;  %2068 = vmatprep.mubr.f32.mxu0 %v2698_v9 }
0x10f6   :  { %2006 = vmatprep.subr.mxu0 %v3843_v32 }
0x10f7   :  { %2007 = vmatpush1.msra.mxu0 %v3846_v13 }
0x10f8   :  { %2008 = vmatprep.subr.mxu0 %v3849_v12 }
0x10f9   :  { %2009 = vmatpush1.msra.mxu0 %v3908_v4 }
0x10fa   :  { %2010 = vmatprep.subr.mxu0 %v3911_v5 }
0x10fb   :  { %2011 = vmatpush1.msra.mxu0 %v3914_v6 }
0x10fc   :  { %2012 = vmatprep.subr.mxu0 %v3917_v17 }
0x10fd   :  { %2013 = vmatpush1.msra.mxu0 %v3920_v21 }
0x10fe   :  { %2014 = vmatprep.subr.mxu0 %v3923_v34 }
0x10ff   :  { %2015 = vmatpush1.msra.mxu0 %v3926_v36 }
0x1100   :  { %2016 = vmatprep.subr.mxu0 %v3929_v53 }
0x1101   :  { %2017 = vmatpush1.msra.mxu0 %v3932_v14 }
0x1102   :  { %2018 = vmatprep.subr.mxu0 %v3935_v15 }
0x1103   :  { %2019 = vmatpush1.msra.mxu0 %v3938_v20 }
0x1104   :  { %2020 = vmatprep.subr.mxu0 %v3941_v39 }
0x1105   :  { %2021 = vmatpush1.msra.mxu0 %v3944_v19 }
0x1106   :  { %2022 = vmatprep.subr.mxu0 %v3947_v46 }
0x1107   :  { %2023 = vmatpush1.msra.mxu0 %v3950_v60 }
0x1108   :  { %2024 = vmatprep.subr.mxu0 %v3953_v56 }
0x1109   :  { %2025 = vmatpush1.msra.mxu0 %v3956_v59 }
0x110a   :  { %2026 = vmatprep.subr.mxu0 %v3959_v58 }
0x110b   :  { %2027 = vmatpush1.msra.mxu0 %v3962_v61 }
0x110c   :  { %2028 = vmatprep.subr.mxu0 %v3965_v8 }
0x110d   :  { %2029 = vmatpush1.msra.mxu0 %v3968_v49 }
0x110e   :  { %2030 = vmatprep.subr.mxu0 %v3971_v51 }
0x110f   :  { %2031 = vmatpush1.msra.mxu0 %v3974_v33 }
0x1110   :  { %2032 = vmatprep.subr.mxu0 %v3449_v37 }
0x1111   :  { %2033 = vmatpush1.msra.mxu0 %v3452_v38 }
0x1112   :  { %2034 = vmatprep.subr.mxu0 %v3455_v42 }
0x1113   :  { %2035 = vmatpush1.msra.mxu0 %v3458_v1 }
0x1114   :  { %2182 = vmatprep.subr.mxu0 %v3879_v22 }
0x11b4   :  { %v3982_v57 = vpop.f32.mrf.mxu0 }
0x11b5   :  { %v1915_v52 = vmul.f32 %v1914_v35, %v3982_v57 }
0x11b6   :  { %v3985_v41 = vpop.f32.mrf.mxu0 }
0x11b7   :  { %v1916_v16 = vadd.f32 %v1915_v52, %v3885_v62  ;;  %v1917_v37 = vmul.f32 %v1914_v35, %v3985_v41 }
0x11b9   :  { %v1918_v38 = vadd.f32 %v1917_v37, %v3888_v0  ;;  %v1919_v42 = vmul.f32 %v3468_v18, %v1916_v16  ;;  %v4021_v18 = vld [vmem:[#allocation8 + $0x18] sm:$0xff] }
0x11bb   :  { %v1920_v1 = vmul.f32 %v3474_v10, %v1918_v38  ;;  %v4024_v10 = vld [vmem:[#allocation8 + $0x10] sm:$0xff] }
0x11bd   :  { %v1921_v7 = vadd.f32 %v1920_v1, %v1919_v42 }
0x11bf   :  { %v1922_v48 = vadd.f32 %v3480_v55, %v1921_v7  ;;  %v4027_v55 = vld [vmem:[#allocation8 + $0x8] sm:$0xff] }
0x11c1   :  { %v1923_v54 = vmax.f32 %v1922_v48, 0.0 }
0x11c3   :  { %1989 = vmatmul.mubr.f32.vlgmr.msra.gmra.mxu1 %v1923_v54 }
0x11c4   :  { %2086 = vmatpush1.msra.mxu1 %v3839_v50  ;;  %2149 = vmatprep.mubr.f32.mxu1 %v2698_v9 }
0x11c5   :  { %2087 = vmatprep.subr.mxu1 %v3843_v32 }
0x11c6   :  { %2088 = vmatpush1.msra.mxu1 %v3846_v13 }
0x11c7   :  { %2089 = vmatprep.subr.mxu1 %v3849_v12 }
0x11c8   :  { %2090 = vmatpush1.msra.mxu1 %v3908_v4 }
0x11c9   :  { %2091 = vmatprep.subr.mxu1 %v3911_v5 }
0x11ca   :  { %2092 = vmatpush1.msra.mxu1 %v3914_v6 }
0x11cb   :  { %2093 = vmatprep.subr.mxu1 %v3917_v17 }
0x11cc   :  { %2094 = vmatpush1.msra.mxu1 %v3920_v21 }
0x11cd   :  { %2095 = vmatprep.subr.mxu1 %v3923_v34 }
0x11ce   :  { %2096 = vmatpush1.msra.mxu1 %v3926_v36 }
0x11cf   :  { %2097 = vmatprep.subr.mxu1 %v3929_v53 }
0x11d0   :  { %2098 = vmatpush1.msra.mxu1 %v3932_v14 }
0x11d1   :  { %2099 = vmatprep.subr.mxu1 %v3935_v15 }
0x11d2   :  { %2100 = vmatpush1.msra.mxu1 %v3938_v20 }
0x11d3   :  { %2101 = vmatprep.subr.mxu1 %v3941_v39 }
0x11d4   :  { %2102 = vmatpush1.msra.mxu1 %v3944_v19 }
0x11d5   :  { %2103 = vmatprep.subr.mxu1 %v3947_v46 }
0x11d6   :  { %2104 = vmatpush1.msra.mxu1 %v3950_v60 }
0x11d7   :  { %2105 = vmatprep.subr.mxu1 %v3953_v56 }
0x11d8   :  { %2106 = vmatpush1.msra.mxu1 %v3956_v59 }
0x11d9   :  { %2107 = vmatprep.subr.mxu1 %v3959_v58 }
0x11da   :  { %2108 = vmatpush1.msra.mxu1 %v3962_v61 }
0x11db   :  { %2109 = vmatprep.subr.mxu1 %v3965_v8 }
0x11dc   :  { %2110 = vmatpush1.msra.mxu1 %v3968_v49 }
0x11dd   :  { %2111 = vmatprep.subr.mxu1 %v3971_v51 }
0x11de   :  { %2112 = vmatpush1.msra.mxu1 %v3974_v33 }
0x11df   :  { %2113 = vmatprep.subr.mxu1 %v4021_v18 }
0x11e0   :  { %2114 = vmatpush1.msra.mxu1 %v4024_v10 }
0x11e1   :  { %2115 = vmatprep.subr.mxu1 %v4027_v55 }
0x11e2   :  { %2116 = vmatpush1.msra.mxu1 %v4030_v23 }
0x11e3   :  { %2263 = vmatprep.subr.mxu1 %v3879_v22 }
0x1283   :  { %v1990_v24 = vpop.f32.mrf.mxu1 }
0x1284   :  { %v1995_v25 = vmul.f32 %v1990_v24, %v1914_v35  ;;  %v2156_v45 = vmul.f32 2.0, %v1990_v24 }
0x1285   :  { %v4034_v26 = vpop.f32.mrf.mxu1 }
0x1286   :  { %v1996_v27 = vadd.f32 %v1995_v25, %v3885_v62  ;;  %v1997_v28 = vmul.f32 %v4034_v26, %v1914_v35  ;;  %v2157_v52 = vadd.f32 %v2156_v45, %v3982_v57  ;;  %v2164_v57 = vmul.f32 2.0, %v4034_v26 }
0x1288   :  { %v1998_v29 = vadd.f32 %v1997_v28, %v3888_v0  ;;  %v1999_v31 = vmul.f32 %v4042_v30, %v1996_v27 }
0x128a   :  { %v2000_v63 = vmul.f32 %v4048_v47, %v1998_v29 }
0x128c   :  { %v2001_v3 = vadd.f32 %v2000_v63, %v1999_v31  ;;  %v2165_v31 = vadd.f32 %v2164_v57, %v3985_v41 }
0x128e   :  { %v2002_v43 = vadd.f32 %v4054_v40, %v2001_v3  ;;  %v2161_v3 = vstv %s2542_s5 }
0x1290   :  { %v2003_v11 = vmax.f32 %v2002_v43, 0.0 }
0x1292   :  { %2069 = vmatmul.mubr.f32.vlgmr.msra.gmra.mxu0 %v2003_v11 }
0x1293   :  { %2183 = vmatpush1.msra.mxu0 %v3839_v50  ;;  %2246 = vmatprep.mubr.f32.mxu0 %v2698_v9 }
0x1294   :  { %2184 = vmatprep.subr.mxu0 %v3843_v32 }
0x1295   :  { %2185 = vmatpush1.msra.mxu0 %v3846_v13 }
0x1296   :  { %2186 = vmatprep.subr.mxu0 %v3849_v12 }
0x1297   :  { %2187 = vmatpush1.msra.mxu0 %v3908_v4 }
0x1298   :  { %2188 = vmatprep.subr.mxu0 %v3911_v5 }
0x1299   :  { %2189 = vmatpush1.msra.mxu0 %v3914_v6 }
0x129a   :  { %2190 = vmatprep.subr.mxu0 %v3917_v17 }
0x129b   :  { %2191 = vmatpush1.msra.mxu0 %v3920_v21 }
0x129c   :  { %2192 = vmatprep.subr.mxu0 %v3923_v34 }
0x129d   :  { %2193 = vmatpush1.msra.mxu0 %v3926_v36 }
0x129e   :  { %2194 = vmatprep.subr.mxu0 %v3929_v53 }
0x129f   :  { %2195 = vmatpush1.msra.mxu0 %v3932_v14 }
0x12a0   :  { %2196 = vmatprep.subr.mxu0 %v3935_v15 }
0x12a1   :  { %2197 = vmatpush1.msra.mxu0 %v3938_v20 }
0x12a2   :  { %2198 = vmatprep.subr.mxu0 %v3941_v39 }
0x12a3   :  { %2199 = vmatpush1.msra.mxu0 %v3944_v19 }
0x12a4   :  { %2200 = vmatprep.subr.mxu0 %v3947_v46 }
0x12a5   :  { %2201 = vmatpush1.msra.mxu0 %v3950_v60 }
0x12a6   :  { %2202 = vmatprep.subr.mxu0 %v3953_v56 }
0x12a7   :  { %2203 = vmatpush1.msra.mxu0 %v3956_v59 }
0x12a8   :  { %2204 = vmatprep.subr.mxu0 %v3959_v58 }
0x12a9   :  { %2205 = vmatpush1.msra.mxu0 %v3962_v61 }
0x12aa   :  { %2206 = vmatprep.subr.mxu0 %v3965_v8 }
0x12ab   :  { %2207 = vmatpush1.msra.mxu0 %v3968_v49 }
0x12ac   :  { %2208 = vmatprep.subr.mxu0 %v3971_v51 }
0x12ad   :  { %2209 = vmatpush1.msra.mxu0 %v3974_v33 }
0x12ae   :  { %2210 = vmatprep.subr.mxu0 %v4021_v18 }
0x12af   :  { %2211 = vmatpush1.msra.mxu0 %v4024_v10 }
0x12b0   :  { %2212 = vmatprep.subr.mxu0 %v4027_v55 }
0x12b1   :  { %2213 = vmatpush1.msra.mxu0 %v4030_v23 }
0x12b2   :  { %2343 = vmatprep.subr.mxu0 %v3879_v22 }
0x1352   :  { %v2070_v35 = vpop.f32.mrf.mxu0 }
0x1353   :  { %v2076_v16 = vmul.f32 %v2075_v2, %v2070_v35  ;;  %v2158_v37 = vmul.f32 2.0, %v2070_v35 }
0x1354   :  { %v2072_v38 = vpop.f32.mrf.mxu0 }
0x1355   :  { %v2077_v42 = vadd.f32 %v2076_v16, %v3885_v62  ;;  %v2078_v1 = vmul.f32 %v2075_v2, %v2072_v38  ;;  %v2159_v7 = vadd.f32 %v2158_v37, %v2157_v52  ;;  %v2166_v29 = vmul.f32 2.0, %v2072_v38 }
0x1357   :  { %v2079_v48 = vadd.f32 %v2078_v1, %v3888_v0  ;;  %v2080_v54 = vmul.f32 %v4042_v30, %v2077_v42  ;;  %v2167_v11 = vadd.f32 %v2166_v29, %v2165_v31  ;;  %v2253_v42 = vstv %s2545_s15 }
0x1359   :  { %v2081_v25 = vmul.f32 %v4048_v47, %v2079_v48 }
0x135b   :  { %v2082_v27 = vadd.f32 %v2081_v25, %v2080_v54 }
0x135d   :  { %v2083_v24 = vadd.f32 %v4054_v40, %v2082_v27 }
0x135f   :  { %v2084_v28 = vmax.f32 %v2083_v24, 0.0 }
0x1361   :  { %2150 = vmatmul.mubr.f32.vlgmr.msra.gmra.mxu1 %v2084_v28 }
0x1362   :  { %2264 = vmatpush1.msra.mxu1 %v3839_v50  ;;  %2327 = vmatprep.mubr.f32.mxu1 %v2698_v9 }
0x1363   :  { %2265 = vmatprep.subr.mxu1 %v3843_v32 }
0x1364   :  { %2266 = vmatpush1.msra.mxu1 %v3846_v13 }
0x1365   :  { %2267 = vmatprep.subr.mxu1 %v3849_v12 }
0x1366   :  { %2268 = vmatpush1.msra.mxu1 %v3908_v4 }
0x1367   :  { %2269 = vmatprep.subr.mxu1 %v3911_v5 }
0x1368   :  { %2270 = vmatpush1.msra.mxu1 %v3914_v6 }
0x1369   :  { %2271 = vmatprep.subr.mxu1 %v3917_v17 }
0x136a   :  { %2272 = vmatpush1.msra.mxu1 %v3920_v21 }
0x136b   :  { %2273 = vmatprep.subr.mxu1 %v3923_v34 }
0x136c   :  { %2274 = vmatpush1.msra.mxu1 %v3926_v36 }
0x136d   :  { %2275 = vmatprep.subr.mxu1 %v3929_v53 }
0x136e   :  { %2276 = vmatpush1.msra.mxu1 %v3932_v14 }
0x136f   :  { %2277 = vmatprep.subr.mxu1 %v3935_v15 }
0x1370   :  { %2278 = vmatpush1.msra.mxu1 %v3938_v20 }
0x1371   :  { %2279 = vmatprep.subr.mxu1 %v3941_v39 }
0x1372   :  { %2280 = vmatpush1.msra.mxu1 %v3944_v19 }
0x1373   :  { %2281 = vmatprep.subr.mxu1 %v3947_v46 }
0x1374   :  { %2282 = vmatpush1.msra.mxu1 %v3950_v60 }
0x1375   :  { %2283 = vmatprep.subr.mxu1 %v3953_v56 }
0x1376   :  { %2284 = vmatpush1.msra.mxu1 %v3956_v59 }
0x1377   :  { %2285 = vmatprep.subr.mxu1 %v3959_v58 }
0x1378   :  { %2286 = vmatpush1.msra.mxu1 %v3962_v61 }
0x1379   :  { %2287 = vmatprep.subr.mxu1 %v3965_v8 }
0x137a   :  { %2288 = vmatpush1.msra.mxu1 %v3968_v49 }
0x137b   :  { %2289 = vmatprep.subr.mxu1 %v3971_v51 }
0x137c   :  { %2290 = vmatpush1.msra.mxu1 %v3974_v33 }
0x137d   :  { %2291 = vmatprep.subr.mxu1 %v4021_v18 }
0x137e   :  { %2292 = vmatpush1.msra.mxu1 %v4024_v10 }
0x137f   :  { %2293 = vmatprep.subr.mxu1 %v4027_v55 }
0x1380   :  { %2294 = vmatpush1.msra.mxu1 %v4030_v23 }
0x1381   :  { %2424 = vmatprep.subr.mxu1 %v3879_v22 }
0x1421   :  { %v2151_v63 = vpop.f32.mrf.mxu1 }
0x1422   :  { %v2160_v43 = vadd.f32 %v2159_v7, %v2151_v63 }
0x1423   :  { %v2153_v45 = vpop.f32.mrf.mxu1 }
0x1424   :  { %v2162_v2 = vmul.f32 %v2161_v3, %v2160_v43  ;;  %v2168_v35 = vadd.f32 %v2167_v11, %v2153_v45 }
0x1426   :  { %v4132_v52 = vadd.f32 %v2162_v2, %v3885_v62  ;;  %v2169_v16 = vmul.f32 %v2168_v35, %v2161_v3 }
0x1428   :  { %v4135_v37 = vadd.f32 %v2169_v16, %v3888_v0  ;;  %v2177_v22 = vmul.f32 %v4042_v30, %v4132_v52 }
0x142a   :  { %v2178_v41 = vmul.f32 %v4048_v47, %v4135_v37  ;;  %v2171_v26 = vsel %vm127_vm1, %v4132_v52, %v4135_v37 }
0x142b   :  { %2543 = vst.msk [vmem:[%s4248_s7 + $0x30] sm:$0xff] %vm138_vm0, %v2171_v26 }
0x142c   :  { %v2179_v62 = vadd.f32 %v2178_v41, %v2177_v22 }
0x142e   :  { %v2180_v0 = vadd.f32 %v4054_v40, %v2179_v62 }
0x1430   :  { %v2181_v38 = vmax.f32 %v2180_v0, 0.0 }
0x1432   :  { %2247 = vmatmul.mubr.f32.vlgmr.msra.gmra.mxu0 %v2181_v38 }
0x1433   :  { %2344 = vmatpush1.msra.mxu0 %v3839_v50  ;;  %2407 = vmatprep.mubr.f32.mxu0 %v2698_v9 }
0x1434   :  { %2345 = vmatprep.subr.mxu0 %v3843_v32 }
0x1435   :  { %2346 = vmatpush1.msra.mxu0 %v3846_v13 }
0x1436   :  { %2347 = vmatprep.subr.mxu0 %v3849_v12 }
0x1437   :  { %2348 = vmatpush1.msra.mxu0 %v3908_v4 }
0x1438   :  { %2349 = vmatprep.subr.mxu0 %v3911_v5 }
0x1439   :  { %2350 = vmatpush1.msra.mxu0 %v3914_v6 }
0x143a   :  { %2351 = vmatprep.subr.mxu0 %v3917_v17 }
0x143b   :  { %2352 = vmatpush1.msra.mxu0 %v3920_v21 }
0x143c   :  { %2353 = vmatprep.subr.mxu0 %v3923_v34 }
0x143d   :  { %2354 = vmatpush1.msra.mxu0 %v3926_v36 }
0x143e   :  { %2355 = vmatprep.subr.mxu0 %v3929_v53 }
0x143f   :  { %2356 = vmatpush1.msra.mxu0 %v3932_v14 }
0x1440   :  { %2357 = vmatprep.subr.mxu0 %v3935_v15 }
0x1441   :  { %2358 = vmatpush1.msra.mxu0 %v3938_v20 }
0x1442   :  { %2359 = vmatprep.subr.mxu0 %v3941_v39 }
0x1443   :  { %2360 = vmatpush1.msra.mxu0 %v3944_v19 }
0x1444   :  { %2361 = vmatprep.subr.mxu0 %v3947_v46 }
0x1445   :  { %2362 = vmatpush1.msra.mxu0 %v3950_v60 }
0x1446   :  { %2363 = vmatprep.subr.mxu0 %v3953_v56 }
0x1447   :  { %2364 = vmatpush1.msra.mxu0 %v3956_v59 }
0x1448   :  { %2365 = vmatprep.subr.mxu0 %v3959_v58 }
0x1449   :  { %2366 = vmatpush1.msra.mxu0 %v3962_v61 }
0x144a   :  { %2367 = vmatprep.subr.mxu0 %v3965_v8 }
0x144b   :  { %2368 = vmatpush1.msra.mxu0 %v3968_v49 }
0x144c   :  { %2369 = vmatprep.subr.mxu0 %v3971_v51 }
0x144d   :  { %2370 = vmatpush1.msra.mxu0 %v3974_v33 }
0x144e   :  { %2371 = vmatprep.subr.mxu0 %v4021_v18 }
0x144f   :  { %2372 = vmatpush1.msra.mxu0 %v4024_v10 }
0x1450   :  { %2373 = vmatprep.subr.mxu0 %v4027_v55 }
0x1451   :  { %2374 = vmatpush1.msra.mxu0 %v4030_v23 }
0x14f2   :  { %v2248_v1 = vpop.f32.mrf.mxu0 }
0x14f3   :  { %v2254_v7 = vmul.f32 %v2253_v42, %v2248_v1 }
0x14f4   :  { %v4182_v48 = vpop.f32.mrf.mxu0 }
0x14f5   :  { %v2255_v54 = vadd.f32 %v2254_v7, %v4132_v52  ;;  %v2256_v25 = vmul.f32 %v2253_v42, %v4182_v48 }
0x14f7   :  { %v2257_v27 = vadd.f32 %v2256_v25, %v4135_v37  ;;  %v2258_v24 = vmul.f32 %v4042_v30, %v2255_v54 }
0x14f9   :  { %v2259_v28 = vmul.f32 %v4048_v47, %v2257_v27 }
0x14fb   :  { %v2260_v57 = vadd.f32 %v2259_v28, %v2258_v24 }
0x14fd   :  { %v2261_v29 = vadd.f32 %v4054_v40, %v2260_v57 }
0x14ff   :  { %v2262_v31 = vmax.f32 %v2261_v29, 0.0 }
0x1501   :  { %2328 = vmatmul.mubr.f32.vlgmr.msra.gmra.mxu1 %v2262_v31 }
0x1502   :  { %2425 = vmatpush1.msra.mxu1 %v3839_v50  ;;  %2488 = vmatprep.mubr.f32.mxu1 %v2698_v9 }
0x1503   :  { %2426 = vmatprep.subr.mxu1 %v3843_v32 }
0x1504   :  { %2427 = vmatpush1.msra.mxu1 %v3846_v13 }
0x1505   :  { %2428 = vmatprep.subr.mxu1 %v3849_v12 }
0x1506   :  { %2429 = vmatpush1.msra.mxu1 %v3908_v4 }
0x1507   :  { %2430 = vmatprep.subr.mxu1 %v3911_v5 }
0x1508   :  { %2431 = vmatpush1.msra.mxu1 %v3914_v6 }
0x1509   :  { %2432 = vmatprep.subr.mxu1 %v3917_v17 }
0x150a   :  { %2433 = vmatpush1.msra.mxu1 %v3920_v21 }
0x150b   :  { %2434 = vmatprep.subr.mxu1 %v3923_v34 }
0x150c   :  { %2435 = vmatpush1.msra.mxu1 %v3926_v36 }
0x150d   :  { %2436 = vmatprep.subr.mxu1 %v3929_v53  ;;  %v2414_v53 = vstv %s2544_s16 }
0x150e   :  { %2437 = vmatpush1.msra.mxu1 %v3932_v14 }
0x150f   :  { %2438 = vmatprep.subr.mxu1 %v3935_v15 }
0x1510   :  { %2439 = vmatpush1.msra.mxu1 %v3938_v20 }
0x1511   :  { %2440 = vmatprep.subr.mxu1 %v3941_v39 }
0x1512   :  { %2441 = vmatpush1.msra.mxu1 %v3944_v19 }
0x1513   :  { %2442 = vmatprep.subr.mxu1 %v3947_v46 }
0x1514   :  { %2443 = vmatpush1.msra.mxu1 %v3950_v60 }
0x1515   :  { %2444 = vmatprep.subr.mxu1 %v3953_v56 }
0x1516   :  { %2445 = vmatpush1.msra.mxu1 %v3956_v59 }
0x1517   :  { %2446 = vmatprep.subr.mxu1 %v3959_v58 }
0x1518   :  { %2447 = vmatpush1.msra.mxu1 %v3962_v61 }
0x1519   :  { %2448 = vmatprep.subr.mxu1 %v3965_v8 }
0x151a   :  { %2449 = vmatpush1.msra.mxu1 %v3968_v49 }
0x151b   :  { %2450 = vmatprep.subr.mxu1 %v3971_v51 }
0x151c   :  { %2451 = vmatpush1.msra.mxu1 %v3974_v33 }
0x151d   :  { %2452 = vmatprep.subr.mxu1 %v4021_v18 }
0x151e   :  { %2453 = vmatpush1.msra.mxu1 %v4024_v10 }
0x151f   :  { %2454 = vmatprep.subr.mxu1 %v4027_v55 }
0x1520   :  { %2455 = vmatpush1.msra.mxu1 %v4030_v23  ;;  %v2500_v23 = vstv %s2546_s2 }
0x15c1   :  { %v2329_v9 = vpop.f32.mrf.mxu1 }
0x15c2   :  { %v2334_v50 = vmul.f32 %v2329_v9, %v2253_v42  ;;  %v2495_v36 = vmul.f32 2.0, %v2329_v9 }
0x15c3   :  { %v2331_v32 = vpop.f32.mrf.mxu1 }
0x15c4   :  { %v2335_v13 = vadd.f32 %v2334_v50, %v4132_v52  ;;  %v2336_v12 = vmul.f32 %v2331_v32, %v2253_v42  ;;  %v2496_v15 = vadd.f32 %v2495_v36, %v2248_v1  ;;  %v2503_v33 = vmul.f32 2.0, %v2331_v32 }
0x15c6   :  { %v2337_v4 = vadd.f32 %v2336_v12, %v4135_v37  ;;  %v2338_v5 = vmul.f32 %v4042_v30, %v2335_v13  ;;  %v2504_v10 = vadd.f32 %v2503_v33, %v4182_v48 }
0x15c8   :  { %v2339_v6 = vmul.f32 %v4048_v47, %v2337_v4 }
0x15ca   :  { %v2340_v17 = vadd.f32 %v2339_v6, %v2338_v5 }
0x15cc   :  { %v2341_v21 = vadd.f32 %v4054_v40, %v2340_v17 }
0x15ce   :  { %v2342_v34 = vmax.f32 %v2341_v21, 0.0 }
0x15d0   :  { %2408 = vmatmul.mubr.f32.vlgmr.msra.gmra.mxu0 %v2342_v34 }
0x1690   :  { %v2409_v14 = vpop.f32.mrf.mxu0 }
0x1691   :  { %v2497_v20 = vmul.f32 2.0, %v2409_v14  ;;  %v2415_v39 = vmul.f32 %v2414_v53, %v2409_v14 }
0x1692   :  { %v2411_v19 = vpop.f32.mrf.mxu0 }
0x1693   :  { %v2416_v46 = vadd.f32 %v2415_v39, %v4132_v52  ;;  %v2417_v60 = vmul.f32 %v2414_v53, %v2411_v19  ;;  %v2498_v56 = vadd.f32 %v2497_v20, %v2496_v15  ;;  %v2505_v18 = vmul.f32 2.0, %v2411_v19 }
0x1695   :  { %v2418_v59 = vadd.f32 %v2417_v60, %v4135_v37  ;;  %v2419_v58 = vmul.f32 %v4042_v30, %v2416_v46  ;;  %v2506_v3 = vadd.f32 %v2505_v18, %v2504_v10 }
0x1697   :  { %v2420_v61 = vmul.f32 %v4048_v47, %v2418_v59 }
0x1699   :  { %v2421_v8 = vadd.f32 %v2420_v61, %v2419_v58 }
0x169b   :  { %v2422_v49 = vadd.f32 %v4054_v40, %v2421_v8 }
0x169d   :  { %v2423_v51 = vmax.f32 %v2422_v49, 0.0 }
0x169f   :  { %2489 = vmatmul.mubr.f32.vlgmr.msra.gmra.mxu1 %v2423_v51 }
0x175f   :  { %v2490_v55 = vpop.f32.mrf.mxu1 }
0x1760   :  { %v2499_v63 = vadd.f32 %v2498_v56, %v2490_v55 }
0x1761   :  { %v2492_v43 = vpop.f32.mrf.mxu1 }
0x1762   :  { %v2501_v11 = vmul.f32 %v2500_v23, %v2499_v63  ;;  %v2507_v45 = vadd.f32 %v2506_v3, %v2492_v43 }
0x1764   :  { %v2508_v30 = vmul.f32 %v2507_v45, %v2500_v23  ;;  %v2502_v47 = vadd.f32 %v2501_v11, %v4132_v52 }
0x1766   :  { %v2509_v2 = vadd.f32 %v2508_v30, %v4135_v37 }
0x1768   :  { %v2510_v40 = vsel %vm127_vm1, %v2502_v47, %v2509_v2 }
0x1769   :  { %2547 = vst.msk [vmem:[%s4248_s7 + $0x38] sm:$0xff] %vm138_vm0, %v2510_v40 }
0x176a   :  { %2517 = vsyncpa [#allocation3], 1 }
0x176b   :  { %2518 = vsyncpa [#allocation4], 1 }
0x176c   :  { %2519 = vsyncpa [#allocation6], 1 }

</bundles_post_ra>
